<compile_context>
chip_gen: v7x
topology: tpu7x:2x2x1
jax: 0.10.0
libtpu: 0.0.40
codegen_flags: <defaults>
</compile_context>

<pallas_src>
import functools
import math

import jax
import jax.numpy as jnp
from jax import lax
from jax.experimental import pallas as pl
from jax.experimental.pallas import tpu as pltpu


# ----------------------------------------------------------------------------
# In-kernel building blocks (pure functions on values already in vregs)
# ----------------------------------------------------------------------------

def _rope(x, cos, sin, rot):
    # x * cos(pos) + rotate_half(x) * sin(pos); rotate_half realized as a matmul
    # with a constant +-1 permutation matrix (no lane concatenates / rolls).
    return x * cos + jnp.dot(x, rot, preferred_element_type=jnp.float32) * sin


def _attention(q, k, v, cos_q, sin_q, cos_k, sin_k, rot, mask, wo, bo,
               n_heads, d_k):
    """q:(Sq,D) k,v:(Sk,D) in head-contiguous column layout, mask:(Sq,Sk) of {0,1}."""
    scale = 1.0 / math.sqrt(d_k)
    q = _rope(q, cos_q, sin_q, rot)
    k = _rope(k, cos_k, sin_k, rot)
    sq = q.shape[0]
    d_model = wo.shape[1]
    acc = jnp.zeros((sq, d_model), jnp.float32)
    for h in range(n_heads):                       # unrolled at trace time
        lo = h * d_k
        qh = q[:, lo:lo + d_k]
        kh = k[:, lo:lo + d_k]
        vh = v[:, lo:lo + d_k]
        s = lax.dot_general(qh, kh, (((1,), (1,)), ((), ())),
                            preferred_element_type=jnp.float32) * scale
        s = jnp.where(mask == 0.0, -1e9, s)        # matches masked_fill semantics
        m = jnp.max(s, axis=-1, keepdims=True)
        p = jnp.exp(s - m)
        denom = jnp.sum(p, axis=-1, keepdims=True)
        p = p * pl.reciprocal(denom, approx=True)  # EUP reciprocal (softmax)
        ctx = jnp.dot(p, vh, preferred_element_type=jnp.float32)     # (Sq, d_k)
        # head-major merge folded into the output projection
        acc = acc + jnp.dot(ctx, wo[lo:lo + d_k, :],
                            preferred_element_type=jnp.float32)
    return acc + bo


def _rmsnorm(x, alpha, d_model, eps=1e-6):
    ss = jnp.sum(x * x, axis=-1, keepdims=True)
    rms = jnp.sqrt(ss) * (d_model ** -0.5)
    return alpha * x * pl.reciprocal(rms + eps, approx=True)


def _ffn(x, w1, b1, w2, b2):
    h = jnp.dot(x, w1, preferred_element_type=jnp.float32) + b1
    half = h.shape[-1] // 2
    val = h[:, :half]
    gate = h[:, half:]
    act = val * (gate * jax.nn.sigmoid(gate))      # SwiGLU
    return jnp.dot(act, w2, preferred_element_type=jnp.float32) + b2


# ----------------------------------------------------------------------------
# Fused per-layer kernels
# ----------------------------------------------------------------------------

def _encoder_layer_kernel(x_ref, mask_ref, cos_ref, sin_ref, rot_ref,
                          wqkv_ref, bqkv_ref, wo_ref, bo_ref,
                          w1_ref, b1_ref, w2_ref, b2_ref, alpha_ref,
                          o_ref, *, n_heads, d_k):
    d_model = n_heads * d_k
    x = x_ref[0]
    mask = mask_ref[0]
    cos = cos_ref[...]
    sin = sin_ref[...]
    rot = rot_ref[...]
    alpha = alpha_ref[...]

    qkv = jnp.dot(x, wqkv_ref[...], preferred_element_type=jnp.float32) + bqkv_ref[...]
    q = qkv[:, :d_model]
    k = qkv[:, d_model:2 * d_model]
    v = qkv[:, 2 * d_model:]
    attn = _attention(q, k, v, cos, sin, cos, sin, rot, mask,
                      wo_ref[...], bo_ref[...], n_heads, d_k)
    x1 = _rmsnorm(attn + x, alpha, d_model)
    f = _ffn(x1, w1_ref[...], b1_ref[...], w2_ref[...], b2_ref[...])
    o_ref[0] = _rmsnorm(f + x1, alpha, d_model)


def _decoder_layer_kernel(x_ref, enc_ref, tmask_ref, smask_ref,
                          cos_t_ref, sin_t_ref, cos_s_ref, sin_s_ref, rot_ref,
                          wqkv1_ref, bqkv1_ref, wo1_ref, bo1_ref,
                          wq2_ref, bq2_ref, wkv2_ref, bkv2_ref, wo2_ref, bo2_ref,
                          w1_ref, b1_ref, w2_ref, b2_ref, alpha_ref,
                          o_ref, *, n_heads, d_k):
    d_model = n_heads * d_k
    x = x_ref[0]
    enc = enc_ref[0]
    tmask = tmask_ref[0]
    smask = smask_ref[0]
    cos_t = cos_t_ref[...]
    sin_t = sin_t_ref[...]
    cos_s = cos_s_ref[...]
    sin_s = sin_s_ref[...]
    rot = rot_ref[...]
    alpha = alpha_ref[...]

    # masked self attention + residual RMSNorm
    qkv = jnp.dot(x, wqkv1_ref[...], preferred_element_type=jnp.float32) + bqkv1_ref[...]
    q = qkv[:, :d_model]
    k = qkv[:, d_model:2 * d_model]
    v = qkv[:, 2 * d_model:]
    attn1 = _attention(q, k, v, cos_t, sin_t, cos_t, sin_t, rot, tmask,
                       wo1_ref[...], bo1_ref[...], n_heads, d_k)
    query = _rmsnorm(attn1 + x, alpha, d_model)

    # cross attention (K/V from encoder output) + residual RMSNorm
    q2 = jnp.dot(query, wq2_ref[...], preferred_element_type=jnp.float32) + bq2_ref[...]
    kv2 = jnp.dot(enc, wkv2_ref[...], preferred_element_type=jnp.float32) + bkv2_ref[...]
    k2 = kv2[:, :d_model]
    v2 = kv2[:, d_model:]
    attn2 = _attention(q2, k2, v2, cos_t, sin_t, cos_s, sin_s, rot, smask,
                       wo2_ref[...], bo2_ref[...], n_heads, d_k)
    inter = _rmsnorm(attn2 + query, alpha, d_model)

    # feed forward + residual RMSNorm
    f = _ffn(inter, w1_ref[...], b1_ref[...], w2_ref[...], b2_ref[...])
    o_ref[0] = _rmsnorm(f + inter, alpha, d_model)


def _logits_kernel(x_ref, w_ref, b_ref, o_ref):
    z = jnp.dot(x_ref[...], w_ref[...], preferred_element_type=jnp.float32) + b_ref[...]
    m = jnp.max(z, axis=-1, keepdims=True)
    lse = jnp.log(jnp.sum(jnp.exp(z - m), axis=-1, keepdims=True)) + m
    o_ref[...] = z - lse


# ----------------------------------------------------------------------------
# pallas_call wrappers
# ----------------------------------------------------------------------------

def encoder_layer(lp, x, mask, cos, sin, rot, n_heads):
    B, S, D = x.shape
    d_k = D // n_heads
    F1 = lp["w1"].shape[1]
    full2 = lambda b: (0, 0)
    kernel = functools.partial(_encoder_layer_kernel, n_heads=n_heads, d_k=d_k)
    return pl.pallas_call(
        kernel,
        out_shape=jax.ShapeDtypeStruct((B, S, D), jnp.float32),
        grid=(B,),
        in_specs=[
            pl.BlockSpec((1, S, D), lambda b: (b, 0, 0)),     # x
            pl.BlockSpec((1, S, S), lambda b: (b, 0, 0)),     # mask
            pl.BlockSpec((S, D), full2),                      # cos
            pl.BlockSpec((S, D), full2),                      # sin
            pl.BlockSpec((D, D), full2),                      # rotate_half matrix
            pl.BlockSpec((D, 3 * D), full2),                  # wqkv
            pl.BlockSpec((1, 3 * D), full2),                  # bqkv
            pl.BlockSpec((D, D), full2),                      # wo
            pl.BlockSpec((1, D), full2),                      # bo
            pl.BlockSpec((D, F1), full2),                     # w1
            pl.BlockSpec((1, F1), full2),                     # b1
            pl.BlockSpec((F1 // 2, D), full2),                # w2
            pl.BlockSpec((1, D), full2),                      # b2
            pl.BlockSpec((1, D), full2),                      # alpha
        ],
        out_specs=pl.BlockSpec((1, S, D), lambda b: (b, 0, 0)),
        compiler_params=pltpu.CompilerParams(dimension_semantics=("parallel",)),
    )(x, mask, cos, sin, rot,
      lp["wqkv"], lp["bqkv"], lp["wo"], lp["bo"],
      lp["w1"], lp["b1"], lp["w2"], lp["b2"], lp["alpha"])


def decoder_layer(lp, x, enc, tmask, smask, cos_t, sin_t, cos_s, sin_s, rot, n_heads):
    B, St, D = x.shape
    Ss = enc.shape[1]
    d_k = D // n_heads
    F1 = lp["w1"].shape[1]
    full2 = lambda b: (0, 0)
    kernel = functools.partial(_decoder_layer_kernel, n_heads=n_heads, d_k=d_k)
    return pl.pallas_call(
        kernel,
        out_shape=jax.ShapeDtypeStruct((B, St, D), jnp.float32),
        grid=(B,),
        in_specs=[
            pl.BlockSpec((1, St, D), lambda b: (b, 0, 0)),    # x
            pl.BlockSpec((1, Ss, D), lambda b: (b, 0, 0)),    # encoder output
            pl.BlockSpec((1, St, St), lambda b: (b, 0, 0)),   # target mask
            pl.BlockSpec((1, St, Ss), lambda b: (b, 0, 0)),   # source mask
            pl.BlockSpec((St, D), full2),                     # cos (target)
            pl.BlockSpec((St, D), full2),                     # sin (target)
            pl.BlockSpec((Ss, D), full2),                     # cos (source)
            pl.BlockSpec((Ss, D), full2),                     # sin (source)
            pl.BlockSpec((D, D), full2),                      # rotate_half matrix
            pl.BlockSpec((D, 3 * D), full2),                  # wqkv (self-attn)
            pl.BlockSpec((1, 3 * D), full2),
            pl.BlockSpec((D, D), full2),                      # wo1
            pl.BlockSpec((1, D), full2),
            pl.BlockSpec((D, D), full2),                      # wq2 (cross-attn)
            pl.BlockSpec((1, D), full2),
            pl.BlockSpec((D, 2 * D), full2),                  # wkv2
            pl.BlockSpec((1, 2 * D), full2),
            pl.BlockSpec((D, D), full2),                      # wo2
            pl.BlockSpec((1, D), full2),
            pl.BlockSpec((D, F1), full2),                     # w1
            pl.BlockSpec((1, F1), full2),
            pl.BlockSpec((F1 // 2, D), full2),                # w2
            pl.BlockSpec((1, D), full2),
            pl.BlockSpec((1, D), full2),                      # alpha
        ],
        out_specs=pl.BlockSpec((1, St, D), lambda b: (b, 0, 0)),
        compiler_params=pltpu.CompilerParams(dimension_semantics=("parallel",)),
    )(x, enc, tmask, smask, cos_t, sin_t, cos_s, sin_s, rot,
      lp["wqkv1"], lp["bqkv1"], lp["wo1"], lp["bo1"],
      lp["wq2"], lp["bq2"], lp["wkv2"], lp["bkv2"], lp["wo2"], lp["bo2"],
      lp["w1"], lp["b1"], lp["w2"], lp["b2"], lp["alpha"])


def logits_logsoftmax(x2d, w_pad, b_pad):
    M, D = x2d.shape
    Vp = w_pad.shape[1]
    row_tile = 8 if M % 8 == 0 else M
    return pl.pallas_call(
        _logits_kernel,
        out_shape=jax.ShapeDtypeStruct((M, Vp), jnp.float32),
        grid=(M // row_tile,),
        in_specs=[
            pl.BlockSpec((row_tile, D), lambda i: (i, 0)),
            pl.BlockSpec((D, Vp), lambda i: (0, 0)),
            pl.BlockSpec((1, Vp), lambda i: (0, 0)),
        ],
        out_specs=pl.BlockSpec((row_tile, Vp), lambda i: (i, 0)),
        compiler_params=pltpu.CompilerParams(dimension_semantics=("parallel",)),
    )(x2d, w_pad, b_pad)


# ----------------------------------------------------------------------------
# Trace-time preparation (pure jnp glue; constant-folded under jit)
# ----------------------------------------------------------------------------

def _head_perm(d_model, n_heads):
    # reference split 'b c (h w) -> b w c h' (h=d_k, w=n_heads): column = d*H + h.
    # perm[h*d_k + d] = d*H + h  -> head-contiguous layout.
    d_k = d_model // n_heads
    return jnp.arange(d_model).reshape(d_k, n_heads).T.reshape(-1)


def _rotate_half_matrix(d_model, perm):
    half = d_model // 2
    r = jnp.zeros((d_model, d_model), jnp.float32)
    j = jnp.arange(half)
    r = r.at[j + half, j].set(-1.0)   # out[:, j]      = -x[:, j + half]
    r = r.at[j, j + half].set(1.0)    # out[:, j+half] =  x[:, j]
    return r[perm][:, perm]           # express in the head-permuted layout


def _rope_tables(seq_len, d_model, perm, base=10000.0):
    theta = 1.0 / (base ** (jnp.arange(0, d_model, 2, dtype=jnp.float32) / d_model))
    freqs = jnp.arange(seq_len, dtype=jnp.float32)[:, None] * theta[None, :]
    pos = jnp.concatenate([freqs, freqs], axis=-1)            # (S, D)
    return jnp.cos(pos)[:, perm], jnp.sin(pos)[:, perm]


def _fuse_mha(p, perm):
    wq, bq = p["wq"][:, perm], p["bq"][:, perm]
    wk, bk = p["wk"][:, perm], p["bk"][:, perm]
    wv, bv = p["wv"][:, perm], p["bv"][:, perm]
    return dict(
        wqkv=jnp.concatenate([wq, wk, wv], axis=1),
        bqkv=jnp.concatenate([bq, bk, bv], axis=1),
        wkv=jnp.concatenate([wk, wv], axis=1),
        bkv=jnp.concatenate([bk, bv], axis=1),
        wq=wq, bq=bq, wo=p["wo"], bo=p["bo"])


def _prepare_encoder_layer(lp, perm):
    m = _fuse_mha(lp["mha"], perm)
    return dict(wqkv=m["wqkv"], bqkv=m["bqkv"], wo=m["wo"], bo=m["bo"],
                w1=lp["ffn"]["w1"], b1=lp["ffn"]["b1"],
                w2=lp["ffn"]["w2"], b2=lp["ffn"]["b2"], alpha=lp["alpha"])


def _prepare_decoder_layer(lp, perm):
    m1 = _fuse_mha(lp["mha1"], perm)
    m2 = _fuse_mha(lp["mha2"], perm)
    return dict(wqkv1=m1["wqkv"], bqkv1=m1["bqkv"], wo1=m1["wo"], bo1=m1["bo"],
                wq2=m2["wq"], bq2=m2["bq"], wkv2=m2["wkv"], bkv2=m2["bkv"],
                wo2=m2["wo"], bo2=m2["bo"],
                w1=lp["ffn"]["w1"], b1=lp["ffn"]["b1"],
                w2=lp["ffn"]["w2"], b2=lp["ffn"]["b2"], alpha=lp["alpha"])


# ----------------------------------------------------------------------------
# Full forward
# ----------------------------------------------------------------------------

@functools.partial(jax.jit, static_argnames=("n_heads",))
def transformer_forward(params, src_words, src_mask, target_words, target_mask, n_heads):
    emb_table = params["embedding"]
    d_model = emb_table.shape[1]
    vocab = params["w_logits"].shape[1]
    B, S_src = src_words.shape
    S_tgt = target_words.shape[1]

    perm = _head_perm(d_model, n_heads)
    rot = _rotate_half_matrix(d_model, perm)
    cos_s, sin_s = _rope_tables(S_src, d_model, perm)
    cos_t, sin_t = _rope_tables(S_tgt, d_model, perm)

    enc_mask = jnp.broadcast_to(src_mask[:, 0].astype(jnp.float32), (B, S_src, S_src))
    tgt_self_mask = jnp.broadcast_to(target_mask[:, 0].astype(jnp.float32), (B, S_tgt, S_tgt))
    cross_mask = jnp.broadcast_to(src_mask[:, 0].astype(jnp.float32), (B, S_tgt, S_src))

    # TODO(synk): embedding lookup is a gather; kept in plain-JAX glue outside the kernels.
    src_emb = jnp.take(emb_table, src_words, axis=0)
    for lp in params["encoders"]:
        elp = _prepare_encoder_layer(lp, perm)
        src_emb = encoder_layer(elp, src_emb, enc_mask, cos_s, sin_s, rot, n_heads)

    tgt_emb = jnp.take(emb_table, target_words, axis=0)
    for lp in params["decoders"]:
        dlp = _prepare_decoder_layer(lp, perm)
        tgt_emb = decoder_layer(dlp, tgt_emb, src_emb, tgt_self_mask, cross_mask,
                                cos_t, sin_t, cos_s, sin_s, rot, n_heads)

    # Final projection + log_softmax; vocab padded to a lane-dense multiple of 128.
    # Padded columns carry zero weight and a -1e30 bias, so they never win the max
    # and contribute exp(-inf)=0 to the LSE; they are sliced off afterwards.
    vp = ((vocab + 127) // 128) * 128
    w_pad = jnp.zeros((d_model, vp), jnp.float32).at[:, :vocab].set(params["w_logits"])
    b_pad = jnp.full((1, vp), -1e30, jnp.float32).at[:, :vocab].set(params["b_logits"])
    out = logits_logsoftmax(tgt_emb.reshape(-1, d_model), w_pad, b_pad)
    return out[:, :vocab].reshape(B, S_tgt, vocab)


# ----------------------------------------------------------------------------
# Parameter init (reference-like layout: x @ W + b with W of shape (in, out))
# ----------------------------------------------------------------------------

def init_params(key, d_model, n_heads, n_layers, vocab_size, ff_dim=2048):
    keys = iter(jax.random.split(key, 256))

    def dense(k_in, k_out):
        w = jax.random.normal(next(keys), (k_in, k_out), jnp.float32) * 0.02
        b = jnp.zeros((1, k_out), jnp.float32)
        return w, b

    def mha_params():
        wq, bq = dense(d_model, d_model)
        wk, bk = dense(d_model, d_model)
        wv, bv = dense(d_model, d_model)
        wo, bo = dense(d_model, d_model)
        return dict(wq=wq, bq=bq, wk=wk, bk=bk, wv=wv, bv=bv, wo=wo, bo=bo)

    def ffn_params():
        w1, b1 = dense(d_model, ff_dim)
        w2, b2 = dense(ff_dim // 2, d_model)
        return dict(w1=w1, b1=b1, w2=w2, b2=b2)

    encoders = [dict(mha=mha_params(), ffn=ffn_params(),
                     alpha=jnp.ones((1, d_model), jnp.float32))
                for _ in range(n_layers)]
    decoders = [dict(mha1=mha_params(), mha2=mha_params(), ffn=ffn_params(),
                     alpha=jnp.ones((1, d_model), jnp.float32))
                for _ in range(n_layers)]

    w_logits, b_logits = dense(d_model, vocab_size)
    embedding = jax.random.normal(next(keys), (vocab_size, d_model), jnp.float32)

    return dict(embedding=embedding, encoders=encoders, decoders=decoders,
                w_logits=w_logits, b_logits=b_logits)


if __name__ == "__main__":
    d_model, n_heads, n_layers = 32, 4, 2
    vocab_size = 50                   # len(word_map)
    B, S_src, S_tgt = 2, 8, 8

    key = jax.random.PRNGKey(0)
    pkey, skey, tkey = jax.random.split(key, 3)

    params = init_params(pkey, d_model, n_heads, n_layers, vocab_size)

    src_words = jax.random.randint(skey, (B, S_src), 0, vocab_size)
    target_words = jax.random.randint(tkey, (B, S_tgt), 0, vocab_size)

    # src_mask: (B, 1, 1, S_src); last two source tokens of batch 1 are padding.
    src_mask = jnp.ones((B, 1, 1, S_src), jnp.float32)
    src_mask = src_mask.at[1, :, :, -2:].set(0.0)
    # target_mask: (B, 1, S_tgt, S_tgt) causal.
    causal = jnp.tril(jnp.ones((S_tgt, S_tgt), jnp.float32))
    target_mask = jnp.broadcast_to(causal[None, None], (B, 1, S_tgt, S_tgt))

    out = transformer_forward(params, src_words, src_mask, target_words,
                              target_mask, n_heads=n_heads)
    out = jax.block_until_ready(out)

    assert out.shape == (B, S_tgt, vocab_size), out.shape
    assert bool(jnp.all(jnp.isfinite(out)))
    # log_softmax rows must exponentiate-sum to ~1
    assert bool(jnp.allclose(jnp.sum(jnp.exp(out), axis=-1), 1.0, atol=1e-4))
    print("KERNEL_OK")
</pallas_src>

<mosaic_0001>
module attributes {stable_mosaic.version = 11 : i64} {
  func.func @_decoder_layer_kernel(%arg0: i32, %arg1: memref<1x8x32xf32, #tpu.memory_space<vmem>>, %arg2: memref<1x8x32xf32, #tpu.memory_space<vmem>>, %arg3: memref<1x8x8xf32, #tpu.memory_space<vmem>>, %arg4: memref<1x8x8xf32, #tpu.memory_space<vmem>>, %arg5: memref<8x32xf32, #tpu.memory_space<vmem>>, %arg6: memref<8x32xf32, #tpu.memory_space<vmem>>, %arg7: memref<8x32xf32, #tpu.memory_space<vmem>>, %arg8: memref<8x32xf32, #tpu.memory_space<vmem>>, %arg9: memref<32x32xf32, #tpu.memory_space<vmem>>, %arg10: memref<32x96xf32, #tpu.memory_space<vmem>>, %arg11: memref<1x96xf32, #tpu.memory_space<vmem>>, %arg12: memref<32x32xf32, #tpu.memory_space<vmem>>, %arg13: memref<1x32xf32, #tpu.memory_space<vmem>>, %arg14: memref<32x32xf32, #tpu.memory_space<vmem>>, %arg15: memref<1x32xf32, #tpu.memory_space<vmem>>, %arg16: memref<32x64xf32, #tpu.memory_space<vmem>>, %arg17: memref<1x64xf32, #tpu.memory_space<vmem>>, %arg18: memref<32x32xf32, #tpu.memory_space<vmem>>, %arg19: memref<1x32xf32, #tpu.memory_space<vmem>>, %arg20: memref<32x2048xf32, #tpu.memory_space<vmem>>, %arg21: memref<1x2048xf32, #tpu.memory_space<vmem>>, %arg22: memref<1024x32xf32, #tpu.memory_space<vmem>>, %arg23: memref<1x32xf32, #tpu.memory_space<vmem>>, %arg24: memref<1x32xf32, #tpu.memory_space<vmem>>, %arg25: memref<1x8x32xf32, #tpu.memory_space<vmem>>) attributes {dimension_semantics = [#tpu.dimension_semantics<parallel>], iteration_bounds = array<i64: 2>, scalar_prefetch = 0 : i64, scratch_operands = 0 : i64, tpu.core_type = #tpu.core_type<tc>, window_params = [{transform_indices = @transform_0, window_bounds = array<i64: 1, 8, 32>}, {transform_indices = @transform_1, window_bounds = array<i64: 1, 8, 32>}, {transform_indices = @transform_2, window_bounds = array<i64: 1, 8, 8>}, {transform_indices = @transform_3, window_bounds = array<i64: 1, 8, 8>}, {pipeline_mode = #tpu.pipeline_mode<synchronous>, transform_indices = @transform_4, window_bounds = array<i64: 8, 32>}, {pipeline_mode = #tpu.pipeline_mode<synchronous>, transform_indices = @transform_5, window_bounds = array<i64: 8, 32>}, {pipeline_mode = #tpu.pipeline_mode<synchronous>, transform_indices = @transform_6, window_bounds = array<i64: 8, 32>}, {pipeline_mode = #tpu.pipeline_mode<synchronous>, transform_indices = @transform_7, window_bounds = array<i64: 8, 32>}, {pipeline_mode = #tpu.pipeline_mode<synchronous>, transform_indices = @transform_8, window_bounds = array<i64: 32, 32>}, {pipeline_mode = #tpu.pipeline_mode<synchronous>, transform_indices = @transform_9, window_bounds = array<i64: 32, 96>}, {pipeline_mode = #tpu.pipeline_mode<synchronous>, transform_indices = @transform_10, window_bounds = array<i64: 1, 96>}, {pipeline_mode = #tpu.pipeline_mode<synchronous>, transform_indices = @transform_11, window_bounds = array<i64: 32, 32>}, {pipeline_mode = #tpu.pipeline_mode<synchronous>, transform_indices = @transform_12, window_bounds = array<i64: 1, 32>}, {pipeline_mode = #tpu.pipeline_mode<synchronous>, transform_indices = @transform_13, window_bounds = array<i64: 32, 32>}, {pipeline_mode = #tpu.pipeline_mode<synchronous>, transform_indices = @transform_14, window_bounds = array<i64: 1, 32>}, {pipeline_mode = #tpu.pipeline_mode<synchronous>, transform_indices = @transform_15, window_bounds = array<i64: 32, 64>}, {pipeline_mode = #tpu.pipeline_mode<synchronous>, transform_indices = @transform_16, window_bounds = array<i64: 1, 64>}, {pipeline_mode = #tpu.pipeline_mode<synchronous>, transform_indices = @transform_17, window_bounds = array<i64: 32, 32>}, {pipeline_mode = #tpu.pipeline_mode<synchronous>, transform_indices = @transform_18, window_bounds = array<i64: 1, 32>}, {pipeline_mode = #tpu.pipeline_mode<synchronous>, transform_indices = @transform_19, window_bounds = array<i64: 32, 2048>}, {pipeline_mode = #tpu.pipeline_mode<synchronous>, transform_indices = @transform_20, window_bounds = array<i64: 1, 2048>}, {pipeline_mode = #tpu.pipeline_mode<synchronous>, transform_indices = @transform_21, window_bounds = array<i64: 1024, 32>}, {pipeline_mode = #tpu.pipeline_mode<synchronous>, transform_indices = @transform_22, window_bounds = array<i64: 1, 32>}, {pipeline_mode = #tpu.pipeline_mode<synchronous>, transform_indices = @transform_23, window_bounds = array<i64: 1, 32>}, {transform_indices = @transform_24, window_bounds = array<i64: 1, 8, 32>}]} {
    %c0 = arith.constant 0 : index
    %c0_0 = arith.constant 0 : index
    %c0_1 = arith.constant 0 : index
    %0 = vector.load %arg1[%c0, %c0_0, %c0_1] : memref<1x8x32xf32, #tpu.memory_space<vmem>>, vector<1x8x32xf32>
    %1 = vector.shape_cast %0 : vector<1x8x32xf32> to vector<8x32xf32>
    %c0_2 = arith.constant 0 : index
    %c0_3 = arith.constant 0 : index
    %c0_4 = arith.constant 0 : index
    %2 = vector.load %arg2[%c0_2, %c0_3, %c0_4] : memref<1x8x32xf32, #tpu.memory_space<vmem>>, vector<1x8x32xf32>
    %3 = vector.shape_cast %2 : vector<1x8x32xf32> to vector<8x32xf32>
    %c0_5 = arith.constant 0 : index
    %c0_6 = arith.constant 0 : index
    %c0_7 = arith.constant 0 : index
    %4 = vector.load %arg3[%c0_5, %c0_6, %c0_7] : memref<1x8x8xf32, #tpu.memory_space<vmem>>, vector<1x8x8xf32>
    %5 = vector.shape_cast %4 : vector<1x8x8xf32> to vector<8x8xf32>
    %c0_8 = arith.constant 0 : index
    %c0_9 = arith.constant 0 : index
    %c0_10 = arith.constant 0 : index
    %6 = vector.load %arg4[%c0_8, %c0_9, %c0_10] : memref<1x8x8xf32, #tpu.memory_space<vmem>>, vector<1x8x8xf32>
    %7 = vector.shape_cast %6 : vector<1x8x8xf32> to vector<8x8xf32>
    %c0_11 = arith.constant 0 : index
    %c0_12 = arith.constant 0 : index
    %8 = vector.load %arg5[%c0_11, %c0_12] : memref<8x32xf32, #tpu.memory_space<vmem>>, vector<8x32xf32>
    %c0_13 = arith.constant 0 : index
    %c0_14 = arith.constant 0 : index
    %9 = vector.load %arg6[%c0_13, %c0_14] : memref<8x32xf32, #tpu.memory_space<vmem>>, vector<8x32xf32>
    %c0_15 = arith.constant 0 : index
    %c0_16 = arith.constant 0 : index
    %10 = vector.load %arg7[%c0_15, %c0_16] : memref<8x32xf32, #tpu.memory_space<vmem>>, vector<8x32xf32>
    %c0_17 = arith.constant 0 : index
    %c0_18 = arith.constant 0 : index
    %11 = vector.load %arg8[%c0_17, %c0_18] : memref<8x32xf32, #tpu.memory_space<vmem>>, vector<8x32xf32>
    %c0_19 = arith.constant 0 : index
    %c0_20 = arith.constant 0 : index
    %12 = vector.load %arg9[%c0_19, %c0_20] : memref<32x32xf32, #tpu.memory_space<vmem>>, vector<32x32xf32>
    %c0_21 = arith.constant 0 : index
    %c0_22 = arith.constant 0 : index
    %13 = vector.load %arg24[%c0_21, %c0_22] : memref<1x32xf32, #tpu.memory_space<vmem>>, vector<1x32xf32>
    %c0_23 = arith.constant 0 : index
    %c0_24 = arith.constant 0 : index
    %14 = vector.load %arg10[%c0_23, %c0_24] : memref<32x96xf32, #tpu.memory_space<vmem>>, vector<32x96xf32>
    %cst = arith.constant dense<0.000000e+00> : vector<8x96xf32>
    %15 = tpu.matmul %1, %14, %cst {dimension_numbers = #tpu.dot_dimension_numbers<[1], [0], [0], [1], [0, 0, 1, 1], [], []>} : vector<8x32xf32>, vector<32x96xf32>, vector<8x96xf32> -> vector<8x96xf32>
    %c0_25 = arith.constant 0 : index
    %c0_26 = arith.constant 0 : index
    %16 = vector.load %arg11[%c0_25, %c0_26] : memref<1x96xf32, #tpu.memory_space<vmem>>, vector<1x96xf32>
    %17 = vector.broadcast %16 : vector<1x96xf32> to vector<8x96xf32>
    %18 = arith.addf %15, %17 : vector<8x96xf32>
    %19 = vector.extract_strided_slice %18 {offsets = [0, 0], sizes = [8, 32], strides = [1, 1]} : vector<8x96xf32> to vector<8x32xf32>
    %20 = vector.extract_strided_slice %18 {offsets = [0, 32], sizes = [8, 32], strides = [1, 1]} : vector<8x96xf32> to vector<8x32xf32>
    %21 = vector.extract_strided_slice %18 {offsets = [0, 64], sizes = [8, 32], strides = [1, 1]} : vector<8x96xf32> to vector<8x32xf32>
    %c0_27 = arith.constant 0 : index
    %c0_28 = arith.constant 0 : index
    %22 = vector.load %arg12[%c0_27, %c0_28] : memref<32x32xf32, #tpu.memory_space<vmem>>, vector<32x32xf32>
    %c0_29 = arith.constant 0 : index
    %c0_30 = arith.constant 0 : index
    %23 = vector.load %arg13[%c0_29, %c0_30] : memref<1x32xf32, #tpu.memory_space<vmem>>, vector<1x32xf32>
    %24 = arith.mulf %19, %8 : vector<8x32xf32>
    %cst_31 = arith.constant dense<0.000000e+00> : vector<8x32xf32>
    %25 = tpu.matmul %19, %12, %cst_31 {dimension_numbers = #tpu.dot_dimension_numbers<[1], [0], [0], [1], [0, 0, 1, 1], [], []>} : vector<8x32xf32>, vector<32x32xf32>, vector<8x32xf32> -> vector<8x32xf32>
    %26 = arith.mulf %25, %9 : vector<8x32xf32>
    %27 = arith.addf %24, %26 : vector<8x32xf32>
    %28 = arith.mulf %20, %8 : vector<8x32xf32>
    %cst_32 = arith.constant dense<0.000000e+00> : vector<8x32xf32>
    %29 = tpu.matmul %20, %12, %cst_32 {dimension_numbers = #tpu.dot_dimension_numbers<[1], [0], [0], [1], [0, 0, 1, 1], [], []>} : vector<8x32xf32>, vector<32x32xf32>, vector<8x32xf32> -> vector<8x32xf32>
    %30 = arith.mulf %29, %9 : vector<8x32xf32>
    %31 = arith.addf %28, %30 : vector<8x32xf32>
    %cst_33 = arith.constant 0.000000e+00 : f32
    %32 = vector.broadcast %cst_33 : f32 to vector<8x32xf32>
    %33 = vector.extract_strided_slice %27 {offsets = [0, 0], sizes = [8, 8], strides = [1, 1]} : vector<8x32xf32> to vector<8x8xf32>
    %34 = vector.extract_strided_slice %31 {offsets = [0, 0], sizes = [8, 8], strides = [1, 1]} : vector<8x32xf32> to vector<8x8xf32>
    %35 = vector.extract_strided_slice %21 {offsets = [0, 0], sizes = [8, 8], strides = [1, 1]} : vector<8x32xf32> to vector<8x8xf32>
    %cst_34 = arith.constant dense<0.000000e+00> : vector<8x8xf32>
    %36 = tpu.matmul %33, %34, %cst_34 {dimension_numbers = #tpu.dot_dimension_numbers<[1], [1], [0], [0], [0, 0, 1, 0], [], []>} : vector<8x8xf32>, vector<8x8xf32>, vector<8x8xf32> -> vector<8x8xf32>
    %cst_35 = arith.constant 0.353553385 : f32
    %37 = vector.broadcast %cst_35 : f32 to vector<8x8xf32>
    %38 = arith.mulf %36, %37 : vector<8x8xf32>
    %cst_36 = arith.constant 0.000000e+00 : f32
    %39 = vector.broadcast %cst_36 : f32 to vector<8x8xf32>
    %40 = arith.cmpf oeq, %5, %39 : vector<8x8xf32>
    %cst_37 = arith.constant -1.000000e+09 : f32
    %41 = vector.broadcast %cst_37 : f32 to vector<8x8xf32>
    %42 = arith.select %40, %41, %38 : vector<8x8xi1>, vector<8x8xf32>
    %cst_38 = arith.constant dense<0xFF800000> : vector<8xf32>
    %43 = vector.multi_reduction <maximumf>, %42, %cst_38 [1] : vector<8x8xf32> to vector<8xf32>
    %44 = vector.shape_cast %43 : vector<8xf32> to vector<8x1xf32>
    %45 = vector.broadcast %44 : vector<8x1xf32> to vector<8x8xf32>
    %46 = arith.subf %42, %45 : vector<8x8xf32>
    %47 = math.exp %46 : vector<8x8xf32>
    %cst_39 = arith.constant dense<0.000000e+00> : vector<8xf32>
    %48 = vector.multi_reduction <add>, %47, %cst_39 [1] : vector<8x8xf32> to vector<8xf32>
    %49 = vector.shape_cast %48 : vector<8xf32> to vector<8x1xf32>
    %50 = tpu.reciprocal %49 {approx = true} : vector<8x1xf32> -> vector<8x1xf32>
    %51 = vector.broadcast %50 : vector<8x1xf32> to vector<8x8xf32>
    %52 = arith.mulf %47, %51 : vector<8x8xf32>
    %cst_40 = arith.constant dense<0.000000e+00> : vector<8x8xf32>
    %53 = tpu.matmul %52, %35, %cst_40 {dimension_numbers = #tpu.dot_dimension_numbers<[1], [0], [0], [1], [0, 0, 1, 1], [], []>} : vector<8x8xf32>, vector<8x8xf32>, vector<8x8xf32> -> vector<8x8xf32>
    %54 = vector.extract_strided_slice %22 {offsets = [0, 0], sizes = [8, 32], strides = [1, 1]} : vector<32x32xf32> to vector<8x32xf32>
    %cst_41 = arith.constant dense<0.000000e+00> : vector<8x32xf32>
    %55 = tpu.matmul %53, %54, %cst_41 {dimension_numbers = #tpu.dot_dimension_numbers<[1], [0], [0], [1], [0, 0, 1, 1], [], []>} : vector<8x8xf32>, vector<8x32xf32>, vector<8x32xf32> -> vector<8x32xf32>
    %56 = arith.addf %32, %55 : vector<8x32xf32>
    %57 = vector.extract_strided_slice %27 {offsets = [0, 8], sizes = [8, 8], strides = [1, 1]} : vector<8x32xf32> to vector<8x8xf32>
    %58 = vector.extract_strided_slice %31 {offsets = [0, 8], sizes = [8, 8], strides = [1, 1]} : vector<8x32xf32> to vector<8x8xf32>
    %59 = vector.extract_strided_slice %21 {offsets = [0, 8], sizes = [8, 8], strides = [1, 1]} : vector<8x32xf32> to vector<8x8xf32>
    %cst_42 = arith.constant dense<0.000000e+00> : vector<8x8xf32>
    %60 = tpu.matmul %57, %58, %cst_42 {dimension_numbers = #tpu.dot_dimension_numbers<[1], [1], [0], [0], [0, 0, 1, 0], [], []>} : vector<8x8xf32>, vector<8x8xf32>, vector<8x8xf32> -> vector<8x8xf32>
    %cst_43 = arith.constant 0.353553385 : f32
    %61 = vector.broadcast %cst_43 : f32 to vector<8x8xf32>
    %62 = arith.mulf %60, %61 : vector<8x8xf32>
    %cst_44 = arith.constant 0.000000e+00 : f32
    %63 = vector.broadcast %cst_44 : f32 to vector<8x8xf32>
    %64 = arith.cmpf oeq, %5, %63 : vector<8x8xf32>
    %cst_45 = arith.constant -1.000000e+09 : f32
    %65 = vector.broadcast %cst_45 : f32 to vector<8x8xf32>
    %66 = arith.select %64, %65, %62 : vector<8x8xi1>, vector<8x8xf32>
    %cst_46 = arith.constant dense<0xFF800000> : vector<8xf32>
    %67 = vector.multi_reduction <maximumf>, %66, %cst_46 [1] : vector<8x8xf32> to vector<8xf32>
    %68 = vector.shape_cast %67 : vector<8xf32> to vector<8x1xf32>
    %69 = vector.broadcast %68 : vector<8x1xf32> to vector<8x8xf32>
    %70 = arith.subf %66, %69 : vector<8x8xf32>
    %71 = math.exp %70 : vector<8x8xf32>
    %cst_47 = arith.constant dense<0.000000e+00> : vector<8xf32>
    %72 = vector.multi_reduction <add>, %71, %cst_47 [1] : vector<8x8xf32> to vector<8xf32>
    %73 = vector.shape_cast %72 : vector<8xf32> to vector<8x1xf32>
    %74 = tpu.reciprocal %73 {approx = true} : vector<8x1xf32> -> vector<8x1xf32>
    %75 = vector.broadcast %74 : vector<8x1xf32> to vector<8x8xf32>
    %76 = arith.mulf %71, %75 : vector<8x8xf32>
    %cst_48 = arith.constant dense<0.000000e+00> : vector<8x8xf32>
    %77 = tpu.matmul %76, %59, %cst_48 {dimension_numbers = #tpu.dot_dimension_numbers<[1], [0], [0], [1], [0, 0, 1, 1], [], []>} : vector<8x8xf32>, vector<8x8xf32>, vector<8x8xf32> -> vector<8x8xf32>
    %78 = vector.extract_strided_slice %22 {offsets = [8, 0], sizes = [8, 32], strides = [1, 1]} : vector<32x32xf32> to vector<8x32xf32>
    %cst_49 = arith.constant dense<0.000000e+00> : vector<8x32xf32>
    %79 = tpu.matmul %77, %78, %cst_49 {dimension_numbers = #tpu.dot_dimension_numbers<[1], [0], [0], [1], [0, 0, 1, 1], [], []>} : vector<8x8xf32>, vector<8x32xf32>, vector<8x32xf32> -> vector<8x32xf32>
    %80 = arith.addf %56, %79 : vector<8x32xf32>
    %81 = vector.extract_strided_slice %27 {offsets = [0, 16], sizes = [8, 8], strides = [1, 1]} : vector<8x32xf32> to vector<8x8xf32>
    %82 = vector.extract_strided_slice %31 {offsets = [0, 16], sizes = [8, 8], strides = [1, 1]} : vector<8x32xf32> to vector<8x8xf32>
    %83 = vector.extract_strided_slice %21 {offsets = [0, 16], sizes = [8, 8], strides = [1, 1]} : vector<8x32xf32> to vector<8x8xf32>
    %cst_50 = arith.constant dense<0.000000e+00> : vector<8x8xf32>
    %84 = tpu.matmul %81, %82, %cst_50 {dimension_numbers = #tpu.dot_dimension_numbers<[1], [1], [0], [0], [0, 0, 1, 0], [], []>} : vector<8x8xf32>, vector<8x8xf32>, vector<8x8xf32> -> vector<8x8xf32>
    %cst_51 = arith.constant 0.353553385 : f32
    %85 = vector.broadcast %cst_51 : f32 to vector<8x8xf32>
    %86 = arith.mulf %84, %85 : vector<8x8xf32>
    %cst_52 = arith.constant 0.000000e+00 : f32
    %87 = vector.broadcast %cst_52 : f32 to vector<8x8xf32>
    %88 = arith.cmpf oeq, %5, %87 : vector<8x8xf32>
    %cst_53 = arith.constant -1.000000e+09 : f32
    %89 = vector.broadcast %cst_53 : f32 to vector<8x8xf32>
    %90 = arith.select %88, %89, %86 : vector<8x8xi1>, vector<8x8xf32>
    %cst_54 = arith.constant dense<0xFF800000> : vector<8xf32>
    %91 = vector.multi_reduction <maximumf>, %90, %cst_54 [1] : vector<8x8xf32> to vector<8xf32>
    %92 = vector.shape_cast %91 : vector<8xf32> to vector<8x1xf32>
    %93 = vector.broadcast %92 : vector<8x1xf32> to vector<8x8xf32>
    %94 = arith.subf %90, %93 : vector<8x8xf32>
    %95 = math.exp %94 : vector<8x8xf32>
    %cst_55 = arith.constant dense<0.000000e+00> : vector<8xf32>
    %96 = vector.multi_reduction <add>, %95, %cst_55 [1] : vector<8x8xf32> to vector<8xf32>
    %97 = vector.shape_cast %96 : vector<8xf32> to vector<8x1xf32>
    %98 = tpu.reciprocal %97 {approx = true} : vector<8x1xf32> -> vector<8x1xf32>
    %99 = vector.broadcast %98 : vector<8x1xf32> to vector<8x8xf32>
    %100 = arith.mulf %95, %99 : vector<8x8xf32>
    %cst_56 = arith.constant dense<0.000000e+00> : vector<8x8xf32>
    %101 = tpu.matmul %100, %83, %cst_56 {dimension_numbers = #tpu.dot_dimension_numbers<[1], [0], [0], [1], [0, 0, 1, 1], [], []>} : vector<8x8xf32>, vector<8x8xf32>, vector<8x8xf32> -> vector<8x8xf32>
    %102 = vector.extract_strided_slice %22 {offsets = [16, 0], sizes = [8, 32], strides = [1, 1]} : vector<32x32xf32> to vector<8x32xf32>
    %cst_57 = arith.constant dense<0.000000e+00> : vector<8x32xf32>
    %103 = tpu.matmul %101, %102, %cst_57 {dimension_numbers = #tpu.dot_dimension_numbers<[1], [0], [0], [1], [0, 0, 1, 1], [], []>} : vector<8x8xf32>, vector<8x32xf32>, vector<8x32xf32> -> vector<8x32xf32>
    %104 = arith.addf %80, %103 : vector<8x32xf32>
    %105 = vector.extract_strided_slice %27 {offsets = [0, 24], sizes = [8, 8], strides = [1, 1]} : vector<8x32xf32> to vector<8x8xf32>
    %106 = vector.extract_strided_slice %31 {offsets = [0, 24], sizes = [8, 8], strides = [1, 1]} : vector<8x32xf32> to vector<8x8xf32>
    %107 = vector.extract_strided_slice %21 {offsets = [0, 24], sizes = [8, 8], strides = [1, 1]} : vector<8x32xf32> to vector<8x8xf32>
    %cst_58 = arith.constant dense<0.000000e+00> : vector<8x8xf32>
    %108 = tpu.matmul %105, %106, %cst_58 {dimension_numbers = #tpu.dot_dimension_numbers<[1], [1], [0], [0], [0, 0, 1, 0], [], []>} : vector<8x8xf32>, vector<8x8xf32>, vector<8x8xf32> -> vector<8x8xf32>
    %cst_59 = arith.constant 0.353553385 : f32
    %109 = vector.broadcast %cst_59 : f32 to vector<8x8xf32>
    %110 = arith.mulf %108, %109 : vector<8x8xf32>
    %cst_60 = arith.constant 0.000000e+00 : f32
    %111 = vector.broadcast %cst_60 : f32 to vector<8x8xf32>
    %112 = arith.cmpf oeq, %5, %111 : vector<8x8xf32>
    %cst_61 = arith.constant -1.000000e+09 : f32
    %113 = vector.broadcast %cst_61 : f32 to vector<8x8xf32>
    %114 = arith.select %112, %113, %110 : vector<8x8xi1>, vector<8x8xf32>
    %cst_62 = arith.constant dense<0xFF800000> : vector<8xf32>
    %115 = vector.multi_reduction <maximumf>, %114, %cst_62 [1] : vector<8x8xf32> to vector<8xf32>
    %116 = vector.shape_cast %115 : vector<8xf32> to vector<8x1xf32>
    %117 = vector.broadcast %116 : vector<8x1xf32> to vector<8x8xf32>
    %118 = arith.subf %114, %117 : vector<8x8xf32>
    %119 = math.exp %118 : vector<8x8xf32>
    %cst_63 = arith.constant dense<0.000000e+00> : vector<8xf32>
    %120 = vector.multi_reduction <add>, %119, %cst_63 [1] : vector<8x8xf32> to vector<8xf32>
    %121 = vector.shape_cast %120 : vector<8xf32> to vector<8x1xf32>
    %122 = tpu.reciprocal %121 {approx = true} : vector<8x1xf32> -> vector<8x1xf32>
    %123 = vector.broadcast %122 : vector<8x1xf32> to vector<8x8xf32>
    %124 = arith.mulf %119, %123 : vector<8x8xf32>
    %cst_64 = arith.constant dense<0.000000e+00> : vector<8x8xf32>
    %125 = tpu.matmul %124, %107, %cst_64 {dimension_numbers = #tpu.dot_dimension_numbers<[1], [0], [0], [1], [0, 0, 1, 1], [], []>} : vector<8x8xf32>, vector<8x8xf32>, vector<8x8xf32> -> vector<8x8xf32>
    %126 = vector.extract_strided_slice %22 {offsets = [24, 0], sizes = [8, 32], strides = [1, 1]} : vector<32x32xf32> to vector<8x32xf32>
    %cst_65 = arith.constant dense<0.000000e+00> : vector<8x32xf32>
    %127 = tpu.matmul %125, %126, %cst_65 {dimension_numbers = #tpu.dot_dimension_numbers<[1], [0], [0], [1], [0, 0, 1, 1], [], []>} : vector<8x8xf32>, vector<8x32xf32>, vector<8x32xf32> -> vector<8x32xf32>
    %128 = arith.addf %104, %127 : vector<8x32xf32>
    %129 = vector.broadcast %23 : vector<1x32xf32> to vector<8x32xf32>
    %130 = arith.addf %128, %129 : vector<8x32xf32>
    %131 = arith.addf %130, %1 : vector<8x32xf32>
    %132 = arith.mulf %131, %131 : vector<8x32xf32>
    %cst_66 = arith.constant dense<0.000000e+00> : vector<8xf32>
    %133 = vector.multi_reduction <add>, %132, %cst_66 [1] : vector<8x32xf32> to vector<8xf32>
    %134 = vector.shape_cast %133 : vector<8xf32> to vector<8x1xf32>
    %135 = math.sqrt %134 : vector<8x1xf32>
    %cst_67 = arith.constant 0.176776692 : f32
    %136 = vector.broadcast %cst_67 : f32 to vector<8x1xf32>
    %137 = arith.mulf %135, %136 : vector<8x1xf32>
    %138 = vector.broadcast %13 : vector<1x32xf32> to vector<8x32xf32>
    %139 = arith.mulf %138, %131 : vector<8x32xf32>
    %cst_68 = arith.constant 9.99999997E-7 : f32
    %140 = vector.broadcast %cst_68 : f32 to vector<8x1xf32>
    %141 = arith.addf %137, %140 : vector<8x1xf32>
    %142 = tpu.reciprocal %141 {approx = true} : vector<8x1xf32> -> vector<8x1xf32>
    %143 = vector.broadcast %142 : vector<8x1xf32> to vector<8x32xf32>
    %144 = arith.mulf %139, %143 : vector<8x32xf32>
    %c0_69 = arith.constant 0 : index
    %c0_70 = arith.constant 0 : index
    %145 = vector.load %arg14[%c0_69, %c0_70] : memref<32x32xf32, #tpu.memory_space<vmem>>, vector<32x32xf32>
    %cst_71 = arith.constant dense<0.000000e+00> : vector<8x32xf32>
    %146 = tpu.matmul %144, %145, %cst_71 {dimension_numbers = #tpu.dot_dimension_numbers<[1], [0], [0], [1], [0, 0, 1, 1], [], []>} : vector<8x32xf32>, vector<32x32xf32>, vector<8x32xf32> -> vector<8x32xf32>
    %c0_72 = arith.constant 0 : index
    %c0_73 = arith.constant 0 : index
    %147 = vector.load %arg15[%c0_72, %c0_73] : memref<1x32xf32, #tpu.memory_space<vmem>>, vector<1x32xf32>
    %148 = vector.broadcast %147 : vector<1x32xf32> to vector<8x32xf32>
    %149 = arith.addf %146, %148 : vector<8x32xf32>
    %c0_74 = arith.constant 0 : index
    %c0_75 = arith.constant 0 : index
    %150 = vector.load %arg16[%c0_74, %c0_75] : memref<32x64xf32, #tpu.memory_space<vmem>>, vector<32x64xf32>
    %cst_76 = arith.constant dense<0.000000e+00> : vector<8x64xf32>
    %151 = tpu.matmul %3, %150, %cst_76 {dimension_numbers = #tpu.dot_dimension_numbers<[1], [0], [0], [1], [0, 0, 1, 1], [], []>} : vector<8x32xf32>, vector<32x64xf32>, vector<8x64xf32> -> vector<8x64xf32>
    %c0_77 = arith.constant 0 : index
    %c0_78 = arith.constant 0 : index
    %152 = vector.load %arg17[%c0_77, %c0_78] : memref<1x64xf32, #tpu.memory_space<vmem>>, vector<1x64xf32>
    %153 = vector.broadcast %152 : vector<1x64xf32> to vector<8x64xf32>
    %154 = arith.addf %151, %153 : vector<8x64xf32>
    %155 = vector.extract_strided_slice %154 {offsets = [0, 0], sizes = [8, 32], strides = [1, 1]} : vector<8x64xf32> to vector<8x32xf32>
    %156 = vector.extract_strided_slice %154 {offsets = [0, 32], sizes = [8, 32], strides = [1, 1]} : vector<8x64xf32> to vector<8x32xf32>
    %c0_79 = arith.constant 0 : index
    %c0_80 = arith.constant 0 : index
    %157 = vector.load %arg18[%c0_79, %c0_80] : memref<32x32xf32, #tpu.memory_space<vmem>>, vector<32x32xf32>
    %c0_81 = arith.constant 0 : index
    %c0_82 = arith.constant 0 : index
    %158 = vector.load %arg19[%c0_81, %c0_82] : memref<1x32xf32, #tpu.memory_space<vmem>>, vector<1x32xf32>
    %159 = arith.mulf %149, %8 : vector<8x32xf32>
    %cst_83 = arith.constant dense<0.000000e+00> : vector<8x32xf32>
    %160 = tpu.matmul %149, %12, %cst_83 {dimension_numbers = #tpu.dot_dimension_numbers<[1], [0], [0], [1], [0, 0, 1, 1], [], []>} : vector<8x32xf32>, vector<32x32xf32>, vector<8x32xf32> -> vector<8x32xf32>
    %161 = arith.mulf %160, %9 : vector<8x32xf32>
    %162 = arith.addf %159, %161 : vector<8x32xf32>
    %163 = arith.mulf %155, %10 : vector<8x32xf32>
    %cst_84 = arith.constant dense<0.000000e+00> : vector<8x32xf32>
    %164 = tpu.matmul %155, %12, %cst_84 {dimension_numbers = #tpu.dot_dimension_numbers<[1], [0], [0], [1], [0, 0, 1, 1], [], []>} : vector<8x32xf32>, vector<32x32xf32>, vector<8x32xf32> -> vector<8x32xf32>
    %165 = arith.mulf %164, %11 : vector<8x32xf32>
    %166 = arith.addf %163, %165 : vector<8x32xf32>
    %cst_85 = arith.constant 0.000000e+00 : f32
    %167 = vector.broadcast %cst_85 : f32 to vector<8x32xf32>
    %168 = vector.extract_strided_slice %162 {offsets = [0, 0], sizes = [8, 8], strides = [1, 1]} : vector<8x32xf32> to vector<8x8xf32>
    %169 = vector.extract_strided_slice %166 {offsets = [0, 0], sizes = [8, 8], strides = [1, 1]} : vector<8x32xf32> to vector<8x8xf32>
    %170 = vector.extract_strided_slice %156 {offsets = [0, 0], sizes = [8, 8], strides = [1, 1]} : vector<8x32xf32> to vector<8x8xf32>
    %cst_86 = arith.constant dense<0.000000e+00> : vector<8x8xf32>
    %171 = tpu.matmul %168, %169, %cst_86 {dimension_numbers = #tpu.dot_dimension_numbers<[1], [1], [0], [0], [0, 0, 1, 0], [], []>} : vector<8x8xf32>, vector<8x8xf32>, vector<8x8xf32> -> vector<8x8xf32>
    %cst_87 = arith.constant 0.353553385 : f32
    %172 = vector.broadcast %cst_87 : f32 to vector<8x8xf32>
    %173 = arith.mulf %171, %172 : vector<8x8xf32>
    %cst_88 = arith.constant 0.000000e+00 : f32
    %174 = vector.broadcast %cst_88 : f32 to vector<8x8xf32>
    %175 = arith.cmpf oeq, %7, %174 : vector<8x8xf32>
    %cst_89 = arith.constant -1.000000e+09 : f32
    %176 = vector.broadcast %cst_89 : f32 to vector<8x8xf32>
    %177 = arith.select %175, %176, %173 : vector<8x8xi1>, vector<8x8xf32>
    %cst_90 = arith.constant dense<0xFF800000> : vector<8xf32>
    %178 = vector.multi_reduction <maximumf>, %177, %cst_90 [1] : vector<8x8xf32> to vector<8xf32>
    %179 = vector.shape_cast %178 : vector<8xf32> to vector<8x1xf32>
    %180 = vector.broadcast %179 : vector<8x1xf32> to vector<8x8xf32>
    %181 = arith.subf %177, %180 : vector<8x8xf32>
    %182 = math.exp %181 : vector<8x8xf32>
    %cst_91 = arith.constant dense<0.000000e+00> : vector<8xf32>
    %183 = vector.multi_reduction <add>, %182, %cst_91 [1] : vector<8x8xf32> to vector<8xf32>
    %184 = vector.shape_cast %183 : vector<8xf32> to vector<8x1xf32>
    %185 = tpu.reciprocal %184 {approx = true} : vector<8x1xf32> -> vector<8x1xf32>
    %186 = vector.broadcast %185 : vector<8x1xf32> to vector<8x8xf32>
    %187 = arith.mulf %182, %186 : vector<8x8xf32>
    %cst_92 = arith.constant dense<0.000000e+00> : vector<8x8xf32>
    %188 = tpu.matmul %187, %170, %cst_92 {dimension_numbers = #tpu.dot_dimension_numbers<[1], [0], [0], [1], [0, 0, 1, 1], [], []>} : vector<8x8xf32>, vector<8x8xf32>, vector<8x8xf32> -> vector<8x8xf32>
    %189 = vector.extract_strided_slice %157 {offsets = [0, 0], sizes = [8, 32], strides = [1, 1]} : vector<32x32xf32> to vector<8x32xf32>
    %cst_93 = arith.constant dense<0.000000e+00> : vector<8x32xf32>
    %190 = tpu.matmul %188, %189, %cst_93 {dimension_numbers = #tpu.dot_dimension_numbers<[1], [0], [0], [1], [0, 0, 1, 1], [], []>} : vector<8x8xf32>, vector<8x32xf32>, vector<8x32xf32> -> vector<8x32xf32>
    %191 = arith.addf %167, %190 : vector<8x32xf32>
    %192 = vector.extract_strided_slice %162 {offsets = [0, 8], sizes = [8, 8], strides = [1, 1]} : vector<8x32xf32> to vector<8x8xf32>
    %193 = vector.extract_strided_slice %166 {offsets = [0, 8], sizes = [8, 8], strides = [1, 1]} : vector<8x32xf32> to vector<8x8xf32>
    %194 = vector.extract_strided_slice %156 {offsets = [0, 8], sizes = [8, 8], strides = [1, 1]} : vector<8x32xf32> to vector<8x8xf32>
    %cst_94 = arith.constant dense<0.000000e+00> : vector<8x8xf32>
    %195 = tpu.matmul %192, %193, %cst_94 {dimension_numbers = #tpu.dot_dimension_numbers<[1], [1], [0], [0], [0, 0, 1, 0], [], []>} : vector<8x8xf32>, vector<8x8xf32>, vector<8x8xf32> -> vector<8x8xf32>
    %cst_95 = arith.constant 0.353553385 : f32
    %196 = vector.broadcast %cst_95 : f32 to vector<8x8xf32>
    %197 = arith.mulf %195, %196 : vector<8x8xf32>
    %cst_96 = arith.constant 0.000000e+00 : f32
    %198 = vector.broadcast %cst_96 : f32 to vector<8x8xf32>
    %199 = arith.cmpf oeq, %7, %198 : vector<8x8xf32>
    %cst_97 = arith.constant -1.000000e+09 : f32
    %200 = vector.broadcast %cst_97 : f32 to vector<8x8xf32>
    %201 = arith.select %199, %200, %197 : vector<8x8xi1>, vector<8x8xf32>
    %cst_98 = arith.constant dense<0xFF800000> : vector<8xf32>
    %202 = vector.multi_reduction <maximumf>, %201, %cst_98 [1] : vector<8x8xf32> to vector<8xf32>
    %203 = vector.shape_cast %202 : vector<8xf32> to vector<8x1xf32>
    %204 = vector.broadcast %203 : vector<8x1xf32> to vector<8x8xf32>
    %205 = arith.subf %201, %204 : vector<8x8xf32>
    %206 = math.exp %205 : vector<8x8xf32>
    %cst_99 = arith.constant dense<0.000000e+00> : vector<8xf32>
    %207 = vector.multi_reduction <add>, %206, %cst_99 [1] : vector<8x8xf32> to vector<8xf32>
    %208 = vector.shape_cast %207 : vector<8xf32> to vector<8x1xf32>
    %209 = tpu.reciprocal %208 {approx = true} : vector<8x1xf32> -> vector<8x1xf32>
    %210 = vector.broadcast %209 : vector<8x1xf32> to vector<8x8xf32>
    %211 = arith.mulf %206, %210 : vector<8x8xf32>
    %cst_100 = arith.constant dense<0.000000e+00> : vector<8x8xf32>
    %212 = tpu.matmul %211, %194, %cst_100 {dimension_numbers = #tpu.dot_dimension_numbers<[1], [0], [0], [1], [0, 0, 1, 1], [], []>} : vector<8x8xf32>, vector<8x8xf32>, vector<8x8xf32> -> vector<8x8xf32>
    %213 = vector.extract_strided_slice %157 {offsets = [8, 0], sizes = [8, 32], strides = [1, 1]} : vector<32x32xf32> to vector<8x32xf32>
    %cst_101 = arith.constant dense<0.000000e+00> : vector<8x32xf32>
    %214 = tpu.matmul %212, %213, %cst_101 {dimension_numbers = #tpu.dot_dimension_numbers<[1], [0], [0], [1], [0, 0, 1, 1], [], []>} : vector<8x8xf32>, vector<8x32xf32>, vector<8x32xf32> -> vector<8x32xf32>
    %215 = arith.addf %191, %214 : vector<8x32xf32>
    %216 = vector.extract_strided_slice %162 {offsets = [0, 16], sizes = [8, 8], strides = [1, 1]} : vector<8x32xf32> to vector<8x8xf32>
    %217 = vector.extract_strided_slice %166 {offsets = [0, 16], sizes = [8, 8], strides = [1, 1]} : vector<8x32xf32> to vector<8x8xf32>
    %218 = vector.extract_strided_slice %156 {offsets = [0, 16], sizes = [8, 8], strides = [1, 1]} : vector<8x32xf32> to vector<8x8xf32>
    %cst_102 = arith.constant dense<0.000000e+00> : vector<8x8xf32>
    %219 = tpu.matmul %216, %217, %cst_102 {dimension_numbers = #tpu.dot_dimension_numbers<[1], [1], [0], [0], [0, 0, 1, 0], [], []>} : vector<8x8xf32>, vector<8x8xf32>, vector<8x8xf32> -> vector<8x8xf32>
    %cst_103 = arith.constant 0.353553385 : f32
    %220 = vector.broadcast %cst_103 : f32 to vector<8x8xf32>
    %221 = arith.mulf %219, %220 : vector<8x8xf32>
    %cst_104 = arith.constant 0.000000e+00 : f32
    %222 = vector.broadcast %cst_104 : f32 to vector<8x8xf32>
    %223 = arith.cmpf oeq, %7, %222 : vector<8x8xf32>
    %cst_105 = arith.constant -1.000000e+09 : f32
    %224 = vector.broadcast %cst_105 : f32 to vector<8x8xf32>
    %225 = arith.select %223, %224, %221 : vector<8x8xi1>, vector<8x8xf32>
    %cst_106 = arith.constant dense<0xFF800000> : vector<8xf32>
    %226 = vector.multi_reduction <maximumf>, %225, %cst_106 [1] : vector<8x8xf32> to vector<8xf32>
    %227 = vector.shape_cast %226 : vector<8xf32> to vector<8x1xf32>
    %228 = vector.broadcast %227 : vector<8x1xf32> to vector<8x8xf32>
    %229 = arith.subf %225, %228 : vector<8x8xf32>
    %230 = math.exp %229 : vector<8x8xf32>
    %cst_107 = arith.constant dense<0.000000e+00> : vector<8xf32>
    %231 = vector.multi_reduction <add>, %230, %cst_107 [1] : vector<8x8xf32> to vector<8xf32>
    %232 = vector.shape_cast %231 : vector<8xf32> to vector<8x1xf32>
    %233 = tpu.reciprocal %232 {approx = true} : vector<8x1xf32> -> vector<8x1xf32>
    %234 = vector.broadcast %233 : vector<8x1xf32> to vector<8x8xf32>
    %235 = arith.mulf %230, %234 : vector<8x8xf32>
    %cst_108 = arith.constant dense<0.000000e+00> : vector<8x8xf32>
    %236 = tpu.matmul %235, %218, %cst_108 {dimension_numbers = #tpu.dot_dimension_numbers<[1], [0], [0], [1], [0, 0, 1, 1], [], []>} : vector<8x8xf32>, vector<8x8xf32>, vector<8x8xf32> -> vector<8x8xf32>
    %237 = vector.extract_strided_slice %157 {offsets = [16, 0], sizes = [8, 32], strides = [1, 1]} : vector<32x32xf32> to vector<8x32xf32>
    %cst_109 = arith.constant dense<0.000000e+00> : vector<8x32xf32>
    %238 = tpu.matmul %236, %237, %cst_109 {dimension_numbers = #tpu.dot_dimension_numbers<[1], [0], [0], [1], [0, 0, 1, 1], [], []>} : vector<8x8xf32>, vector<8x32xf32>, vector<8x32xf32> -> vector<8x32xf32>
    %239 = arith.addf %215, %238 : vector<8x32xf32>
    %240 = vector.extract_strided_slice %162 {offsets = [0, 24], sizes = [8, 8], strides = [1, 1]} : vector<8x32xf32> to vector<8x8xf32>
    %241 = vector.extract_strided_slice %166 {offsets = [0, 24], sizes = [8, 8], strides = [1, 1]} : vector<8x32xf32> to vector<8x8xf32>
    %242 = vector.extract_strided_slice %156 {offsets = [0, 24], sizes = [8, 8], strides = [1, 1]} : vector<8x32xf32> to vector<8x8xf32>
    %cst_110 = arith.constant dense<0.000000e+00> : vector<8x8xf32>
    %243 = tpu.matmul %240, %241, %cst_110 {dimension_numbers = #tpu.dot_dimension_numbers<[1], [1], [0], [0], [0, 0, 1, 0], [], []>} : vector<8x8xf32>, vector<8x8xf32>, vector<8x8xf32> -> vector<8x8xf32>
    %cst_111 = arith.constant 0.353553385 : f32
    %244 = vector.broadcast %cst_111 : f32 to vector<8x8xf32>
    %245 = arith.mulf %243, %244 : vector<8x8xf32>
    %cst_112 = arith.constant 0.000000e+00 : f32
    %246 = vector.broadcast %cst_112 : f32 to vector<8x8xf32>
    %247 = arith.cmpf oeq, %7, %246 : vector<8x8xf32>
    %cst_113 = arith.constant -1.000000e+09 : f32
    %248 = vector.broadcast %cst_113 : f32 to vector<8x8xf32>
    %249 = arith.select %247, %248, %245 : vector<8x8xi1>, vector<8x8xf32>
    %cst_114 = arith.constant dense<0xFF800000> : vector<8xf32>
    %250 = vector.multi_reduction <maximumf>, %249, %cst_114 [1] : vector<8x8xf32> to vector<8xf32>
    %251 = vector.shape_cast %250 : vector<8xf32> to vector<8x1xf32>
    %252 = vector.broadcast %251 : vector<8x1xf32> to vector<8x8xf32>
    %253 = arith.subf %249, %252 : vector<8x8xf32>
    %254 = math.exp %253 : vector<8x8xf32>
    %cst_115 = arith.constant dense<0.000000e+00> : vector<8xf32>
    %255 = vector.multi_reduction <add>, %254, %cst_115 [1] : vector<8x8xf32> to vector<8xf32>
    %256 = vector.shape_cast %255 : vector<8xf32> to vector<8x1xf32>
    %257 = tpu.reciprocal %256 {approx = true} : vector<8x1xf32> -> vector<8x1xf32>
    %258 = vector.broadcast %257 : vector<8x1xf32> to vector<8x8xf32>
    %259 = arith.mulf %254, %258 : vector<8x8xf32>
    %cst_116 = arith.constant dense<0.000000e+00> : vector<8x8xf32>
    %260 = tpu.matmul %259, %242, %cst_116 {dimension_numbers = #tpu.dot_dimension_numbers<[1], [0], [0], [1], [0, 0, 1, 1], [], []>} : vector<8x8xf32>, vector<8x8xf32>, vector<8x8xf32> -> vector<8x8xf32>
    %261 = vector.extract_strided_slice %157 {offsets = [24, 0], sizes = [8, 32], strides = [1, 1]} : vector<32x32xf32> to vector<8x32xf32>
    %cst_117 = arith.constant dense<0.000000e+00> : vector<8x32xf32>
    %262 = tpu.matmul %260, %261, %cst_117 {dimension_numbers = #tpu.dot_dimension_numbers<[1], [0], [0], [1], [0, 0, 1, 1], [], []>} : vector<8x8xf32>, vector<8x32xf32>, vector<8x32xf32> -> vector<8x32xf32>
    %263 = arith.addf %239, %262 : vector<8x32xf32>
    %264 = vector.broadcast %158 : vector<1x32xf32> to vector<8x32xf32>
    %265 = arith.addf %263, %264 : vector<8x32xf32>
    %266 = arith.addf %265, %144 : vector<8x32xf32>
    %267 = arith.mulf %266, %266 : vector<8x32xf32>
    %cst_118 = arith.constant dense<0.000000e+00> : vector<8xf32>
    %268 = vector.multi_reduction <add>, %267, %cst_118 [1] : vector<8x32xf32> to vector<8xf32>
    %269 = vector.shape_cast %268 : vector<8xf32> to vector<8x1xf32>
    %270 = math.sqrt %269 : vector<8x1xf32>
    %cst_119 = arith.constant 0.176776692 : f32
    %271 = vector.broadcast %cst_119 : f32 to vector<8x1xf32>
    %272 = arith.mulf %270, %271 : vector<8x1xf32>
    %273 = vector.broadcast %13 : vector<1x32xf32> to vector<8x32xf32>
    %274 = arith.mulf %273, %266 : vector<8x32xf32>
    %cst_120 = arith.constant 9.99999997E-7 : f32
    %275 = vector.broadcast %cst_120 : f32 to vector<8x1xf32>
    %276 = arith.addf %272, %275 : vector<8x1xf32>
    %277 = tpu.reciprocal %276 {approx = true} : vector<8x1xf32> -> vector<8x1xf32>
    %278 = vector.broadcast %277 : vector<8x1xf32> to vector<8x32xf32>
    %279 = arith.mulf %274, %278 : vector<8x32xf32>
    %c0_121 = arith.constant 0 : index
    %c0_122 = arith.constant 0 : index
    %280 = vector.load %arg20[%c0_121, %c0_122] : memref<32x2048xf32, #tpu.memory_space<vmem>>, vector<32x2048xf32>
    %c0_123 = arith.constant 0 : index
    %c0_124 = arith.constant 0 : index
    %281 = vector.load %arg21[%c0_123, %c0_124] : memref<1x2048xf32, #tpu.memory_space<vmem>>, vector<1x2048xf32>
    %c0_125 = arith.constant 0 : index
    %c0_126 = arith.constant 0 : index
    %282 = vector.load %arg22[%c0_125, %c0_126] : memref<1024x32xf32, #tpu.memory_space<vmem>>, vector<1024x32xf32>
    %c0_127 = arith.constant 0 : index
    %c0_128 = arith.constant 0 : index
    %283 = vector.load %arg23[%c0_127, %c0_128] : memref<1x32xf32, #tpu.memory_space<vmem>>, vector<1x32xf32>
    %cst_129 = arith.constant dense<0.000000e+00> : vector<8x2048xf32>
    %284 = tpu.matmul %279, %280, %cst_129 {dimension_numbers = #tpu.dot_dimension_numbers<[1], [0], [0], [1], [0, 0, 1, 1], [], []>} : vector<8x32xf32>, vector<32x2048xf32>, vector<8x2048xf32> -> vector<8x2048xf32>
    %285 = vector.broadcast %281 : vector<1x2048xf32> to vector<8x2048xf32>
    %286 = arith.addf %284, %285 : vector<8x2048xf32>
    %287 = vector.extract_strided_slice %286 {offsets = [0, 0], sizes = [8, 1024], strides = [1, 1]} : vector<8x2048xf32> to vector<8x1024xf32>
    %288 = vector.extract_strided_slice %286 {offsets = [0, 1024], sizes = [8, 1024], strides = [1, 1]} : vector<8x2048xf32> to vector<8x1024xf32>
    %289 = arith.negf %288 : vector<8x1024xf32>
    %290 = math.exp %289 : vector<8x1024xf32>
    %cst_130 = arith.constant 1.000000e+00 : f32
    %291 = vector.broadcast %cst_130 : f32 to vector<8x1024xf32>
    %292 = arith.addf %291, %290 : vector<8x1024xf32>
    %293 = arith.divf %291, %292 : vector<8x1024xf32>
    %294 = arith.mulf %288, %293 : vector<8x1024xf32>
    %295 = arith.mulf %287, %294 : vector<8x1024xf32>
    %cst_131 = arith.constant dense<0.000000e+00> : vector<8x32xf32>
    %296 = tpu.matmul %295, %282, %cst_131 {dimension_numbers = #tpu.dot_dimension_numbers<[1], [0], [0], [1], [0, 0, 1, 1], [], []>} : vector<8x1024xf32>, vector<1024x32xf32>, vector<8x32xf32> -> vector<8x32xf32>
    %297 = vector.broadcast %283 : vector<1x32xf32> to vector<8x32xf32>
    %298 = arith.addf %296, %297 : vector<8x32xf32>
    %299 = arith.addf %298, %279 : vector<8x32xf32>
    %300 = arith.mulf %299, %299 : vector<8x32xf32>
    %cst_132 = arith.constant dense<0.000000e+00> : vector<8xf32>
    %301 = vector.multi_reduction <add>, %300, %cst_132 [1] : vector<8x32xf32> to vector<8xf32>
    %302 = vector.shape_cast %301 : vector<8xf32> to vector<8x1xf32>
    %303 = math.sqrt %302 : vector<8x1xf32>
    %cst_133 = arith.constant 0.176776692 : f32
    %304 = vector.broadcast %cst_133 : f32 to vector<8x1xf32>
    %305 = arith.mulf %303, %304 : vector<8x1xf32>
    %306 = vector.broadcast %13 : vector<1x32xf32> to vector<8x32xf32>
    %307 = arith.mulf %306, %299 : vector<8x32xf32>
    %cst_134 = arith.constant 9.99999997E-7 : f32
    %308 = vector.broadcast %cst_134 : f32 to vector<8x1xf32>
    %309 = arith.addf %305, %308 : vector<8x1xf32>
    %310 = tpu.reciprocal %309 {approx = true} : vector<8x1xf32> -> vector<8x1xf32>
    %311 = vector.broadcast %310 : vector<8x1xf32> to vector<8x32xf32>
    %312 = arith.mulf %307, %311 : vector<8x32xf32>
    %c0_135 = arith.constant 0 : index
    %c0_136 = arith.constant 0 : index
    %c0_137 = arith.constant 0 : index
    %313 = vector.load %arg25[%c0_135, %c0_136, %c0_137] : memref<1x8x32xf32, #tpu.memory_space<vmem>>, vector<1x8x32xf32>
    %314 = vector.shape_cast %313 : vector<1x8x32xf32> to vector<8x32xf32>
    %315 = vector.shape_cast %312 : vector<8x32xf32> to vector<1x8x32xf32>
    tpu.vector_store %arg25[%c0_135, %c0_136, %c0_137], %315 {strides = array<i32>} : memref<1x8x32xf32, #tpu.memory_space<vmem>>, vector<1x8x32xf32>,
    return
  }
  func.func @transform_0(%arg0: i32) -> (i32, i32, i32) {
    %c0_i32 = arith.constant 0 : i32
    %c0_i32_0 = arith.constant 0 : i32
    %c0_i32_1 = arith.constant 0 : i32
    return %arg0, %c0_i32, %c0_i32_0 : i32, i32, i32
  }
  func.func @transform_1(%arg0: i32) -> (i32, i32, i32) {
    %c0_i32 = arith.constant 0 : i32
    %c0_i32_0 = arith.constant 0 : i32
    %c0_i32_1 = arith.constant 0 : i32
    return %arg0, %c0_i32, %c0_i32_0 : i32, i32, i32
  }
  func.func @transform_2(%arg0: i32) -> (i32, i32, i32) {
    %c0_i32 = arith.constant 0 : i32
    %c0_i32_0 = arith.constant 0 : i32
    %c0_i32_1 = arith.constant 0 : i32
    return %arg0, %c0_i32, %c0_i32_0 : i32, i32, i32
  }
  func.func @transform_3(%arg0: i32) -> (i32, i32, i32) {
    %c0_i32 = arith.constant 0 : i32
    %c0_i32_0 = arith.constant 0 : i32
    %c0_i32_1 = arith.constant 0 : i32
    return %arg0, %c0_i32, %c0_i32_0 : i32, i32, i32
  }
  func.func @transform_4(%arg0: i32) -> (i32, i32) {
    %c0_i32 = arith.constant 0 : i32
    %c0_i32_0 = arith.constant 0 : i32
    %c0_i32_1 = arith.constant 0 : i32
    return %c0_i32, %c0_i32_0 : i32, i32
  }
  func.func @transform_5(%arg0: i32) -> (i32, i32) {
    %c0_i32 = arith.constant 0 : i32
    %c0_i32_0 = arith.constant 0 : i32
    %c0_i32_1 = arith.constant 0 : i32
    return %c0_i32, %c0_i32_0 : i32, i32
  }
  func.func @transform_6(%arg0: i32) -> (i32, i32) {
    %c0_i32 = arith.constant 0 : i32
    %c0_i32_0 = arith.constant 0 : i32
    %c0_i32_1 = arith.constant 0 : i32
    return %c0_i32, %c0_i32_0 : i32, i32
  }
  func.func @transform_7(%arg0: i32) -> (i32, i32) {
    %c0_i32 = arith.constant 0 : i32
    %c0_i32_0 = arith.constant 0 : i32
    %c0_i32_1 = arith.constant 0 : i32
    return %c0_i32, %c0_i32_0 : i32, i32
  }
  func.func @transform_8(%arg0: i32) -> (i32, i32) {
    %c0_i32 = arith.constant 0 : i32
    %c0_i32_0 = arith.constant 0 : i32
    %c0_i32_1 = arith.constant 0 : i32
    return %c0_i32, %c0_i32_0 : i32, i32
  }
  func.func @transform_9(%arg0: i32) -> (i32, i32) {
    %c0_i32 = arith.constant 0 : i32
    %c0_i32_0 = arith.constant 0 : i32
    %c0_i32_1 = arith.constant 0 : i32
    return %c0_i32, %c0_i32_0 : i32, i32
  }
  func.func @transform_10(%arg0: i32) -> (i32, i32) {
    %c0_i32 = arith.constant 0 : i32
    %c0_i32_0 = arith.constant 0 : i32
    %c0_i32_1 = arith.constant 0 : i32
    return %c0_i32, %c0_i32_0 : i32, i32
  }
  func.func @transform_11(%arg0: i32) -> (i32, i32) {
    %c0_i32 = arith.constant 0 : i32
    %c0_i32_0 = arith.constant 0 : i32
    %c0_i32_1 = arith.constant 0 : i32
    return %c0_i32, %c0_i32_0 : i32, i32
  }
  func.func @transform_12(%arg0: i32) -> (i32, i32) {
    %c0_i32 = arith.constant 0 : i32
    %c0_i32_0 = arith.constant 0 : i32
    %c0_i32_1 = arith.constant 0 : i32
    return %c0_i32, %c0_i32_0 : i32, i32
  }
  func.func @transform_13(%arg0: i32) -> (i32, i32) {
    %c0_i32 = arith.constant 0 : i32
    %c0_i32_0 = arith.constant 0 : i32
    %c0_i32_1 = arith.constant 0 : i32
    return %c0_i32, %c0_i32_0 : i32, i32
  }
  func.func @transform_14(%arg0: i32) -> (i32, i32) {
    %c0_i32 = arith.constant 0 : i32
    %c0_i32_0 = arith.constant 0 : i32
    %c0_i32_1 = arith.constant 0 : i32
    return %c0_i32, %c0_i32_0 : i32, i32
  }
  func.func @transform_15(%arg0: i32) -> (i32, i32) {
    %c0_i32 = arith.constant 0 : i32
    %c0_i32_0 = arith.constant 0 : i32
    %c0_i32_1 = arith.constant 0 : i32
    return %c0_i32, %c0_i32_0 : i32, i32
  }
  func.func @transform_16(%arg0: i32) -> (i32, i32) {
    %c0_i32 = arith.constant 0 : i32
    %c0_i32_0 = arith.constant 0 : i32
    %c0_i32_1 = arith.constant 0 : i32
    return %c0_i32, %c0_i32_0 : i32, i32
  }
  func.func @transform_17(%arg0: i32) -> (i32, i32) {
    %c0_i32 = arith.constant 0 : i32
    %c0_i32_0 = arith.constant 0 : i32
    %c0_i32_1 = arith.constant 0 : i32
    return %c0_i32, %c0_i32_0 : i32, i32
  }
  func.func @transform_18(%arg0: i32) -> (i32, i32) {
    %c0_i32 = arith.constant 0 : i32
    %c0_i32_0 = arith.constant 0 : i32
    %c0_i32_1 = arith.constant 0 : i32
    return %c0_i32, %c0_i32_0 : i32, i32
  }
  func.func @transform_19(%arg0: i32) -> (i32, i32) {
    %c0_i32 = arith.constant 0 : i32
    %c0_i32_0 = arith.constant 0 : i32
    %c0_i32_1 = arith.constant 0 : i32
    return %c0_i32, %c0_i32_0 : i32, i32
  }
  func.func @transform_20(%arg0: i32) -> (i32, i32) {
    %c0_i32 = arith.constant 0 : i32
    %c0_i32_0 = arith.constant 0 : i32
    %c0_i32_1 = arith.constant 0 : i32
    return %c0_i32, %c0_i32_0 : i32, i32
  }
  func.func @transform_21(%arg0: i32) -> (i32, i32) {
    %c0_i32 = arith.constant 0 : i32
    %c0_i32_0 = arith.constant 0 : i32
    %c0_i32_1 = arith.constant 0 : i32
    return %c0_i32, %c0_i32_0 : i32, i32
  }
  func.func @transform_22(%arg0: i32) -> (i32, i32) {
    %c0_i32 = arith.constant 0 : i32
    %c0_i32_0 = arith.constant 0 : i32
    %c0_i32_1 = arith.constant 0 : i32
    return %c0_i32, %c0_i32_0 : i32, i32
  }
  func.func @transform_23(%arg0: i32) -> (i32, i32) {
    %c0_i32 = arith.constant 0 : i32
    %c0_i32_0 = arith.constant 0 : i32
    %c0_i32_1 = arith.constant 0 : i32
    return %c0_i32, %c0_i32_0 : i32, i32
  }
  func.func @transform_24(%arg0: i32) -> (i32, i32, i32) {
    %c0_i32 = arith.constant 0 : i32
    %c0_i32_0 = arith.constant 0 : i32
    %c0_i32_1 = arith.constant 0 : i32
    return %arg0, %c0_i32, %c0_i32_0 : i32, i32, i32
  }
}

module attributes {stable_mosaic.version = 11 : i64} {
  func.func @_encoder_layer_kernel(%arg0: i32, %arg1: memref<1x8x32xf32, #tpu.memory_space<vmem>>, %arg2: memref<1x8x8xf32, #tpu.memory_space<vmem>>, %arg3: memref<8x32xf32, #tpu.memory_space<vmem>>, %arg4: memref<8x32xf32, #tpu.memory_space<vmem>>, %arg5: memref<32x32xf32, #tpu.memory_space<vmem>>, %arg6: memref<32x96xf32, #tpu.memory_space<vmem>>, %arg7: memref<1x96xf32, #tpu.memory_space<vmem>>, %arg8: memref<32x32xf32, #tpu.memory_space<vmem>>, %arg9: memref<1x32xf32, #tpu.memory_space<vmem>>, %arg10: memref<32x2048xf32, #tpu.memory_space<vmem>>, %arg11: memref<1x2048xf32, #tpu.memory_space<vmem>>, %arg12: memref<1024x32xf32, #tpu.memory_space<vmem>>, %arg13: memref<1x32xf32, #tpu.memory_space<vmem>>, %arg14: memref<1x32xf32, #tpu.memory_space<vmem>>, %arg15: memref<1x8x32xf32, #tpu.memory_space<vmem>>) attributes {dimension_semantics = [#tpu.dimension_semantics<parallel>], iteration_bounds = array<i64: 2>, scalar_prefetch = 0 : i64, scratch_operands = 0 : i64, tpu.core_type = #tpu.core_type<tc>, window_params = [{transform_indices = @transform_0, window_bounds = array<i64: 1, 8, 32>}, {transform_indices = @transform_1, window_bounds = array<i64: 1, 8, 8>}, {pipeline_mode = #tpu.pipeline_mode<synchronous>, transform_indices = @transform_2, window_bounds = array<i64: 8, 32>}, {pipeline_mode = #tpu.pipeline_mode<synchronous>, transform_indices = @transform_3, window_bounds = array<i64: 8, 32>}, {pipeline_mode = #tpu.pipeline_mode<synchronous>, transform_indices = @transform_4, window_bounds = array<i64: 32, 32>}, {pipeline_mode = #tpu.pipeline_mode<synchronous>, transform_indices = @transform_5, window_bounds = array<i64: 32, 96>}, {pipeline_mode = #tpu.pipeline_mode<synchronous>, transform_indices = @transform_6, window_bounds = array<i64: 1, 96>}, {pipeline_mode = #tpu.pipeline_mode<synchronous>, transform_indices = @transform_7, window_bounds = array<i64: 32, 32>}, {pipeline_mode = #tpu.pipeline_mode<synchronous>, transform_indices = @transform_8, window_bounds = array<i64: 1, 32>}, {pipeline_mode = #tpu.pipeline_mode<synchronous>, transform_indices = @transform_9, window_bounds = array<i64: 32, 2048>}, {pipeline_mode = #tpu.pipeline_mode<synchronous>, transform_indices = @transform_10, window_bounds = array<i64: 1, 2048>}, {pipeline_mode = #tpu.pipeline_mode<synchronous>, transform_indices = @transform_11, window_bounds = array<i64: 1024, 32>}, {pipeline_mode = #tpu.pipeline_mode<synchronous>, transform_indices = @transform_12, window_bounds = array<i64: 1, 32>}, {pipeline_mode = #tpu.pipeline_mode<synchronous>, transform_indices = @transform_13, window_bounds = array<i64: 1, 32>}, {transform_indices = @transform_14, window_bounds = array<i64: 1, 8, 32>}]} {
    %c0 = arith.constant 0 : index
    %c0_0 = arith.constant 0 : index
    %c0_1 = arith.constant 0 : index
    %0 = vector.load %arg1[%c0, %c0_0, %c0_1] : memref<1x8x32xf32, #tpu.memory_space<vmem>>, vector<1x8x32xf32>
    %1 = vector.shape_cast %0 : vector<1x8x32xf32> to vector<8x32xf32>
    %c0_2 = arith.constant 0 : index
    %c0_3 = arith.constant 0 : index
    %c0_4 = arith.constant 0 : index
    %2 = vector.load %arg2[%c0_2, %c0_3, %c0_4] : memref<1x8x8xf32, #tpu.memory_space<vmem>>, vector<1x8x8xf32>
    %3 = vector.shape_cast %2 : vector<1x8x8xf32> to vector<8x8xf32>
    %c0_5 = arith.constant 0 : index
    %c0_6 = arith.constant 0 : index
    %4 = vector.load %arg3[%c0_5, %c0_6] : memref<8x32xf32, #tpu.memory_space<vmem>>, vector<8x32xf32>
    %c0_7 = arith.constant 0 : index
    %c0_8 = arith.constant 0 : index
    %5 = vector.load %arg4[%c0_7, %c0_8] : memref<8x32xf32, #tpu.memory_space<vmem>>, vector<8x32xf32>
    %c0_9 = arith.constant 0 : index
    %c0_10 = arith.constant 0 : index
    %6 = vector.load %arg5[%c0_9, %c0_10] : memref<32x32xf32, #tpu.memory_space<vmem>>, vector<32x32xf32>
    %c0_11 = arith.constant 0 : index
    %c0_12 = arith.constant 0 : index
    %7 = vector.load %arg14[%c0_11, %c0_12] : memref<1x32xf32, #tpu.memory_space<vmem>>, vector<1x32xf32>
    %c0_13 = arith.constant 0 : index
    %c0_14 = arith.constant 0 : index
    %8 = vector.load %arg6[%c0_13, %c0_14] : memref<32x96xf32, #tpu.memory_space<vmem>>, vector<32x96xf32>
    %cst = arith.constant dense<0.000000e+00> : vector<8x96xf32>
    %9 = tpu.matmul %1, %8, %cst {dimension_numbers = #tpu.dot_dimension_numbers<[1], [0], [0], [1], [0, 0, 1, 1], [], []>} : vector<8x32xf32>, vector<32x96xf32>, vector<8x96xf32> -> vector<8x96xf32>
    %c0_15 = arith.constant 0 : index
    %c0_16 = arith.constant 0 : index
    %10 = vector.load %arg7[%c0_15, %c0_16] : memref<1x96xf32, #tpu.memory_space<vmem>>, vector<1x96xf32>
    %11 = vector.broadcast %10 : vector<1x96xf32> to vector<8x96xf32>
    %12 = arith.addf %9, %11 : vector<8x96xf32>
    %13 = vector.extract_strided_slice %12 {offsets = [0, 0], sizes = [8, 32], strides = [1, 1]} : vector<8x96xf32> to vector<8x32xf32>
    %14 = vector.extract_strided_slice %12 {offsets = [0, 32], sizes = [8, 32], strides = [1, 1]} : vector<8x96xf32> to vector<8x32xf32>
    %15 = vector.extract_strided_slice %12 {offsets = [0, 64], sizes = [8, 32], strides = [1, 1]} : vector<8x96xf32> to vector<8x32xf32>
    %c0_17 = arith.constant 0 : index
    %c0_18 = arith.constant 0 : index
    %16 = vector.load %arg8[%c0_17, %c0_18] : memref<32x32xf32, #tpu.memory_space<vmem>>, vector<32x32xf32>
    %c0_19 = arith.constant 0 : index
    %c0_20 = arith.constant 0 : index
    %17 = vector.load %arg9[%c0_19, %c0_20] : memref<1x32xf32, #tpu.memory_space<vmem>>, vector<1x32xf32>
    %18 = arith.mulf %13, %4 : vector<8x32xf32>
    %cst_21 = arith.constant dense<0.000000e+00> : vector<8x32xf32>
    %19 = tpu.matmul %13, %6, %cst_21 {dimension_numbers = #tpu.dot_dimension_numbers<[1], [0], [0], [1], [0, 0, 1, 1], [], []>} : vector<8x32xf32>, vector<32x32xf32>, vector<8x32xf32> -> vector<8x32xf32>
    %20 = arith.mulf %19, %5 : vector<8x32xf32>
    %21 = arith.addf %18, %20 : vector<8x32xf32>
    %22 = arith.mulf %14, %4 : vector<8x32xf32>
    %cst_22 = arith.constant dense<0.000000e+00> : vector<8x32xf32>
    %23 = tpu.matmul %14, %6, %cst_22 {dimension_numbers = #tpu.dot_dimension_numbers<[1], [0], [0], [1], [0, 0, 1, 1], [], []>} : vector<8x32xf32>, vector<32x32xf32>, vector<8x32xf32> -> vector<8x32xf32>
    %24 = arith.mulf %23, %5 : vector<8x32xf32>
    %25 = arith.addf %22, %24 : vector<8x32xf32>
    %cst_23 = arith.constant 0.000000e+00 : f32
    %26 = vector.broadcast %cst_23 : f32 to vector<8x32xf32>
    %27 = vector.extract_strided_slice %21 {offsets = [0, 0], sizes = [8, 8], strides = [1, 1]} : vector<8x32xf32> to vector<8x8xf32>
    %28 = vector.extract_strided_slice %25 {offsets = [0, 0], sizes = [8, 8], strides = [1, 1]} : vector<8x32xf32> to vector<8x8xf32>
    %29 = vector.extract_strided_slice %15 {offsets = [0, 0], sizes = [8, 8], strides = [1, 1]} : vector<8x32xf32> to vector<8x8xf32>
    %cst_24 = arith.constant dense<0.000000e+00> : vector<8x8xf32>
    %30 = tpu.matmul %27, %28, %cst_24 {dimension_numbers = #tpu.dot_dimension_numbers<[1], [1], [0], [0], [0, 0, 1, 0], [], []>} : vector<8x8xf32>, vector<8x8xf32>, vector<8x8xf32> -> vector<8x8xf32>
    %cst_25 = arith.constant 0.353553385 : f32
    %31 = vector.broadcast %cst_25 : f32 to vector<8x8xf32>
    %32 = arith.mulf %30, %31 : vector<8x8xf32>
    %cst_26 = arith.constant 0.000000e+00 : f32
    %33 = vector.broadcast %cst_26 : f32 to vector<8x8xf32>
    %34 = arith.cmpf oeq, %3, %33 : vector<8x8xf32>
    %cst_27 = arith.constant -1.000000e+09 : f32
    %35 = vector.broadcast %cst_27 : f32 to vector<8x8xf32>
    %36 = arith.select %34, %35, %32 : vector<8x8xi1>, vector<8x8xf32>
    %cst_28 = arith.constant dense<0xFF800000> : vector<8xf32>
    %37 = vector.multi_reduction <maximumf>, %36, %cst_28 [1] : vector<8x8xf32> to vector<8xf32>
    %38 = vector.shape_cast %37 : vector<8xf32> to vector<8x1xf32>
    %39 = vector.broadcast %38 : vector<8x1xf32> to vector<8x8xf32>
    %40 = arith.subf %36, %39 : vector<8x8xf32>
    %41 = math.exp %40 : vector<8x8xf32>
    %cst_29 = arith.constant dense<0.000000e+00> : vector<8xf32>
    %42 = vector.multi_reduction <add>, %41, %cst_29 [1] : vector<8x8xf32> to vector<8xf32>
    %43 = vector.shape_cast %42 : vector<8xf32> to vector<8x1xf32>
    %44 = tpu.reciprocal %43 {approx = true} : vector<8x1xf32> -> vector<8x1xf32>
    %45 = vector.broadcast %44 : vector<8x1xf32> to vector<8x8xf32>
    %46 = arith.mulf %41, %45 : vector<8x8xf32>
    %cst_30 = arith.constant dense<0.000000e+00> : vector<8x8xf32>
    %47 = tpu.matmul %46, %29, %cst_30 {dimension_numbers = #tpu.dot_dimension_numbers<[1], [0], [0], [1], [0, 0, 1, 1], [], []>} : vector<8x8xf32>, vector<8x8xf32>, vector<8x8xf32> -> vector<8x8xf32>
    %48 = vector.extract_strided_slice %16 {offsets = [0, 0], sizes = [8, 32], strides = [1, 1]} : vector<32x32xf32> to vector<8x32xf32>
    %cst_31 = arith.constant dense<0.000000e+00> : vector<8x32xf32>
    %49 = tpu.matmul %47, %48, %cst_31 {dimension_numbers = #tpu.dot_dimension_numbers<[1], [0], [0], [1], [0, 0, 1, 1], [], []>} : vector<8x8xf32>, vector<8x32xf32>, vector<8x32xf32> -> vector<8x32xf32>
    %50 = arith.addf %26, %49 : vector<8x32xf32>
    %51 = vector.extract_strided_slice %21 {offsets = [0, 8], sizes = [8, 8], strides = [1, 1]} : vector<8x32xf32> to vector<8x8xf32>
    %52 = vector.extract_strided_slice %25 {offsets = [0, 8], sizes = [8, 8], strides = [1, 1]} : vector<8x32xf32> to vector<8x8xf32>
    %53 = vector.extract_strided_slice %15 {offsets = [0, 8], sizes = [8, 8], strides = [1, 1]} : vector<8x32xf32> to vector<8x8xf32>
    %cst_32 = arith.constant dense<0.000000e+00> : vector<8x8xf32>
    %54 = tpu.matmul %51, %52, %cst_32 {dimension_numbers = #tpu.dot_dimension_numbers<[1], [1], [0], [0], [0, 0, 1, 0], [], []>} : vector<8x8xf32>, vector<8x8xf32>, vector<8x8xf32> -> vector<8x8xf32>
    %cst_33 = arith.constant 0.353553385 : f32
    %55 = vector.broadcast %cst_33 : f32 to vector<8x8xf32>
    %56 = arith.mulf %54, %55 : vector<8x8xf32>
    %cst_34 = arith.constant 0.000000e+00 : f32
    %57 = vector.broadcast %cst_34 : f32 to vector<8x8xf32>
    %58 = arith.cmpf oeq, %3, %57 : vector<8x8xf32>
    %cst_35 = arith.constant -1.000000e+09 : f32
    %59 = vector.broadcast %cst_35 : f32 to vector<8x8xf32>
    %60 = arith.select %58, %59, %56 : vector<8x8xi1>, vector<8x8xf32>
    %cst_36 = arith.constant dense<0xFF800000> : vector<8xf32>
    %61 = vector.multi_reduction <maximumf>, %60, %cst_36 [1] : vector<8x8xf32> to vector<8xf32>
    %62 = vector.shape_cast %61 : vector<8xf32> to vector<8x1xf32>
    %63 = vector.broadcast %62 : vector<8x1xf32> to vector<8x8xf32>
    %64 = arith.subf %60, %63 : vector<8x8xf32>
    %65 = math.exp %64 : vector<8x8xf32>
    %cst_37 = arith.constant dense<0.000000e+00> : vector<8xf32>
    %66 = vector.multi_reduction <add>, %65, %cst_37 [1] : vector<8x8xf32> to vector<8xf32>
    %67 = vector.shape_cast %66 : vector<8xf32> to vector<8x1xf32>
    %68 = tpu.reciprocal %67 {approx = true} : vector<8x1xf32> -> vector<8x1xf32>
    %69 = vector.broadcast %68 : vector<8x1xf32> to vector<8x8xf32>
    %70 = arith.mulf %65, %69 : vector<8x8xf32>
    %cst_38 = arith.constant dense<0.000000e+00> : vector<8x8xf32>
    %71 = tpu.matmul %70, %53, %cst_38 {dimension_numbers = #tpu.dot_dimension_numbers<[1], [0], [0], [1], [0, 0, 1, 1], [], []>} : vector<8x8xf32>, vector<8x8xf32>, vector<8x8xf32> -> vector<8x8xf32>
    %72 = vector.extract_strided_slice %16 {offsets = [8, 0], sizes = [8, 32], strides = [1, 1]} : vector<32x32xf32> to vector<8x32xf32>
    %cst_39 = arith.constant dense<0.000000e+00> : vector<8x32xf32>
    %73 = tpu.matmul %71, %72, %cst_39 {dimension_numbers = #tpu.dot_dimension_numbers<[1], [0], [0], [1], [0, 0, 1, 1], [], []>} : vector<8x8xf32>, vector<8x32xf32>, vector<8x32xf32> -> vector<8x32xf32>
    %74 = arith.addf %50, %73 : vector<8x32xf32>
    %75 = vector.extract_strided_slice %21 {offsets = [0, 16], sizes = [8, 8], strides = [1, 1]} : vector<8x32xf32> to vector<8x8xf32>
    %76 = vector.extract_strided_slice %25 {offsets = [0, 16], sizes = [8, 8], strides = [1, 1]} : vector<8x32xf32> to vector<8x8xf32>
    %77 = vector.extract_strided_slice %15 {offsets = [0, 16], sizes = [8, 8], strides = [1, 1]} : vector<8x32xf32> to vector<8x8xf32>
    %cst_40 = arith.constant dense<0.000000e+00> : vector<8x8xf32>
    %78 = tpu.matmul %75, %76, %cst_40 {dimension_numbers = #tpu.dot_dimension_numbers<[1], [1], [0], [0], [0, 0, 1, 0], [], []>} : vector<8x8xf32>, vector<8x8xf32>, vector<8x8xf32> -> vector<8x8xf32>
    %cst_41 = arith.constant 0.353553385 : f32
    %79 = vector.broadcast %cst_41 : f32 to vector<8x8xf32>
    %80 = arith.mulf %78, %79 : vector<8x8xf32>
    %cst_42 = arith.constant 0.000000e+00 : f32
    %81 = vector.broadcast %cst_42 : f32 to vector<8x8xf32>
    %82 = arith.cmpf oeq, %3, %81 : vector<8x8xf32>
    %cst_43 = arith.constant -1.000000e+09 : f32
    %83 = vector.broadcast %cst_43 : f32 to vector<8x8xf32>
    %84 = arith.select %82, %83, %80 : vector<8x8xi1>, vector<8x8xf32>
    %cst_44 = arith.constant dense<0xFF800000> : vector<8xf32>
    %85 = vector.multi_reduction <maximumf>, %84, %cst_44 [1] : vector<8x8xf32> to vector<8xf32>
    %86 = vector.shape_cast %85 : vector<8xf32> to vector<8x1xf32>
    %87 = vector.broadcast %86 : vector<8x1xf32> to vector<8x8xf32>
    %88 = arith.subf %84, %87 : vector<8x8xf32>
    %89 = math.exp %88 : vector<8x8xf32>
    %cst_45 = arith.constant dense<0.000000e+00> : vector<8xf32>
    %90 = vector.multi_reduction <add>, %89, %cst_45 [1] : vector<8x8xf32> to vector<8xf32>
    %91 = vector.shape_cast %90 : vector<8xf32> to vector<8x1xf32>
    %92 = tpu.reciprocal %91 {approx = true} : vector<8x1xf32> -> vector<8x1xf32>
    %93 = vector.broadcast %92 : vector<8x1xf32> to vector<8x8xf32>
    %94 = arith.mulf %89, %93 : vector<8x8xf32>
    %cst_46 = arith.constant dense<0.000000e+00> : vector<8x8xf32>
    %95 = tpu.matmul %94, %77, %cst_46 {dimension_numbers = #tpu.dot_dimension_numbers<[1], [0], [0], [1], [0, 0, 1, 1], [], []>} : vector<8x8xf32>, vector<8x8xf32>, vector<8x8xf32> -> vector<8x8xf32>
    %96 = vector.extract_strided_slice %16 {offsets = [16, 0], sizes = [8, 32], strides = [1, 1]} : vector<32x32xf32> to vector<8x32xf32>
    %cst_47 = arith.constant dense<0.000000e+00> : vector<8x32xf32>
    %97 = tpu.matmul %95, %96, %cst_47 {dimension_numbers = #tpu.dot_dimension_numbers<[1], [0], [0], [1], [0, 0, 1, 1], [], []>} : vector<8x8xf32>, vector<8x32xf32>, vector<8x32xf32> -> vector<8x32xf32>
    %98 = arith.addf %74, %97 : vector<8x32xf32>
    %99 = vector.extract_strided_slice %21 {offsets = [0, 24], sizes = [8, 8], strides = [1, 1]} : vector<8x32xf32> to vector<8x8xf32>
    %100 = vector.extract_strided_slice %25 {offsets = [0, 24], sizes = [8, 8], strides = [1, 1]} : vector<8x32xf32> to vector<8x8xf32>
    %101 = vector.extract_strided_slice %15 {offsets = [0, 24], sizes = [8, 8], strides = [1, 1]} : vector<8x32xf32> to vector<8x8xf32>
    %cst_48 = arith.constant dense<0.000000e+00> : vector<8x8xf32>
    %102 = tpu.matmul %99, %100, %cst_48 {dimension_numbers = #tpu.dot_dimension_numbers<[1], [1], [0], [0], [0, 0, 1, 0], [], []>} : vector<8x8xf32>, vector<8x8xf32>, vector<8x8xf32> -> vector<8x8xf32>
    %cst_49 = arith.constant 0.353553385 : f32
    %103 = vector.broadcast %cst_49 : f32 to vector<8x8xf32>
    %104 = arith.mulf %102, %103 : vector<8x8xf32>
    %cst_50 = arith.constant 0.000000e+00 : f32
    %105 = vector.broadcast %cst_50 : f32 to vector<8x8xf32>
    %106 = arith.cmpf oeq, %3, %105 : vector<8x8xf32>
    %cst_51 = arith.constant -1.000000e+09 : f32
    %107 = vector.broadcast %cst_51 : f32 to vector<8x8xf32>
    %108 = arith.select %106, %107, %104 : vector<8x8xi1>, vector<8x8xf32>
    %cst_52 = arith.constant dense<0xFF800000> : vector<8xf32>
    %109 = vector.multi_reduction <maximumf>, %108, %cst_52 [1] : vector<8x8xf32> to vector<8xf32>
    %110 = vector.shape_cast %109 : vector<8xf32> to vector<8x1xf32>
    %111 = vector.broadcast %110 : vector<8x1xf32> to vector<8x8xf32>
    %112 = arith.subf %108, %111 : vector<8x8xf32>
    %113 = math.exp %112 : vector<8x8xf32>
    %cst_53 = arith.constant dense<0.000000e+00> : vector<8xf32>
    %114 = vector.multi_reduction <add>, %113, %cst_53 [1] : vector<8x8xf32> to vector<8xf32>
    %115 = vector.shape_cast %114 : vector<8xf32> to vector<8x1xf32>
    %116 = tpu.reciprocal %115 {approx = true} : vector<8x1xf32> -> vector<8x1xf32>
    %117 = vector.broadcast %116 : vector<8x1xf32> to vector<8x8xf32>
    %118 = arith.mulf %113, %117 : vector<8x8xf32>
    %cst_54 = arith.constant dense<0.000000e+00> : vector<8x8xf32>
    %119 = tpu.matmul %118, %101, %cst_54 {dimension_numbers = #tpu.dot_dimension_numbers<[1], [0], [0], [1], [0, 0, 1, 1], [], []>} : vector<8x8xf32>, vector<8x8xf32>, vector<8x8xf32> -> vector<8x8xf32>
    %120 = vector.extract_strided_slice %16 {offsets = [24, 0], sizes = [8, 32], strides = [1, 1]} : vector<32x32xf32> to vector<8x32xf32>
    %cst_55 = arith.constant dense<0.000000e+00> : vector<8x32xf32>
    %121 = tpu.matmul %119, %120, %cst_55 {dimension_numbers = #tpu.dot_dimension_numbers<[1], [0], [0], [1], [0, 0, 1, 1], [], []>} : vector<8x8xf32>, vector<8x32xf32>, vector<8x32xf32> -> vector<8x32xf32>
    %122 = arith.addf %98, %121 : vector<8x32xf32>
    %123 = vector.broadcast %17 : vector<1x32xf32> to vector<8x32xf32>
    %124 = arith.addf %122, %123 : vector<8x32xf32>
    %125 = arith.addf %124, %1 : vector<8x32xf32>
    %126 = arith.mulf %125, %125 : vector<8x32xf32>
    %cst_56 = arith.constant dense<0.000000e+00> : vector<8xf32>
    %127 = vector.multi_reduction <add>, %126, %cst_56 [1] : vector<8x32xf32> to vector<8xf32>
    %128 = vector.shape_cast %127 : vector<8xf32> to vector<8x1xf32>
    %129 = math.sqrt %128 : vector<8x1xf32>
    %cst_57 = arith.constant 0.176776692 : f32
    %130 = vector.broadcast %cst_57 : f32 to vector<8x1xf32>
    %131 = arith.mulf %129, %130 : vector<8x1xf32>
    %132 = vector.broadcast %7 : vector<1x32xf32> to vector<8x32xf32>
    %133 = arith.mulf %132, %125 : vector<8x32xf32>
    %cst_58 = arith.constant 9.99999997E-7 : f32
    %134 = vector.broadcast %cst_58 : f32 to vector<8x1xf32>
    %135 = arith.addf %131, %134 : vector<8x1xf32>
    %136 = tpu.reciprocal %135 {approx = true} : vector<8x1xf32> -> vector<8x1xf32>
    %137 = vector.broadcast %136 : vector<8x1xf32> to vector<8x32xf32>
    %138 = arith.mulf %133, %137 : vector<8x32xf32>
    %c0_59 = arith.constant 0 : index
    %c0_60 = arith.constant 0 : index
    %139 = vector.load %arg10[%c0_59, %c0_60] : memref<32x2048xf32, #tpu.memory_space<vmem>>, vector<32x2048xf32>
    %c0_61 = arith.constant 0 : index
    %c0_62 = arith.constant 0 : index
    %140 = vector.load %arg11[%c0_61, %c0_62] : memref<1x2048xf32, #tpu.memory_space<vmem>>, vector<1x2048xf32>
    %c0_63 = arith.constant 0 : index
    %c0_64 = arith.constant 0 : index
    %141 = vector.load %arg12[%c0_63, %c0_64] : memref<1024x32xf32, #tpu.memory_space<vmem>>, vector<1024x32xf32>
    %c0_65 = arith.constant 0 : index
    %c0_66 = arith.constant 0 : index
    %142 = vector.load %arg13[%c0_65, %c0_66] : memref<1x32xf32, #tpu.memory_space<vmem>>, vector<1x32xf32>
    %cst_67 = arith.constant dense<0.000000e+00> : vector<8x2048xf32>
    %143 = tpu.matmul %138, %139, %cst_67 {dimension_numbers = #tpu.dot_dimension_numbers<[1], [0], [0], [1], [0, 0, 1, 1], [], []>} : vector<8x32xf32>, vector<32x2048xf32>, vector<8x2048xf32> -> vector<8x2048xf32>
    %144 = vector.broadcast %140 : vector<1x2048xf32> to vector<8x2048xf32>
    %145 = arith.addf %143, %144 : vector<8x2048xf32>
    %146 = vector.extract_strided_slice %145 {offsets = [0, 0], sizes = [8, 1024], strides = [1, 1]} : vector<8x2048xf32> to vector<8x1024xf32>
    %147 = vector.extract_strided_slice %145 {offsets = [0, 1024], sizes = [8, 1024], strides = [1, 1]} : vector<8x2048xf32> to vector<8x1024xf32>
    %148 = arith.negf %147 : vector<8x1024xf32>
    %149 = math.exp %148 : vector<8x1024xf32>
    %cst_68 = arith.constant 1.000000e+00 : f32
    %150 = vector.broadcast %cst_68 : f32 to vector<8x1024xf32>
    %151 = arith.addf %150, %149 : vector<8x1024xf32>
    %152 = arith.divf %150, %151 : vector<8x1024xf32>
    %153 = arith.mulf %147, %152 : vector<8x1024xf32>
    %154 = arith.mulf %146, %153 : vector<8x1024xf32>
    %cst_69 = arith.constant dense<0.000000e+00> : vector<8x32xf32>
    %155 = tpu.matmul %154, %141, %cst_69 {dimension_numbers = #tpu.dot_dimension_numbers<[1], [0], [0], [1], [0, 0, 1, 1], [], []>} : vector<8x1024xf32>, vector<1024x32xf32>, vector<8x32xf32> -> vector<8x32xf32>
    %156 = vector.broadcast %142 : vector<1x32xf32> to vector<8x32xf32>
    %157 = arith.addf %155, %156 : vector<8x32xf32>
    %158 = arith.addf %157, %138 : vector<8x32xf32>
    %159 = arith.mulf %158, %158 : vector<8x32xf32>
    %cst_70 = arith.constant dense<0.000000e+00> : vector<8xf32>
    %160 = vector.multi_reduction <add>, %159, %cst_70 [1] : vector<8x32xf32> to vector<8xf32>
    %161 = vector.shape_cast %160 : vector<8xf32> to vector<8x1xf32>
    %162 = math.sqrt %161 : vector<8x1xf32>
    %cst_71 = arith.constant 0.176776692 : f32
    %163 = vector.broadcast %cst_71 : f32 to vector<8x1xf32>
    %164 = arith.mulf %162, %163 : vector<8x1xf32>
    %165 = vector.broadcast %7 : vector<1x32xf32> to vector<8x32xf32>
    %166 = arith.mulf %165, %158 : vector<8x32xf32>
    %cst_72 = arith.constant 9.99999997E-7 : f32
    %167 = vector.broadcast %cst_72 : f32 to vector<8x1xf32>
    %168 = arith.addf %164, %167 : vector<8x1xf32>
    %169 = tpu.reciprocal %168 {approx = true} : vector<8x1xf32> -> vector<8x1xf32>
    %170 = vector.broadcast %169 : vector<8x1xf32> to vector<8x32xf32>
    %171 = arith.mulf %166, %170 : vector<8x32xf32>
    %c0_73 = arith.constant 0 : index
    %c0_74 = arith.constant 0 : index
    %c0_75 = arith.constant 0 : index
    %172 = vector.load %arg15[%c0_73, %c0_74, %c0_75] : memref<1x8x32xf32, #tpu.memory_space<vmem>>, vector<1x8x32xf32>
    %173 = vector.shape_cast %172 : vector<1x8x32xf32> to vector<8x32xf32>
    %174 = vector.shape_cast %171 : vector<8x32xf32> to vector<1x8x32xf32>
    tpu.vector_store %arg15[%c0_73, %c0_74, %c0_75], %174 {strides = array<i32>} : memref<1x8x32xf32, #tpu.memory_space<vmem>>, vector<1x8x32xf32>,
    return
  }
  func.func @transform_0(%arg0: i32) -> (i32, i32, i32) {
    %c0_i32 = arith.constant 0 : i32
    %c0_i32_0 = arith.constant 0 : i32
    %c0_i32_1 = arith.constant 0 : i32
    return %arg0, %c0_i32, %c0_i32_0 : i32, i32, i32
  }
  func.func @transform_1(%arg0: i32) -> (i32, i32, i32) {
    %c0_i32 = arith.constant 0 : i32
    %c0_i32_0 = arith.constant 0 : i32
    %c0_i32_1 = arith.constant 0 : i32
    return %arg0, %c0_i32, %c0_i32_0 : i32, i32, i32
  }
  func.func @transform_2(%arg0: i32) -> (i32, i32) {
    %c0_i32 = arith.constant 0 : i32
    %c0_i32_0 = arith.constant 0 : i32
    %c0_i32_1 = arith.constant 0 : i32
    return %c0_i32, %c0_i32_0 : i32, i32
  }
  func.func @transform_3(%arg0: i32) -> (i32, i32) {
    %c0_i32 = arith.constant 0 : i32
    %c0_i32_0 = arith.constant 0 : i32
    %c0_i32_1 = arith.constant 0 : i32
    return %c0_i32, %c0_i32_0 : i32, i32
  }
  func.func @transform_4(%arg0: i32) -> (i32, i32) {
    %c0_i32 = arith.constant 0 : i32
    %c0_i32_0 = arith.constant 0 : i32
    %c0_i32_1 = arith.constant 0 : i32
    return %c0_i32, %c0_i32_0 : i32, i32
  }
  func.func @transform_5(%arg0: i32) -> (i32, i32) {
    %c0_i32 = arith.constant 0 : i32
    %c0_i32_0 = arith.constant 0 : i32
    %c0_i32_1 = arith.constant 0 : i32
    return %c0_i32, %c0_i32_0 : i32, i32
  }
  func.func @transform_6(%arg0: i32) -> (i32, i32) {
    %c0_i32 = arith.constant 0 : i32
    %c0_i32_0 = arith.constant 0 : i32
    %c0_i32_1 = arith.constant 0 : i32
    return %c0_i32, %c0_i32_0 : i32, i32
  }
  func.func @transform_7(%arg0: i32) -> (i32, i32) {
    %c0_i32 = arith.constant 0 : i32
    %c0_i32_0 = arith.constant 0 : i32
    %c0_i32_1 = arith.constant 0 : i32
    return %c0_i32, %c0_i32_0 : i32, i32
  }
  func.func @transform_8(%arg0: i32) -> (i32, i32) {
    %c0_i32 = arith.constant 0 : i32
    %c0_i32_0 = arith.constant 0 : i32
    %c0_i32_1 = arith.constant 0 : i32
    return %c0_i32, %c0_i32_0 : i32, i32
  }
  func.func @transform_9(%arg0: i32) -> (i32, i32) {
    %c0_i32 = arith.constant 0 : i32
    %c0_i32_0 = arith.constant 0 : i32
    %c0_i32_1 = arith.constant 0 : i32
    return %c0_i32, %c0_i32_0 : i32, i32
  }
  func.func @transform_10(%arg0: i32) -> (i32, i32) {
    %c0_i32 = arith.constant 0 : i32
    %c0_i32_0 = arith.constant 0 : i32
    %c0_i32_1 = arith.constant 0 : i32
    return %c0_i32, %c0_i32_0 : i32, i32
  }
  func.func @transform_11(%arg0: i32) -> (i32, i32) {
    %c0_i32 = arith.constant 0 : i32
    %c0_i32_0 = arith.constant 0 : i32
    %c0_i32_1 = arith.constant 0 : i32
    return %c0_i32, %c0_i32_0 : i32, i32
  }
  func.func @transform_12(%arg0: i32) -> (i32, i32) {
    %c0_i32 = arith.constant 0 : i32
    %c0_i32_0 = arith.constant 0 : i32
    %c0_i32_1 = arith.constant 0 : i32
    return %c0_i32, %c0_i32_0 : i32, i32
  }
  func.func @transform_13(%arg0: i32) -> (i32, i32) {
    %c0_i32 = arith.constant 0 : i32
    %c0_i32_0 = arith.constant 0 : i32
    %c0_i32_1 = arith.constant 0 : i32
    return %c0_i32, %c0_i32_0 : i32, i32
  }
  func.func @transform_14(%arg0: i32) -> (i32, i32, i32) {
    %c0_i32 = arith.constant 0 : i32
    %c0_i32_0 = arith.constant 0 : i32
    %c0_i32_1 = arith.constant 0 : i32
    return %arg0, %c0_i32, %c0_i32_0 : i32, i32, i32
  }
}

module attributes {stable_mosaic.version = 11 : i64} {
  func.func @_logits_kernel(%arg0: i32, %arg1: memref<8x32xf32, #tpu.memory_space<vmem>>, %arg2: memref<32x128xf32, #tpu.memory_space<vmem>>, %arg3: memref<1x128xf32, #tpu.memory_space<vmem>>, %arg4: memref<8x128xf32, #tpu.memory_space<vmem>>) attributes {dimension_semantics = [#tpu.dimension_semantics<parallel>], iteration_bounds = array<i64: 2>, scalar_prefetch = 0 : i64, scratch_operands = 0 : i64, tpu.core_type = #tpu.core_type<tc>, window_params = [{transform_indices = @transform_0, window_bounds = array<i64: 8, 32>}, {pipeline_mode = #tpu.pipeline_mode<synchronous>, transform_indices = @transform_1, window_bounds = array<i64: 32, 128>}, {pipeline_mode = #tpu.pipeline_mode<synchronous>, transform_indices = @transform_2, window_bounds = array<i64: 1, 128>}, {transform_indices = @transform_3, window_bounds = array<i64: 8, 128>}]} {
    %c0 = arith.constant 0 : index
    %c0_0 = arith.constant 0 : index
    %0 = vector.load %arg1[%c0, %c0_0] : memref<8x32xf32, #tpu.memory_space<vmem>>, vector<8x32xf32>
    %c0_1 = arith.constant 0 : index
    %c0_2 = arith.constant 0 : index
    %1 = vector.load %arg2[%c0_1, %c0_2] : memref<32x128xf32, #tpu.memory_space<vmem>>, vector<32x128xf32>
    %cst = arith.constant dense<0.000000e+00> : vector<8x128xf32>
    %2 = tpu.matmul %0, %1, %cst {dimension_numbers = #tpu.dot_dimension_numbers<[1], [0], [0], [1], [0, 0, 1, 1], [], []>} : vector<8x32xf32>, vector<32x128xf32>, vector<8x128xf32> -> vector<8x128xf32>
    %c0_3 = arith.constant 0 : index
    %c0_4 = arith.constant 0 : index
    %3 = vector.load %arg3[%c0_3, %c0_4] : memref<1x128xf32, #tpu.memory_space<vmem>>, vector<1x128xf32>
    %4 = vector.broadcast %3 : vector<1x128xf32> to vector<8x128xf32>
    %5 = arith.addf %2, %4 : vector<8x128xf32>
    %cst_5 = arith.constant dense<0xFF800000> : vector<8xf32>
    %6 = vector.multi_reduction <maximumf>, %5, %cst_5 [1] : vector<8x128xf32> to vector<8xf32>
    %7 = vector.shape_cast %6 : vector<8xf32> to vector<8x1xf32>
    %8 = vector.broadcast %7 : vector<8x1xf32> to vector<8x128xf32>
    %9 = arith.subf %5, %8 : vector<8x128xf32>
    %10 = math.exp %9 : vector<8x128xf32>
    %cst_6 = arith.constant dense<0.000000e+00> : vector<8xf32>
    %11 = vector.multi_reduction <add>, %10, %cst_6 [1] : vector<8x128xf32> to vector<8xf32>
    %12 = vector.shape_cast %11 : vector<8xf32> to vector<8x1xf32>
    %13 = math.log %12 : vector<8x1xf32>
    %14 = arith.addf %13, %7 : vector<8x1xf32>
    %15 = vector.broadcast %14 : vector<8x1xf32> to vector<8x128xf32>
    %16 = arith.subf %5, %15 : vector<8x128xf32>
    %c0_7 = arith.constant 0 : index
    %c0_8 = arith.constant 0 : index
    %17 = vector.load %arg4[%c0_7, %c0_8] : memref<8x128xf32, #tpu.memory_space<vmem>>, vector<8x128xf32>
    tpu.vector_store %arg4[%c0_7, %c0_8], %16 {strides = array<i32>} : memref<8x128xf32, #tpu.memory_space<vmem>>, vector<8x128xf32>,
    return
  }
  func.func @transform_0(%arg0: i32) -> (i32, i32) {
    %c0_i32 = arith.constant 0 : i32
    %c0_i32_0 = arith.constant 0 : i32
    return %arg0, %c0_i32 : i32, i32
  }
  func.func @transform_1(%arg0: i32) -> (i32, i32) {
    %c0_i32 = arith.constant 0 : i32
    %c0_i32_0 = arith.constant 0 : i32
    %c0_i32_1 = arith.constant 0 : i32
    return %c0_i32, %c0_i32_0 : i32, i32
  }
  func.func @transform_2(%arg0: i32) -> (i32, i32) {
    %c0_i32 = arith.constant 0 : i32
    %c0_i32_0 = arith.constant 0 : i32
    %c0_i32_1 = arith.constant 0 : i32
    return %c0_i32, %c0_i32_0 : i32, i32
  }
  func.func @transform_3(%arg0: i32) -> (i32, i32) {
    %c0_i32 = arith.constant 0 : i32
    %c0_i32_0 = arith.constant 0 : i32
    return %arg0, %c0_i32 : i32, i32
  }
}

</mosaic_0001>

<bundles_post_ra>
// kernel: transformer_forward.9
= control target key start
LH: loop header
LB: loop body
LE: loop exit
PB: predicated region body
PF: predicated region fallthrough
CT: control target
= control target key end

     0   :  { %s396_s12 = smov 0   ;;  %s428_s0 = inlined_call_operand.vmem [shape: f32[16,32], index: 0, kind: input, shape index: {}]   ;;  %s429_s1 = inlined_call_operand.vmem [shape: f32[32,128], index: 1, kind: input, shape index: {}]   ;;  %s430_s2 = inlined_call_operand.vmem [shape: f32[1,128], index: 2, kind: input, shape index: {}]   ;;  %s431_s3 = inlined_call_operand.vmem [shape: f32[16,128], index: 3, kind: output, shape index: {}]  }
   0x1 LB: > { %s317_s13 = sadd.s32 4294967295, %s371_s12   ;;  %p321_p0 = scmp.ge.s32.totalorder %s371_s12, 1  ;;  %s371_s12 = sphi %s396_s12, %s13_s12  }
   0x2   : > { %p136_p1 = scmp.lt.s32.totalorder %s371_s12, 3 }
   0x4   : > { %p137_p2 = pnand %p321_p0, %p136_p1 }
   0x5   : > { %v167_v0 = vld [vmem:[%s429_s1] sm:$0xff] (!%p137_p2)  ;;  %v168_v1 = vld [vmem:[%s429_s1 + $0x8] sm:$0xff] (!%p137_p2)  ;;  %v169_v2 = vld [vmem:[%s429_s1 + $0x10] sm:$0xff] (!%p137_p2)  ;;  %v373_v3 = vmov (!%p137_p2), 0.0|0.0   ;;  %vm374_vm0 = vmmov (!%p137_p2), 0   ;;  %v375_v6 = vmov (!%p137_p2), 0.0  }
   0x6   : > { %140 = sbr.rel (%p137_p2) target bundleno = 548 (0x224), region = 32  ;;  %344 = vmatprep.subr.bf16.mxu0 (!%p137_p2), %v373_v3  ;;  %v345_v4 = vpack.c.bf16 (!%p137_p2), %v168_v1, %v167_v0  ;;  %v170_v5 = vld [vmem:[%s429_s1 + $0x18] sm:$0xff] (!%p137_p2)  ;;  %341 = vmatprep.mubr.msk.f32.mxu0 (!%p137_p2), %vm374_vm0, %v375_v6  ;;  %p158_p3 = scmp.lt.s32.totalorder (!%p137_p2), %s317_s13, 1  ;;  %vm178_vm1 = vcmask (!%p137_p2), 261120   ;;  %v324_v9 = vld [vmem:[%s430_s2] ss:$0 sm:$0xff] (!%p137_p2) }
   0x7   : > { %v348_v7 = vpack.c.bf16 (!%p137_p2), %v170_v5, %v169_v2 }
   0x8   : > { %346 = vmatpush3.bf16.msra.mxu0 (!%p137_p2), %v345_v4 }
   0x9   : > { %347 = vmatprep.subr.bf16.mxu0 (!%p137_p2), %v373_v3 }
   0xc   : > { %349 = vmatpush3.bf16.msra.mxu0 (!%p137_p2), %v348_v7 }
   0xd   : > { %s433_s13 = smov (!%p158_p3, %s317_s13), 1 }
   0xe   : > { %s322_s22 = sshll.u32 %s433_s13, 3 }
   0xf   : > { %s161_s25 = scalar_lea.vmem %s428_s0, %s322_s22  ;;  %s165_s30 = scalar_lea.vmem %s431_s3, %s322_s22 }
  0x10   : > { %v166_v8 = vld [vmem:[%s161_s25] sm:$0xff] }
  0x11   : > { %342 = vmatmul.mubr.msk.f32.vlgmr.msra.gmra.mrb[0].mxu0 %vm178_vm1, %v166_v8 }
  0xe4   : > { %v248_v10 = vpop.f32.mrb[0].mxu0 }
  0xe5   : > { %v249_v11 = vadd.f32 %v324_v9, %v248_v10  ;;  %v343_v12 = vpop.f32.mrb[1].mxu0 }
  0xe7   : > { %252 = vmax.xlane.f32.xlu0 %v249_v11 }
 0x174   : > { %v253_v13 = vpop.xlane.xlu0 %252 }
 0x175   : > { %v254_v14 = vsub.f32 %v249_v11, %v253_v13 }
 0x177   : > { %v255_v15 = vmul.f32 1.442695, %v254_v14 }
 0x179   : > { %361 = vpow2.f32 %v255_v15 }
 0x183   : > { %v362_v16 = vpop.eup %361 }
 0x184   : > { %257 = vadd.xlane.f32.xlu0 %v362_v16 }
 0x211   : > { %v258_v17 = vpop.xlane.xlu0 %257 }
 0x212   : > { %363 = vlog2.f32 %v258_v17 }
 0x21c   : > { %v364_v18 = vpop.eup %363 }
 0x21d   : > { %v260_v19 = vmul.f32 0.6931472, %v364_v18 }
 0x21f   : > { %v261_v20 = vadd.f32 %v260_v19, %v253_v13 }
 0x221   : > { %v262_v21 = vsub.f32 %v249_v11, %v261_v20 }
 0x223   : > { %263 = vst [vmem:[%s165_s30] sm:$0xff] %v262_v21 }
 0x224 PF: > { %s13_s12 = sadd.s32 1, %s371_s12  }
 0x225   : > { %p10_p4 = scmp.ge.s32.totalorder %s13_s12, 4  }
 0x227   :  { %12 = sbr.rel (!%p10_p4) target bundleno = 1 (0x1), region = 62 }

// kernel: transformer_forward.7
= control target key start
LH: loop header
LB: loop body
LE: loop exit
PB: predicated region body
PF: predicated region fallthrough
CT: control target
= control target key end

     0   :  { %s6767_s0 = inlined_call_operand.vmem [shape: f32[2,8,32], index: 0, kind: input, shape index: {}]   ;;  %s6768_s1 = inlined_call_operand.vmem [shape: f32[2,8,32], index: 1, kind: input, shape index: {}]   ;;  %s6769_s2 = inlined_call_operand.vmem [shape: f32[2,8,8], index: 2, kind: input, shape index: {}]   ;;  %s6770_s3 = inlined_call_operand.vmem [shape: f32[2,8,8], index: 3, kind: input, shape index: {}]   ;;  %s6771_s4 = inlined_call_operand.vmem [shape: f32[8,32], index: 4, kind: input, shape index: {}, may-alias: {4,6}]   ;;  %s6772_s5 = inlined_call_operand.vmem [shape: f32[8,32], index: 5, kind: input, shape index: {}, may-alias: {5,7}]   ;;  %s6773_s6 = inlined_call_operand.vmem [shape: f32[8,32], index: 6, kind: input, shape index: {}, may-alias: {4,6}]   ;;  %s6774_s7 = inlined_call_operand.vmem [shape: f32[8,32], index: 7, kind: input, shape index: {}, may-alias: {5,7}]   ;;  %s6775_s8 = inlined_call_operand.vmem [shape: f32[32,32], index: 8, kind: input, shape index: {}]   ;;  %s6776_s9 = inlined_call_operand.vmem [shape: f32[32,96], index: 9, kind: input, shape index: {}]   ;;  %s6777_s10 = inlined_call_operand.vmem [shape: f32[1,96], index: 10, kind: input, shape index: {}]   ;;  %s6778_s11 = inlined_call_operand.vmem [shape: f32[32,32], index: 11, kind: input, shape index: {}]   ;;  %s6779_s12 = inlined_call_operand.vmem [shape: f32[1,32], index: 12, kind: input, shape index: {}]   ;;  %s6780_s13 = inlined_call_operand.vmem [shape: f32[32,32], index: 13, kind: input, shape index: {}]   ;;  %s6781_s14 = inlined_call_operand.vmem [shape: f32[1,32], index: 14, kind: input, shape index: {}]   ;;  %s6782_s15 = inlined_call_operand.vmem [shape: f32[32,64], index: 15, kind: input, shape index: {}]   ;;  %s6783_s16 = inlined_call_operand.vmem [shape: f32[1,64], index: 16, kind: input, shape index: {}]   ;;  %s6784_s17 = inlined_call_operand.vmem [shape: f32[32,32], index: 17, kind: input, shape index: {}]   ;;  %s6785_s18 = inlined_call_operand.vmem [shape: f32[1,32], index: 18, kind: input, shape index: {}]   ;;  %s6786_s19 = inlined_call_operand.vmem [shape: f32[32,2048], index: 19, kind: input, shape index: {}]   ;;  %s6787_s20 = inlined_call_operand.vmem [shape: f32[1,2048], index: 20, kind: input, shape index: {}]   ;;  %s6788_s21 = inlined_call_operand.vmem [shape: f32[1024,32], index: 21, kind: input, shape index: {}]   ;;  %s6789_s22 = inlined_call_operand.vmem [shape: f32[1,32], index: 22, kind: input, shape index: {}]   ;;  %s6790_s23 = inlined_call_operand.vmem [shape: f32[1,32], index: 23, kind: input, shape index: {}]   ;;  %s6791_s24 = inlined_call_operand.vmem [shape: f32[2,8,32], index: 24, kind: output, shape index: {}]  }
   0x1   :  { %6800 = sst [smem:[#allocation2_spill]] %s6767_s0 }
   0x2   :  { %6801 = sst [smem:[#allocation3_spill]] %s6768_s1 }
   0x3   :  { %6802 = sst [smem:[#allocation4_spill]] %s6769_s2 }
   0x4   :  { %6803 = sst [smem:[#allocation5_spill]] %s6770_s3 }
   0x5   :  { %6804 = sst [smem:[#allocation6_spill]] %s6771_s4 }
   0x6   :  { %6805 = sst [smem:[#allocation7_spill]] %s6772_s5  ;;  %s5633_s5 = smov 0  }
   0x7   :  { %6806 = sst [smem:[#allocation8_spill]] %s6773_s6 }
   0x8   :  { %6807 = sst [smem:[#allocation9_spill]] %s6774_s7 }
   0x9   :  { %6808 = sst [smem:[#allocation10_spill]] %s6775_s8 }
   0xa LB: > { %s4657_s26 = sadd.s32 4294967295, %s5491_s5   ;;  %p4661_p0 = scmp.ge.s32.totalorder %s5491_s5, 1  ;;  %s5491_s5 = sphi %s5633_s5, %s34_s5  }
   0xb   : > { %p688_p1 = scmp.lt.s32.totalorder %s5491_s5, 3 }
   0xd   : > { %p689_p2 = pnand %p4661_p0, %p688_p1 }
   0xe   : > { %v797_v0 = vld [vmem:[%s6776_s9] sm:$0xff] (!%p689_p2)  ;;  %v798_v1 = vld [vmem:[%s6776_s9 + $0x8] sm:$0xff] (!%p689_p2)  ;;  %v799_v2 = vld [vmem:[%s6776_s9 + $0x10] sm:$0xff] (!%p689_p2)  ;;  %v5493_v3 = vmov (!%p689_p2), 0.0|0.0   ;;  %vm5494_vm0 = vmmov (!%p689_p2), 0   ;;  %v5495_v6 = vmov (!%p689_p2), 0.0  }
   0xf   : > { %692 = sbr.rel (%p689_p2) target bundleno = 6875 (0x1adb), region = 116  ;;  %5151 = vmatprep.subr.bf16.mxu0 (!%p689_p2), %v5493_v3  ;;  %v5152_v4 = vpack.c.bf16 (!%p689_p2), %v798_v1, %v797_v0  ;;  %v800_v5 = vld [vmem:[%s6776_s9 + $0x18] sm:$0xff] (!%p689_p2)  ;;  %4962 = vmatprep.mubr.msk.f32.mxu0 (!%p689_p2), %vm5494_vm0, %v5495_v6  ;;  %p764_p3 = scmp.lt.s32.totalorder (!%p689_p2), %s4657_s26, 1  ;;  %vm808_vm1 = vcmask (!%p689_p2), 261120   ;;  %v4667_v15 = vld [vmem:[%s6777_s10] ss:$0 sm:$0xff] (!%p689_p2) }
  0x10   : > { %s6809_s8 = sld [smem:[#allocation10_spill]] (!%p689_p2)  ;;  %5157 = vmatprep.subr.bf16.mxu1 (!%p689_p2), %v5493_v3  ;;  %4973 = vmatprep.mubr.msk.f32.mxu1 (!%p689_p2), %vm5494_vm0, %v5495_v6  ;;  %v5155_v10 = vpack.c.bf16 (!%p689_p2), %v800_v5, %v799_v2  ;;  %s5496_s4 = smov (!%p689_p2), 96   ;;  %vm1051_vm2 = vcmask (!%p689_p2), 64512   ;;  %v883_v59 = vld [vmem:[%s6778_s11 + $0x8] sm:$0xff] (!%p689_p2) }
  0x11   : > { %5153 = vmatpush3.bf16.msra.mxu0 (!%p689_p2), %v5152_v4  ;;  %s6810_s2 = sld [smem:[#allocation2_spill]] (!%p689_p2)  ;;  %s6811_s6 = sld [smem:[#allocation6_spill]] (!%p689_p2)  ;;  %v882_v4 = vld [vmem:[%s6778_s11] sm:$0xff] (!%p689_p2) }
  0x12   : > { %5154 = vmatprep.subr.bf16.mxu0 (!%p689_p2), %v5493_v3  ;;  %s6812_s0 = sld [smem:[#allocation7_spill]] (!%p689_p2)  ;;  %s6797_s7 = smov (!%p689_p2), 88  }
  0x13   : > { %s5499_s30 = smov (!%p689_p2), 120   ;;  %s6813_s1 = sld [smem:[#allocation4_spill]] (!%p689_p2) }
  0x14   : > { %s5507_s25 = smov (!%p689_p2), 40  }
  0x15   : > { %5156 = vmatpush3.bf16.msra.mxu0 (!%p689_p2), %v5155_v10 }
  0x16   : > { %v792_v7 = vld [vmem:[%s6809_s8] sm:$0xff]  ;;  %v793_v8 = vld [vmem:[%s6809_s8 + $0x8] sm:$0xff]  ;;  %s6824_s26 = smov (!%p764_p3, %s4657_s26), 1  ;;  %5163 = vmatprep.subr.bf16.mxu0 %v5493_v3  ;;  %v794_v12 = vld [vmem:[%s6809_s8 + $0x10] sm:$0xff] }
  0x17   : > { %v5663_v9 = vpack.c.bf16 %v793_v8, %v792_v7  ;;  %s5669_s27 = sshll.u32 %s6824_s26, 3  ;;  %v795_v13 = vld [vmem:[%s6809_s8 + $0x18] sm:$0xff]  ;;  %v5711_v19 = vld [vmem:[%s6811_s6] sm:$0xff]  ;;  %s5500_s6 = smov 64  }
  0x18   : > { %s767_s29 = scalar_lea.vmem %s6810_s2, %s5669_s27  ;;  %v5691_v14 = vpack.c.bf16 %v795_v13, %v794_v12  ;;  %s5497_s2 = smov 32   ;;  %v5720_v23 = vld [vmem:[%s6812_s0] sm:$0xff] }
  0x19   : > { %5159 = vmatpush3.bf16.msra.mxu1 %v5663_v9  ;;  %v5676_v11 = vld [vmem:[%s767_s29] sm:$0xff]  ;;  %s775_s28 = scalar_lea.vmem %s6813_s1, %s5669_s27  ;;  %s6798_s29 = smov 112  }
  0x1a   : > { %5160 = vmatprep.subr.bf16.mxu1 %v5493_v3  ;;  %4963 = vmatmul.mubr.msk.f32.vlgmr.msra.gmra.mrb[0].mxu0 %vm808_vm1, %v5676_v11  ;;  %v5752_v37 = vld [vmem:[%s775_s28] sm:$0xff]  ;;  %s5503_s26 = smov 56   ;;  %s5504_s28 = smov 48  }
  0x1b   : > { %5165 = vmatpush3.bf16.msra.mxu0 %v5663_v9  ;;  %4984 = vmatprep.mubr.msk.f32.mxu0 %vm5494_vm0, %v5495_v6  ;;  %vm1128_vm3 = vcmp.eq.f32.partialorder %v5752_v37, 0.0  ;;  %s6815_s0 = sld [smem:[#allocation8_spill]]  ;;  %s6817_s1 = sld [smem:[#allocation5_spill]] }
  0x1c   : > { %5166 = vmatprep.subr.bf16.mxu0 %v5493_v3 }
  0x1d   : > { %5162 = vmatpush3.bf16.msra.mxu1 %v5691_v14 }
  0x1e   : > { %4987 = vmatprep.subr.mxu1 %v5495_v6 }
  0x1f   : > { %5168 = vmatpush3.bf16.msra.mxu0 %v5691_v14 }
  0x20   : > { %4997 = vmatprep.subr.mxu0 %v5495_v6 }
  0xed   : > { %v878_v16 = vpop.f32.mrb[0].mxu0 }
  0xee   : > { %v5700_v17 = vadd.f32 %v4667_v15, %v878_v16  ;;  %v4964_v18 = vpop.f32.mrb[1].mxu0 }
  0xf0   : > { %968 = vrot.lane.b32.xlu0 %v5700_v17, %s5496_s4  ;;  %4974 = vmatmul.mubr.msk.f32.vlgmr.msra.gmra.mrb[0].mxu1 %vm808_vm1, %v5700_v17  ;;  %v887_v32 = vmul.f32 %v5700_v17, %v5711_v19 }
  0xf1   : > { %4989 = vmatprep.mubr.msk.f32.mxu1 %vm5494_vm0, %v5495_v6 }
  0xf4   : > { %964 = vrot.lane.b32.xlu0 %v5711_v19, %s5497_s2 }
 0x162   : > { %v969_v20 = vpop.permute.xlu0 %968 }
 0x163   : > { %4985 = vmatmul.mubr.msk.f32.vlgmr.msra.gmra.mrb[2].mxu0 %vm808_vm1, %v969_v20 }
 0x164   : > { %4999 = vmatprep.mubr.msk.f32.mxu0 %vm5494_vm0, %v5495_v6 }
 0x166   : > { %v965_v27 = vpop.permute.xlu0 %964 }
 0x167   : > { %v967_v28 = vmul.f32 %v965_v27, %v5700_v17 }
 0x1c3   : > { %v957_v21 = vpop.f32.mrb[0].mxu1 }
 0x1c4   : > { %v4975_v22 = vpop.f32.mrb[1].mxu1  ;;  %v961_v30 = vmul.f32 %v957_v21, %v5720_v23 }
 0x1c6   : > { %v5733_v33 = vadd.f32 %v961_v30, %v887_v32 }
 0x236   : > { %v1038_v24 = vpop.f32.mrb[2].mxu0 }
 0x237   : > { %v1042_v25 = vmul.f32 %v1038_v24, %v5720_v23  ;;  %v4986_v26 = vpop.f32.mrb[3].mxu0 }
 0x239   : > { %1044 = vrot.lane.b32.xlu1 %v1042_v25, %s5497_s2  ;;  %s6794_s2 = smov 80  }
 0x2ab   : > { %v1045_v29 = vpop.permute.xlu1 %1044 }
 0x2ac   : > { %v5725_v31 = vadd.f32 %v1045_v29, %v967_v28 }
 0x2ae   : > { %1219 = vrot.lane.b32.xlu0 %v5725_v31, %s6797_s7  ;;  %1049 = vrot.lane.b32.xlu1 %v5725_v31, %s5496_s4 }
 0x2b2   : > { %1217 = vrot.lane.b32.xlu1 %v5733_v33, %s5499_s30 }
 0x320   : > { %v1220_v34 = vpop.permute.xlu0 %1219  ;;  %v1050_v35 = vpop.permute.xlu1 %1049 }
 0x321   : > { %4988 = vmatpush3.xpose.msk.msra.mxu1 %vm1051_vm2, %v1050_v35  ;;  %4998 = vmatpush3.xpose.msk.msra.mxu0 %vm1051_vm2, %v1220_v34 }
 0x322   : > { %4992 = vmatprep.subr.mxu1 %v5495_v6  ;;  %5007 = vmatprep.subr.mxu0 %v5495_v6 }
 0x324   : > { %4990 = vmatmul.mubr.msk.f32.vlgmr.msra.gmra.mrb[2].mxu1 %vm1051_vm2, %v5733_v33  ;;  %v1218_v36 = vpop.permute.xlu1 %1217 }
 0x325   : > { %5000 = vmatmul.mubr.msk.f32.vlgmr.msra.gmra.mrb[4].mxu0 %vm1051_vm2, %v1218_v36  ;;  %4994 = vmatprep.mubr.msk.f32.mxu1 %vm5494_vm0, %v5495_v6 }
 0x326   : > { %5009 = vmatprep.mubr.msk.f32.mxu0 %vm5494_vm0, %v5495_v6  ;;  %5008 = vmatpush3.msra.mxu0 %v883_v59 }
 0x327   : > { %5017 = vmatprep.subr.mxu0 %v5495_v6 }
 0x3f7   : > { %v1123_v38 = vpop.f32.mrb[2].mxu1 }
 0x3f8   : > { %v1127_v39 = vmul.f32 0.35355338, %v1123_v38  ;;  %v4991_v40 = vpop.f32.mrb[3].mxu1  ;;  %v1291_v41 = vpop.f32.mrb[4].mxu0 }
 0x3f9   : > { %v1295_v42 = vmul.f32 0.35355338, %v1291_v41  ;;  %v5001_v43 = vpop.f32.mrb[5].mxu0 }
 0x3fa   : > { %v1129_v44 = vsel %vm1128_vm3, -1e+09, %v1127_v39 }
 0x3fb   : > { %v1130_v45 = vsel %vm1051_vm2, %v1129_v44, -inf  ;;  %v1296_v46 = vsel %vm1128_vm3, -1e+09, %v1295_v42 }
 0x3fc   : > { %1131 = vmax.xlane.f32.xlu0 %v1130_v45  ;;  %v1297_v47 = vsel %vm1051_vm2, %v1296_v46, -inf }
 0x3fd   : > { %1298 = vmax.xlane.f32.xlu1 %v1297_v47 }
 0x40e   : > { %1141 = vrot.lane.b32.xlu1 %v5700_v17, %s5500_s6  ;;  %s6795_s6 = smov 104  }
 0x412   : > { %1532 = vrot.lane.b32.xlu1 %v5725_v31, %s6794_s2  ;;  %s6820_s2 = smov 104  }
 0x416   : > { %1530 = vrot.lane.b32.xlu1 %v5733_v33, %s6798_s29 }
 0x489   : > { %v1132_v48 = vpop.xlane.xlu0 %1131 }
 0x48a   : > { %v1133_v49 = vsub.f32 %v1129_v44, %v1132_v48  ;;  %v1299_v50 = vpop.xlane.xlu1 %1298 }
 0x48b   : > { %v1300_v51 = vsub.f32 %v1296_v46, %v1299_v50 }
 0x48c   : > { %v1134_v52 = vmul.f32 1.442695, %v1133_v49 }
 0x48d   : > { %v1301_v53 = vmul.f32 1.442695, %v1300_v51 }
 0x48e   : > { %5408 = vpow2.f32 %v1134_v52  ;;  %v1142_v54 = vpop.permute.xlu1 %1141 }
 0x48f   : > { %4993 = vmatpush3.msra.mxu1 %v1142_v54  ;;  %5410 = vpow2.f32 %v1301_v53  ;;  %v885_v53 = vld [vmem:[%s6778_s11 + $0x18] sm:$0xff] }
 0x490   : > { %5002 = vmatprep.subr.mxu1 %v5495_v6 }
 0x492   : > { %v1533_v8 = vpop.permute.xlu1 %1532 }
 0x496   : > { %v1531_v13 = vpop.permute.xlu1 %1530 }
 0x498   : > { %v5409_v55 = vpop.eup %5408 }
 0x499   : > { %v1136_v56 = vsel %vm1051_vm2, %v5409_v55, 0.0  ;;  %v5411_v57 = vpop.eup %5410 }
 0x49a   : > { %1137 = vadd.xlane.f32.xlu0 %v1136_v56  ;;  %v1303_v58 = vsel %vm1051_vm2, %v5411_v57, 0.0 }
 0x49e   : > { %1304 = vadd.xlane.f32.xlu0 %v1303_v58 }
 0x4b4   : > { %1308 = vrot.lane.b32.xlu0 %v5700_v17, %s5503_s26  ;;  %s6793_s26 = smov 72  }
 0x527   : > { %v1138_v60 = vpop.xlane.xlu0 %1137 }
 0x528   : > { %5412 = vrcp.f32 %v1138_v60  ;;  %v2127_v60 = vld [vmem:[%s6782_s15 + $0x8] sm:$0xff] }
 0x52b   : > { %v1305_v61 = vpop.xlane.xlu0 %1304 }
 0x52c   : > { %5414 = vrcp.f32 %v1305_v61 }
 0x52f   : > { %v1309_v0 = vpop.permute.xlu0 %1308 }
 0x532   : > { %v5413_v62 = vpop.eup %5412 }
 0x533   : > { %v1140_v63 = vmul.f32 %v5413_v62, %v5409_v55  ;;  %v2128_v62 = vld [vmem:[%s6782_s15 + $0x10] sm:$0xff] }
 0x535   : > { %4995 = vmatmul.mubr.msk.f32.vlgmr.msra.gmra.mrb[4].mxu1 %vm1051_vm2, %v1140_v63  ;;  %v2129_v63 = vld [vmem:[%s6782_s15 + $0x18] sm:$0xff] }
 0x536   : > { %v5415_v1 = vpop.eup %5414  ;;  %5003 = vmatpush3.msra.mxu1 %v1309_v0  ;;  %5004 = vmatprep.mubr.msk.f32.mxu1 %vm5494_vm0, %v5495_v6 }
 0x537   : > { %v1307_v2 = vmul.f32 %v5415_v1, %v5411_v57  ;;  %5012 = vmatprep.subr.mxu1 %v5495_v6 }
 0x539   : > { %5005 = vmatmul.mubr.msk.f32.vlgmr.msra.gmra.mrb[6].mxu1 %vm1051_vm2, %v1307_v2  ;;  %v5179_v2 = vpack.c.bf16 %v2129_v63, %v2128_v62 }
 0x53a   : > { %5014 = vmatprep.mubr.msk.f32.mxu1 %vm5494_vm0, %v5495_v6  ;;  %5013 = vmatpush3.msra.mxu1 %v882_v4 }
 0x53b   : > { %5022 = vmatprep.subr.mxu1 %v5495_v6 }
 0x608   : > { %v1213_v5 = vpop.f32.mrb[4].mxu1 }
 0x609   : > { %v4996_v7 = vpop.f32.mrb[5].mxu1  ;;  %5015 = vmatmul.mubr.msk.f32.vlgmr.msra.gmra.mrb[8].mxu1 %vm1051_vm2, %v1213_v5  ;;  %v4687_v5 = vld [vmem:[%s6779_s12] ss:$0 sm:$0xff] }
 0x60a   : > { %5024 = vmatprep.mubr.msk.f32.mxu1 %vm5494_vm0, %v5495_v6 }
 0x60c   : > { %v1380_v10 = vpop.f32.mrb[6].mxu1 }
 0x60d   : > { %v5006_v12 = vpop.f32.mrb[7].mxu1  ;;  %5010 = vmatmul.mubr.msk.f32.vlgmr.msra.gmra.mrb[6].mxu0 %vm1051_vm2, %v1380_v10 }
 0x60e   : > { %5018 = vmatpush3.xpose.msk.msra.mxu0 %vm1051_vm2, %v1533_v8  ;;  %5019 = vmatprep.mubr.msk.f32.mxu0 %vm5494_vm0, %v5495_v6 }
 0x60f   : > { %5027 = vmatprep.subr.mxu0 %v5495_v6 }
 0x611   : > { %5020 = vmatmul.mubr.msk.f32.vlgmr.msra.gmra.mrb[8].mxu0 %vm1051_vm2, %v1531_v13 }
 0x612   : > { %5029 = vmatprep.mubr.msk.f32.mxu0 %vm5494_vm0, %v5495_v6 }
 0x6dc   : > { %v1526_v15 = vpop.f32.mrb[8].mxu1 }
 0x6dd   : > { %v5016_v16 = vpop.f32.mrb[9].mxu1 }
 0x6e0   : > { %v1453_v18 = vpop.f32.mrb[6].mxu0 }
 0x6e1   : > { %v1527_v20 = vadd.f32 %v1526_v15, %v1453_v18  ;;  %v5011_v21 = vpop.f32.mrb[7].mxu0  ;;  %v2042_v18 = vld [vmem:[%s6780_s13] sm:$0xff] }
 0x6e2   : > { %v4691_v21 = vld [vmem:[%s6783_s16] ss:$0 sm:$0xff] }
 0x6e4   : > { %v1604_v22 = vpop.f32.mrb[8].mxu0 }
 0x6e5   : > { %v1608_v24 = vmul.f32 0.35355338, %v1604_v22  ;;  %v5021_v25 = vpop.f32.mrb[9].mxu0 }
 0x6e7   : > { %v1609_v26 = vsel %vm1128_vm3, -1e+09, %v1608_v24 }
 0x6e8   : > { %v1610_v27 = vsel %vm1051_vm2, %v1609_v26, -inf }
 0x6e9   : > { %1611 = vmax.xlane.f32.xlu0 %v1610_v27 }
 0x6ff   : > { %1621 = vrot.lane.b32.xlu0 %v5700_v17, %s5504_s28  ;;  %s6818_s28 = smov 112  }
 0x703   : > { %1771 = vrot.lane.b32.xlu0 %v5733_v33, %s6795_s6  ;;  %s6821_s6 = smov 80  }
 0x776   : > { %v1612_v28 = vpop.xlane.xlu0 %1611 }
 0x777   : > { %v1613_v29 = vsub.f32 %v1609_v26, %v1612_v28  ;;  %v2045_v26 = vld [vmem:[%s6780_s13 + $0x18] sm:$0xff] }
 0x779   : > { %v1614_v30 = vmul.f32 1.442695, %v1613_v29 }
 0x77a   : > { %v1622_v32 = vpop.permute.xlu0 %1621 }
 0x77b   : > { %5416 = vpow2.f32 %v1614_v30  ;;  %5023 = vmatpush3.msra.mxu1 %v1622_v32 }
 0x77c   : > { %5032 = vmatprep.subr.mxu1 %v5495_v6 }
 0x77e   : > { %v1772_v40 = vpop.permute.xlu0 %1771 }
 0x785   : > { %v5417_v34 = vpop.eup %5416 }
 0x786   : > { %v1616_v35 = vsel %vm1051_vm2, %v5417_v34, 0.0 }
 0x787   : > { %1617 = vadd.xlane.f32.xlu1 %v1616_v35 }
 0x798   : > { %1773 = vrot.lane.b32.xlu1 %v5725_v31, %s6793_s26  ;;  %v884_v31 = vld [vmem:[%s6778_s11 + $0x10] sm:$0xff] }
 0x799   : > { %5028 = vmatpush3.msra.mxu0 %v884_v31 }
 0x79a   : > { %5037 = vmatprep.subr.mxu0 %v5495_v6 }
 0x814   : > { %v1618_v36 = vpop.xlane.xlu1 %1617 }
 0x815   : > { %5418 = vrcp.f32 %v1618_v36 }
 0x818   : > { %v1774_v39 = vpop.permute.xlu1 %1773 }
 0x81f   : > { %v5419_v38 = vpop.eup %5418 }
 0x820   : > { %v1620_v33 = vmul.f32 %v5419_v38, %v5417_v34 }
 0x822   : > { %5025 = vmatmul.mubr.msk.f32.vlgmr.msra.gmra.mrb[10].mxu1 %vm1051_vm2, %v1620_v33 }
 0x823   : > { %5033 = vmatpush3.xpose.msk.msra.mxu1 %vm1051_vm2, %v1774_v39  ;;  %5034 = vmatprep.mubr.msk.f32.mxu1 %vm5494_vm0, %v5495_v6  ;;  %v5893_v39 = vld [vmem:[%s6790_s23] ss:$0 sm:$0xff] }
 0x824   : > { %5042 = vmatprep.subr.mxu1 %v5495_v6 }
 0x826   : > { %5035 = vmatmul.mubr.msk.f32.vlgmr.msra.gmra.mrb[12].mxu1 %vm1051_vm2, %v1772_v40 }
 0x827   : > { %5044 = vmatprep.mubr.msk.f32.mxu1 %vm5494_vm0, %v5495_v6  ;;  %5043 = vmatpush3.msra.mxu1 %v885_v53 }
 0x828   : > { %5175 = vmatprep.subr.bf16.mxu1 %v5493_v3 }
 0x8f5   : > { %v1693_v41 = vpop.f32.mrb[10].mxu1 }
 0x8f6   : > { %v5026_v42 = vpop.f32.mrb[11].mxu1  ;;  %5030 = vmatmul.mubr.msk.f32.vlgmr.msra.gmra.mrb[10].mxu0 %vm1051_vm2, %v1693_v41 }
 0x8f7   : > { %5039 = vmatprep.mubr.msk.f32.mxu0 %vm5494_vm0, %v5495_v6  ;;  %v790_v42 = vld [vmem:[%s6815_s0] sm:$0xff]  ;;  %s6819_s0 = smov 88  }
 0x8f9   : > { %v1845_v43 = vpop.f32.mrb[12].mxu1 }
 0x8fa   : > { %v1849_v44 = vmul.f32 0.35355338, %v1845_v43  ;;  %v5036_v45 = vpop.f32.mrb[13].mxu1 }
 0x8fc   : > { %v1850_v46 = vsel %vm1128_vm3, -1e+09, %v1849_v44 }
 0x8fd   : > { %v1851_v47 = vsel %vm1051_vm2, %v1850_v46, -inf }
 0x8fe   : > { %1852 = vmax.xlane.f32.xlu1 %v1851_v47 }
 0x98b   : > { %v1853_v48 = vpop.xlane.xlu1 %1852 }
 0x98c   : > { %v1854_v49 = vsub.f32 %v1850_v46, %v1853_v48 }
 0x98e   : > { %v1855_v50 = vmul.f32 1.442695, %v1854_v49 }
 0x990   : > { %5420 = vpow2.f32 %v1855_v50 }
 0x99a   : > { %v5421_v51 = vpop.eup %5420 }
 0x99b   : > { %v1857_v52 = vsel %vm1051_vm2, %v5421_v51, 0.0 }
 0x99c   : > { %1858 = vadd.xlane.f32.xlu0 %v1857_v52 }
 0x9b2   : > { %1862 = vrot.lane.b32.xlu0 %v5700_v17, %s5507_s25  ;;  %v2126_v17 = vld [vmem:[%s6782_s15] sm:$0xff]  ;;  %s6814_s25 = sld [smem:[#allocation3_spill]] }
 0x9b3   : > { %v5176_v61 = vpack.c.bf16 %v2127_v60, %v2126_v17 }
 0x9b8   : > { %s771_s26 = scalar_lea.vmem %s6814_s25, %s5669_s27 }
 0x9b9   : > { %v785_v4 = vld [vmem:[%s771_s26] sm:$0xff]  ;;  %s6816_s26 = sld [smem:[#allocation9_spill]] }
 0x9bf   : > { %v791_v43 = vld [vmem:[%s6816_s26] sm:$0xff] }
 0x9c9   : > { %v1766_v37 = vpop.f32.mrb[10].mxu0 }
 0x9ca   : > { %v1770_v54 = vadd.f32 %v1766_v37, %v1527_v20  ;;  %v5031_v55 = vpop.f32.mrb[11].mxu0  ;;  %v2043_v20 = vld [vmem:[%s6780_s13 + $0x8] sm:$0xff] }
 0x9cb   : > { %v5170_v24 = vpack.c.bf16 %v2043_v20, %v2042_v18 }
 0xa29   : > { %v1859_v56 = vpop.xlane.xlu0 %1858 }
 0xa2a   : > { %5422 = vrcp.f32 %v1859_v56 }
 0xa2d   : > { %v1863_v57 = vpop.permute.xlu0 %1862 }
 0xa2e   : > { %5038 = vmatpush3.msra.mxu0 %v1863_v57 }
 0xa2f   : > { %5169 = vmatprep.subr.bf16.mxu0 %v5493_v3 }
 0xa34   : > { %v5423_v58 = vpop.eup %5422 }
 0xa35   : > { %v1861_v59 = vmul.f32 %v5423_v58, %v5421_v51 }
 0xa37   : > { %5040 = vmatmul.mubr.msk.f32.vlgmr.msra.gmra.mrb[12].mxu0 %vm1051_vm2, %v1861_v59 }
 0xa38   : > { %5055 = vmatprep.mubr.msk.f32.mxu0 %vm5494_vm0, %v5495_v6  ;;  %5171 = vmatpush3.bf16.msra.mxu0 %v5170_v24 }
 0xa39   : > { %5172 = vmatprep.subr.bf16.mxu0 %v5493_v3 }
 0xb0a   : > { %v1934_v0 = vpop.f32.mrb[12].mxu0 }
 0xb0b   : > { %v5041_v1 = vpop.f32.mrb[13].mxu0  ;;  %5045 = vmatmul.mubr.msk.f32.vlgmr.msra.gmra.mrb[14].mxu1 %vm1051_vm2, %v1934_v0 }
 0xb0c   : > { %5177 = vmatpush3.bf16.msra.mxu1 %v5176_v61  ;;  %5066 = vmatprep.mubr.msk.f32.mxu1 %vm5494_vm0, %v5495_v6 }
 0xb0d   : > { %5178 = vmatprep.subr.bf16.mxu1 %v5493_v3 }
 0xb10   : > { %5180 = vmatpush3.bf16.msra.mxu1 %v5179_v2 }
 0xb11   : > { %5187 = vmatprep.subr.bf16.mxu1 %v5493_v3 }
 0xb13   : > { %5067 = vmatmul.mubr.msk.f32.vlgmr.msra.gmra.mrb[16].mxu1 %vm808_vm1, %v785_v4 }
 0xb14   : > { %5189 = vmatpush3.bf16.msra.mxu1 %v5663_v9  ;;  %5088 = vmatprep.mubr.msk.f32.mxu1 %vm5494_vm0, %v5495_v6 }
 0xb15   : > { %5190 = vmatprep.subr.bf16.mxu1 %v5493_v3 }
 0xb18   : > { %5192 = vmatpush3.bf16.msra.mxu1 %v5691_v14 }
 0xb19   : > { %5096 = vmatprep.subr.mxu1 %v5495_v6 }
 0xbde   : > { %v2007_v7 = vpop.f32.mrb[14].mxu1 }
 0xbdf   : > { %v2011_v8 = vadd.f32 %v2007_v7, %v1770_v54  ;;  %v5046_v10 = vpop.f32.mrb[15].mxu1 }
 0xbe1   : > { %v2018_v12 = vadd.f32 %v4687_v5, %v2011_v8 }
 0xbe3   : > { %v2019_v13 = vadd.f32 %v2018_v12, %v5676_v11  ;;  %v2044_v11 = vld [vmem:[%s6780_s13 + $0x10] sm:$0xff] }
 0xbe4   : > { %v5173_v28 = vpack.c.bf16 %v2045_v26, %v2044_v11 }
 0xbe5   : > { %v2020_v15 = vmul.f32 %v2019_v13, %v2019_v13  ;;  %v2038_v40 = vmul.f32 %v5893_v39, %v2019_v13 }
 0xbe6   : > { %v2206_v22 = vpop.f32.mrb[16].mxu1  ;;  %5174 = vmatpush3.bf16.msra.mxu0 %v5173_v28 }
 0xbe7   : > { %v2021_v16 = vsel %vm808_vm1, %v2020_v15, 0.0  ;;  %v5876_v25 = vadd.f32 %v4691_v21, %v2206_v22  ;;  %v5068_v27 = vpop.f32.mrb[17].mxu1  ;;  %5181 = vmatprep.subr.bf16.mxu0 %v5493_v3  ;;  %v2211_v21 = vld [vmem:[%s6784_s17 + $0x8] sm:$0xff] }
 0xbe8   : > { %2022 = vadd.xlane.f32.xlu1 %v2021_v16  ;;  %v2210_v27 = vld [vmem:[%s6784_s17] sm:$0xff] }
 0xbe9   : > { %5089 = vmatmul.mubr.msk.f32.vlgmr.msra.gmra.mrb[18].mxu1 %vm808_vm1, %v5876_v25  ;;  %v2291_v44 = vmul.f32 %v5876_v25, %v790_v42 }
 0xbea   : > { %5098 = vmatprep.mubr.msk.f32.mxu1 %vm5494_vm0, %v5495_v6 }
 0xc75   : > { %v2023_v29 = vpop.xlane.xlu1 %2022 }
 0xc76   : > { %5424 = vrsqrt.f32 %v2023_v29  ;;  %vm2026_vm4 = vcmp.eq.f32.partialorder %v2023_v29, inf  ;;  %v2029_v34 = vand.u32 2147483648, %v2023_v29  ;;  %vm2028_vm5 = vcmp.eq.f32.partialorder %v2023_v29, 0.0 }
 0xc80   : > { %v5425_v30 = vpop.eup %5424 }
 0xc81   : > { %v2025_v32 = vmul.f32 %v5425_v30, %v2023_v29 }
 0xc83   : > { %v2027_v35 = vsel %vm2026_vm4, %v2023_v29, %v2025_v32 }
 0xc84   : > { %v2030_v36 = vsel %vm2028_vm5, %v2029_v34, %v2027_v35 }
 0xc85   : > { %v2031_v38 = vmul.f32 0.17677669, %v2030_v36 }
 0xc87   : > { %v2039_v33 = vadd.f32 1e-06, %v2031_v38 }
 0xc89   : > { %5426 = vrcp.f32 %v2039_v33 }
 0xc93   : > { %v5427_v31 = vpop.eup %5426 }
 0xc94   : > { %v5896_v41 = vmul.f32 %v5427_v31, %v2038_v40 }
 0xc96   : > { %5056 = vmatmul.mubr.msk.f32.vlgmr.msra.gmra.mrb[14].mxu0 %vm808_vm1, %v5896_v41 }
 0xc97   : > { %5183 = vmatpush3.bf16.msra.mxu0 %v5663_v9  ;;  %5077 = vmatprep.mubr.msk.f32.mxu0 %vm5494_vm0, %v5495_v6 }
 0xc98   : > { %5184 = vmatprep.subr.bf16.mxu0 %v5493_v3  ;;  %v4689_v3 = vld [vmem:[%s6781_s14] ss:$0 sm:$0xff] }
 0xc9b   : > { %5186 = vmatpush3.bf16.msra.mxu0 %v5691_v14 }
 0xc9c   : > { %5091 = vmatprep.subr.mxu0 %v5495_v6 }
 0xcbc   : > { %v2361_v9 = vpop.f32.mrb[18].mxu1 }
 0xcbd   : > { %v2365_v45 = vmul.f32 %v2361_v9, %v791_v43  ;;  %v5090_v46 = vpop.f32.mrb[19].mxu1 }
 0xcbf   : > { %v5913_v47 = vadd.f32 %v2365_v45, %v2291_v44 }
 0xcc1   : > { %2535 = vrot.lane.b32.xlu1 %v5913_v47, %s5499_s30 }
 0xd33   : > { %v2536_v54 = vpop.permute.xlu1 %2535 }
 0xd69   : > { %v2122_v14 = vpop.f32.mrb[14].mxu0 }
 0xd6a   : > { %v2123_v48 = vadd.f32 %v4689_v3, %v2122_v14  ;;  %v5057_v49 = vpop.f32.mrb[15].mxu0 }
 0xd6c   : > { %5078 = vmatmul.mubr.msk.f32.vlgmr.msra.gmra.mrb[16].mxu0 %vm808_vm1, %v2123_v48  ;;  %v2215_v51 = vmul.f32 %v2123_v48, %v5711_v19 }
 0xd6d   : > { %5092 = vmatpush3.xpose.msk.msra.mxu0 %vm1051_vm2, %v5913_v47  ;;  %5093 = vmatprep.mubr.msk.f32.mxu0 %vm5494_vm0, %v5495_v6 }
 0xd6e   : > { %5101 = vmatprep.subr.mxu0 %v5495_v6 }
 0xe3f   : > { %v2285_v50 = vpop.f32.mrb[16].mxu0 }
 0xe40   : > { %v2289_v52 = vmul.f32 %v2285_v50, %v5720_v23  ;;  %v5079_v53 = vpop.f32.mrb[17].mxu0 }
 0xe42   : > { %v5928_v37 = vadd.f32 %v2289_v52, %v2215_v51 }
 0xe44   : > { %2533 = vrot.lane.b32.xlu0 %v5928_v37, %s5499_s30  ;;  %5094 = vmatmul.mubr.msk.f32.vlgmr.msra.gmra.mrb[18].mxu0 %vm1051_vm2, %v5928_v37  ;;  %s779_s30 = scalar_lea.vmem %s6817_s1, %s5669_s27  ;;  %s6822_s1 = smov 72  }
 0xe45   : > { %5102 = vmatpush3.xpose.msk.msra.mxu0 %vm1051_vm2, %v2536_v54  ;;  %5103 = vmatprep.mubr.msk.f32.mxu0 %vm5494_vm0, %v5495_v6  ;;  %v5945_v23 = vld [vmem:[%s779_s30] sm:$0xff]  ;;  %v2212_v54 = vld [vmem:[%s6784_s17 + $0x10] sm:$0xff] }
 0xe46   : > { %5111 = vmatprep.subr.mxu0 %v5495_v6  ;;  %vm2444_vm6 = vcmp.eq.f32.partialorder %v5945_v23, 0.0  ;;  %v2213_v23 = vld [vmem:[%s6784_s17 + $0x18] sm:$0xff] }
 0xeb6   : > { %v2534_v19 = vpop.permute.xlu0 %2533 }
 0xeb7   : > { %5104 = vmatmul.mubr.msk.f32.vlgmr.msra.gmra.mrb[20].mxu0 %vm1051_vm2, %v2534_v19 }
 0xeb8   : > { %5113 = vmatprep.mubr.msk.f32.mxu0 %vm5494_vm0, %v5495_v6  ;;  %5112 = vmatpush3.msra.mxu0 %v2211_v21 }
 0xeb9   : > { %5121 = vmatprep.subr.mxu0 %v5495_v6 }
 0xf17   : > { %v2439_v55 = vpop.f32.mrb[18].mxu0 }
 0xf18   : > { %v2443_v56 = vmul.f32 0.35355338, %v2439_v55  ;;  %v5095_v57 = vpop.f32.mrb[19].mxu0 }
 0xf1a   : > { %v2445_v58 = vsel %vm2444_vm6, -1e+09, %v2443_v56 }
 0xf1b   : > { %v2446_v59 = vsel %vm1051_vm2, %v2445_v58, -inf }
 0xf1c   : > { %2447 = vmax.xlane.f32.xlu1 %v2446_v59 }
 0xf8a   : > { %v2607_v17 = vpop.f32.mrb[20].mxu0 }
 0xf8b   : > { %v2611_v60 = vmul.f32 0.35355338, %v2607_v17  ;;  %v5105_v61 = vpop.f32.mrb[21].mxu0 }
 0xf8d   : > { %v2612_v62 = vsel %vm2444_vm6, -1e+09, %v2611_v60 }
 0xf8e   : > { %v2613_v63 = vsel %vm1051_vm2, %v2612_v62, -inf }
 0xf8f   : > { %2614 = vmax.xlane.f32.xlu0 %v2613_v63 }
 0xfa9   : > { %v2448_v0 = vpop.xlane.xlu1 %2447 }
 0xfaa   : > { %v2449_v1 = vsub.f32 %v2445_v58, %v2448_v0 }
 0xfac   : > { %v2450_v2 = vmul.f32 1.442695, %v2449_v1 }
 0xfae   : > { %5428 = vpow2.f32 %v2450_v2 }
 0xfb8   : > { %v5429_v4 = vpop.eup %5428 }
 0xfb9   : > { %v2452_v5 = vsel %vm1051_vm2, %v5429_v4, 0.0 }
 0xfba   : > { %2453 = vadd.xlane.f32.xlu0 %v2452_v5 }
 0xfd0   : > { %2457 = vrot.lane.b32.xlu0 %v5876_v25, %s5496_s4 }
 0xfd4   : > { %2846 = vrot.lane.b32.xlu0 %v5928_v37, %s6818_s28 }
0x101c   : > { %v2615_v7 = vpop.xlane.xlu0 %2614 }
0x101d   : > { %v2616_v8 = vsub.f32 %v2612_v62, %v2615_v7 }
0x101f   : > { %v2617_v10 = vmul.f32 1.442695, %v2616_v8 }
0x1021   : > { %5430 = vpow2.f32 %v2617_v10 }
0x102b   : > { %v5431_v12 = vpop.eup %5430 }
0x102c   : > { %v2619_v13 = vsel %vm1051_vm2, %v5431_v12, 0.0 }
0x102d   : > { %2620 = vadd.xlane.f32.xlu1 %v2619_v13  ;;  %v4711_v13 = vld [vmem:[%s6785_s18] ss:$0 sm:$0xff] }
0x103e   : > { %2624 = vrot.lane.b32.xlu1 %v5876_v25, %s6819_s0  ;;  %s783_s0 = scalar_lea.vmem %s6791_s24, %s5669_s27 }
0x1042   : > { %2848 = vrot.lane.b32.xlu1 %v5913_v47, %s6818_s28 }
0x1047   : > { %v2454_v15 = vpop.xlane.xlu0 %2453 }
0x1048   : > { %5432 = vrcp.f32 %v2454_v15 }
0x104b   : > { %v2458_v16 = vpop.permute.xlu0 %2457 }
0x104c   : > { %5097 = vmatpush3.msra.mxu1 %v2458_v16 }
0x104d   : > { %5106 = vmatprep.subr.mxu1 %v5495_v6 }
0x104f   : > { %v2847_v35 = vpop.permute.xlu0 %2846 }
0x1052   : > { %v5433_v18 = vpop.eup %5432 }
0x1053   : > { %v2456_v20 = vmul.f32 %v5433_v18, %v5429_v4 }
0x1055   : > { %5099 = vmatmul.mubr.msk.f32.vlgmr.msra.gmra.mrb[20].mxu1 %vm1051_vm2, %v2456_v20 }
0x1056   : > { %5108 = vmatprep.mubr.msk.f32.mxu1 %vm5494_vm0, %v5495_v6 }
0x10ba   : > { %v2621_v22 = vpop.xlane.xlu1 %2620 }
0x10bb   : > { %5434 = vrcp.f32 %v2621_v22 }
0x10be   : > { %v2625_v24 = vpop.permute.xlu1 %2624 }
0x10bf   : > { %5107 = vmatpush3.msra.mxu1 %v2625_v24 }
0x10c0   : > { %5116 = vmatprep.subr.mxu1 %v5495_v6 }
0x10c2   : > { %v2849_v32 = vpop.permute.xlu1 %2848 }
0x10c5   : > { %v5435_v11 = vpop.eup %5434 }
0x10c6   : > { %v2623_v26 = vmul.f32 %v5435_v11, %v5431_v12  ;;  %v3353_v11 = vld [vmem:[%s6786_s19 + $0x8] sm:$0xff] }
0x10c8   : > { %5109 = vmatmul.mubr.msk.f32.vlgmr.msra.gmra.mrb[22].mxu1 %vm1051_vm2, %v2623_v26  ;;  %v3369_v26 = vld [vmem:[%s6786_s19 + $0x88] sm:$0xff] }
0x10c9   : > { %5117 = vmatpush3.msra.mxu1 %v2210_v27  ;;  %5118 = vmatprep.mubr.msk.f32.mxu1 %vm5494_vm0, %v5495_v6  ;;  %v3355_v27 = vld [vmem:[%s6786_s19 + $0x18] sm:$0xff] }
0x10ca   : > { %5126 = vmatprep.subr.mxu1 %v5495_v6 }
0x1128   : > { %v2529_v28 = vpop.f32.mrb[20].mxu1 }
0x1129   : > { %v5100_v29 = vpop.f32.mrb[21].mxu1  ;;  %5119 = vmatmul.mubr.msk.f32.vlgmr.msra.gmra.mrb[24].mxu1 %vm1051_vm2, %v2529_v28  ;;  %v3371_v28 = vld [vmem:[%s6786_s19 + $0x98] sm:$0xff] }
0x112a   : > { %5128 = vmatprep.mubr.msk.f32.mxu1 %vm5494_vm0, %v5495_v6  ;;  %v3352_v29 = vld [vmem:[%s6786_s19] sm:$0xff] }
0x119b   : > { %v2696_v30 = vpop.f32.mrb[22].mxu1 }
0x119c   : > { %v5110_v34 = vpop.f32.mrb[23].mxu1  ;;  %5114 = vmatmul.mubr.msk.f32.vlgmr.msra.gmra.mrb[22].mxu0 %vm1051_vm2, %v2696_v30  ;;  %v3368_v30 = vld [vmem:[%s6786_s19 + $0x80] sm:$0xff] }
0x119d   : > { %5122 = vmatpush3.xpose.msk.msra.mxu0 %vm1051_vm2, %v2849_v32  ;;  %5123 = vmatprep.mubr.msk.f32.mxu0 %vm5494_vm0, %v5495_v6  ;;  %v5201_v32 = vpack.c.bf16 %v3371_v28, %v3355_v27  ;;  %v5195_v34 = vpack.c.bf16 %v3368_v30, %v3352_v29  ;;  %v3362_v28 = vld [vmem:[%s6786_s19 + $0x50] sm:$0xff]  ;;  %v3393_v30 = vld [vmem:[%s6786_s19 + $0x148] sm:$0xff] }
0x119e   : > { %5131 = vmatprep.subr.mxu0 %v5495_v6  ;;  %v3378_v29 = vld [vmem:[%s6786_s19 + $0xd0] sm:$0xff] }
0x11a0   : > { %5124 = vmatmul.mubr.msk.f32.vlgmr.msra.gmra.mrb[24].mxu0 %vm1051_vm2, %v2847_v35  ;;  %v3354_v35 = vld [vmem:[%s6786_s19 + $0x10] sm:$0xff] }
0x11a1   : > { %5133 = vmatprep.mubr.msk.f32.mxu0 %vm5494_vm0, %v5495_v6  ;;  %5132 = vmatpush3.msra.mxu0 %v2212_v54 }
0x11a2   : > { %5141 = vmatprep.subr.mxu0 %v5495_v6 }
0x11fc   : > { %v2842_v36 = vpop.f32.mrb[24].mxu1 }
0x11fd   : > { %v5120_v38 = vpop.f32.mrb[25].mxu1 }
0x126f   : > { %v2769_v33 = vpop.f32.mrb[22].mxu0 }
0x1270   : > { %v2843_v40 = vadd.f32 %v2842_v36, %v2769_v33  ;;  %v5115_v31 = vpop.f32.mrb[23].mxu0  ;;  %v3370_v36 = vld [vmem:[%s6786_s19 + $0x90] sm:$0xff]  ;;  %v3385_v33 = vld [vmem:[%s6786_s19 + $0x108] sm:$0xff] }
0x1271   : > { %v5203_v38 = vpack.c.bf16 %v3370_v36, %v3354_v35  ;;  %v3387_v31 = vld [vmem:[%s6786_s19 + $0x118] sm:$0xff] }
0x1272   : > { %v3411_v35 = vld [vmem:[%s6786_s19 + $0x1d8] sm:$0xff] }
0x1273   : > { %v2920_v42 = vpop.f32.mrb[24].mxu0 }
0x1274   : > { %v2924_v43 = vmul.f32 0.35355338, %v2920_v42  ;;  %v5125_v44 = vpop.f32.mrb[25].mxu0 }
0x1275   : > { %v3384_v44 = vld [vmem:[%s6786_s19 + $0x100] sm:$0xff] }
0x1276   : > { %v2925_v9 = vsel %vm2444_vm6, -1e+09, %v2924_v43  ;;  %v3403_v43 = vld [vmem:[%s6786_s19 + $0x198] sm:$0xff] }
0x1277   : > { %v2926_v45 = vsel %vm1051_vm2, %v2925_v9, -inf }
0x1278   : > { %2927 = vmax.xlane.f32.xlu1 %v2926_v45  ;;  %v5205_v45 = vpack.c.bf16 %v3403_v43, %v3387_v31  ;;  %v3394_v43 = vld [vmem:[%s6786_s19 + $0x150] sm:$0xff] }
0x1289   : > { %3089 = vrot.lane.b32.xlu1 %v5913_v47, %s6820_s2 }
0x128d   : > { %3087 = vrot.lane.b32.xlu1 %v5928_v37, %s6820_s2 }
0x1305   : > { %v2928_v46 = vpop.xlane.xlu1 %2927 }
0x1306   : > { %v2929_v3 = vsub.f32 %v2925_v9, %v2928_v46  ;;  %v3400_v9 = vld [vmem:[%s6786_s19 + $0x180] sm:$0xff] }
0x1307   : > { %v5199_v46 = vpack.c.bf16 %v3400_v9, %v3384_v44  ;;  %v3410_v44 = vld [vmem:[%s6786_s19 + $0x1d0] sm:$0xff]  ;;  %v3365_v9 = vld [vmem:[%s6786_s19 + $0x68] sm:$0xff] }
0x1308   : > { %v2930_v14 = vmul.f32 1.442695, %v2929_v3  ;;  %v3386_v3 = vld [vmem:[%s6786_s19 + $0x110] sm:$0xff] }
0x1309   : > { %v3090_v52 = vpop.permute.xlu1 %3089 }
0x130a   : > { %5436 = vpow2.f32 %v2930_v14  ;;  %v3402_v14 = vld [vmem:[%s6786_s19 + $0x190] sm:$0xff] }
0x130d   : > { %v3088_v37 = vpop.permute.xlu1 %3087 }
0x1314   : > { %v5437_v48 = vpop.eup %5436 }
0x1315   : > { %v2932_v49 = vsel %vm1051_vm2, %v5437_v48, 0.0 }
0x1316   : > { %2933 = vadd.xlane.f32.xlu0 %v2932_v49  ;;  %v3357_v49 = vld [vmem:[%s6786_s19 + $0x28] sm:$0xff] }
0x132c   : > { %2937 = vrot.lane.b32.xlu0 %v5876_v25, %s6821_s6 }
0x13a3   : > { %v2934_v50 = vpop.xlane.xlu0 %2933 }
0x13a4   : > { %5438 = vrcp.f32 %v2934_v50  ;;  %v3373_v50 = vld [vmem:[%s6786_s19 + $0xa8] sm:$0xff] }
0x13a7   : > { %v2938_v51 = vpop.permute.xlu0 %2937 }
0x13a8   : > { %5127 = vmatpush3.msra.mxu1 %v2938_v51  ;;  %v3359_v51 = vld [vmem:[%s6786_s19 + $0x38] sm:$0xff] }
0x13a9   : > { %5136 = vmatprep.subr.mxu1 %v5495_v6 }
0x13ae   : > { %v5439_v47 = vpop.eup %5438 }
0x13af   : > { %v2936_v53 = vmul.f32 %v5439_v47, %v5437_v48  ;;  %v5207_v48 = vpack.c.bf16 %v3402_v14, %v3386_v3  ;;  %v5209_v47 = vpack.c.bf16 %v3373_v50, %v3357_v49  ;;  %v3383_v3 = vld [vmem:[%s6786_s19 + $0xf8] sm:$0xff]  ;;  %v3364_v49 = vld [vmem:[%s6786_s19 + $0x60] sm:$0xff] }
0x13b0   : > { %v3380_v50 = vld [vmem:[%s6786_s19 + $0xe0] sm:$0xff] }
0x13b1   : > { %5129 = vmatmul.mubr.msk.f32.vlgmr.msra.gmra.mrb[26].mxu1 %vm1051_vm2, %v2936_v53 }
0x13b2   : > { %5137 = vmatpush3.xpose.msk.msra.mxu1 %vm1051_vm2, %v3090_v52  ;;  %5138 = vmatprep.mubr.msk.f32.mxu1 %vm5494_vm0, %v5495_v6  ;;  %v3375_v52 = vld [vmem:[%s6786_s19 + $0xb8] sm:$0xff] }
0x13b3   : > { %5146 = vmatprep.subr.mxu1 %v5495_v6  ;;  %v5217_v53 = vpack.c.bf16 %v3375_v52, %v3359_v51  ;;  %v3366_v52 = vld [vmem:[%s6786_s19 + $0x70] sm:$0xff] }
0x13b5   : > { %5139 = vmatmul.mubr.msk.f32.vlgmr.msra.gmra.mrb[28].mxu1 %vm1051_vm2, %v3088_v37 }
0x13b6   : > { %5148 = vmatprep.mubr.msk.f32.mxu1 %vm5494_vm0, %v5495_v6  ;;  %5147 = vmatpush3.msra.mxu1 %v2213_v23  ;;  %v3407_v23 = vld [vmem:[%s6786_s19 + $0x1b8] sm:$0xff] }
0x13b7   : > { %5202 = vmatprep.subr.bf16.mxu1 %v5201_v32  ;;  %v3409_v32 = vld [vmem:[%s6786_s19 + $0x1c8] sm:$0xff] }
0x13b8   : > { %v5229_v31 = vpack.c.bf16 %v3409_v32, %v3393_v30  ;;  %v3439_v30 = vld [vmem:[%s6788_s21 + $0xa8] sm:$0xff]  ;;  %v3470_v32 = vld [vmem:[%s6788_s21 + $0x1a0] sm:$0xff] }
0x1484   : > { %v3009_v19 = vpop.f32.mrb[26].mxu1 }
0x1485   : > { %v5130_v55 = vpop.f32.mrb[27].mxu1  ;;  %5134 = vmatmul.mubr.msk.f32.vlgmr.msra.gmra.mrb[26].mxu0 %vm1051_vm2, %v3009_v19 }
0x1486   : > { %5143 = vmatprep.mubr.msk.f32.mxu0 %vm5494_vm0, %v5495_v6 }
0x1488   : > { %v3161_v56 = vpop.f32.mrb[28].mxu1 }
0x1489   : > { %v3165_v57 = vmul.f32 0.35355338, %v3161_v56  ;;  %v5140_v58 = vpop.f32.mrb[29].mxu1 }
0x148b   : > { %v3166_v59 = vsel %vm2444_vm6, -1e+09, %v3165_v57 }
0x148c   : > { %v3167_v17 = vsel %vm1051_vm2, %v3166_v59, -inf }
0x148d   : > { %3168 = vmax.xlane.f32.xlu0 %v3167_v17  ;;  %v3356_v17 = vld [vmem:[%s6786_s19 + $0x20] sm:$0xff] }
0x14a3   : > { %3178 = vrot.lane.b32.xlu0 %v5876_v25, %s6822_s1 }
0x151a   : > { %v3169_v60 = vpop.xlane.xlu0 %3168 }
0x151b   : > { %v3170_v61 = vsub.f32 %v3166_v59, %v3169_v60  ;;  %v3372_v60 = vld [vmem:[%s6786_s19 + $0xa0] sm:$0xff] }
0x151d   : > { %v3171_v62 = vmul.f32 1.442695, %v3170_v61  ;;  %v3358_v61 = vld [vmem:[%s6786_s19 + $0x30] sm:$0xff] }
0x151e   : > { %v3179_v63 = vpop.permute.xlu0 %3178 }
0x151f   : > { %5440 = vpow2.f32 %v3171_v62  ;;  %5142 = vmatpush3.msra.mxu0 %v3179_v63  ;;  %v3374_v62 = vld [vmem:[%s6786_s19 + $0xb0] sm:$0xff]  ;;  %v3389_v63 = vld [vmem:[%s6786_s19 + $0x128] sm:$0xff] }
0x1529   : > { %v5441_v0 = vpop.eup %5440 }
0x152a   : > { %v3173_v1 = vsel %vm1051_vm2, %v5441_v0, 0.0 }
0x152b   : > { %3174 = vadd.xlane.f32.xlu1 %v3173_v1  ;;  %v3391_v1 = vld [vmem:[%s6786_s19 + $0x138] sm:$0xff] }
0x1558   : > { %v3082_v2 = vpop.f32.mrb[26].mxu0 }
0x1559   : > { %v3086_v4 = vadd.f32 %v3082_v2, %v2843_v40  ;;  %v5135_v5 = vpop.f32.mrb[27].mxu0  ;;  %v3401_v40 = vld [vmem:[%s6786_s19 + $0x188] sm:$0xff] }
0x155a   : > { %v5197_v42 = vpack.c.bf16 %v3401_v40, %v3385_v33  ;;  %v5211_v5 = vpack.c.bf16 %v3372_v60, %v3356_v17  ;;  %v3392_v33 = vld [vmem:[%s6786_s19 + $0x140] sm:$0xff] }
0x155b   : > { %v3408_v40 = vld [vmem:[%s6786_s19 + $0x1c0] sm:$0xff] }
0x155c   : > { %v5231_v14 = vpack.c.bf16 %v3408_v40, %v3392_v33  ;;  %v3412_v60 = vld [vmem:[%s6786_s19 + $0x1e0] sm:$0xff] }
0x15b8   : > { %v3175_v7 = vpop.xlane.xlu1 %3174 }
0x15b9   : > { %5442 = vrcp.f32 %v3175_v7  ;;  %v5219_v7 = vpack.c.bf16 %v3374_v62, %v3358_v61  ;;  %v3398_v61 = vld [vmem:[%s6786_s19 + $0x170] sm:$0xff] }
0x15ba   : > { %v3414_v62 = vld [vmem:[%s6786_s19 + $0x1f0] sm:$0xff] }
0x15c3   : > { %v5443_v25 = vpop.eup %5442 }
0x15c4   : > { %v3177_v8 = vmul.f32 %v5443_v25, %v5441_v0  ;;  %v3405_v0 = vld [vmem:[%s6786_s19 + $0x1a8] sm:$0xff]  ;;  %v3388_v25 = vld [vmem:[%s6786_s19 + $0x120] sm:$0xff] }
0x15c6   : > { %5144 = vmatmul.mubr.msk.f32.vlgmr.msra.gmra.mrb[28].mxu0 %vm1051_vm2, %v3177_v8  ;;  %v3404_v8 = vld [vmem:[%s6786_s19 + $0x1a0] sm:$0xff] }
0x15c7   : > { %3696 = vmatprep.mubr.f32.mxu0 %v5495_v6 }
0x1699   : > { %v3250_v10 = vpop.f32.mrb[28].mxu0 }
0x169a   : > { %v5145_v12 = vpop.f32.mrb[29].mxu0  ;;  %5149 = vmatmul.mubr.msk.f32.vlgmr.msra.gmra.mrb[30].mxu1 %vm1051_vm2, %v3250_v10 }
0x169b   : > { %3767 = vmatprep.mubr.f32.mxu1 %v5495_v6  ;;  %5204 = vmatpush1.bf16.msra.mxu1 %v5203_v38  ;;  %v5213_v12 = vpack.c.bf16 %v3405_v0, %v3389_v63  ;;  %v5235_v38 = vpack.c.bf16 %v3378_v29, %v3362_v28  ;;  %v5255_v0 = vpack.c.bf16 %v3414_v62, %v3398_v61  ;;  %v3438_v29 = vld [vmem:[%s6788_s21 + $0xa0] sm:$0xff]  ;;  %v3444_v62 = vld [vmem:[%s6788_s21 + $0xd0] sm:$0xff] }
0x169c   : > { %5206 = vmatprep.subr.bf16.mxu1 %v5205_v45  ;;  %v3381_v45 = vld [vmem:[%s6786_s19 + $0xe8] sm:$0xff] }
0x169d   : > { %v5241_v51 = vpack.c.bf16 %v3381_v45, %v3365_v9  ;;  %v3441_v9 = vld [vmem:[%s6788_s21 + $0xb8] sm:$0xff]  ;;  %v3472_v45 = vld [vmem:[%s6788_s21 + $0x1b0] sm:$0xff] }
0x169f   : > { %5208 = vmatpush1.bf16.msra.mxu1 %v5207_v48  ;;  %v5239_v48 = vpack.c.bf16 %v3410_v44, %v3394_v43  ;;  %v3440_v44 = vld [vmem:[%s6788_s21 + $0xb0] sm:$0xff] }
0x16a0   : > { %5218 = vmatprep.subr.bf16.mxu1 %v5217_v53  ;;  %v3382_v53 = vld [vmem:[%s6786_s19 + $0xf0] sm:$0xff] }
0x176d   : > { %v3323_v15 = vpop.f32.mrb[30].mxu1 }
0x176e   : > { %v3327_v16 = vadd.f32 %v3323_v15, %v3086_v4  ;;  %v5150_v18 = vpop.f32.mrb[31].mxu1  ;;  %v3390_v15 = vld [vmem:[%s6786_s19 + $0x130] sm:$0xff] }
0x176f   : > { %v3377_v18 = vld [vmem:[%s6786_s19 + $0xc8] sm:$0xff] }
0x1770   : > { %v3334_v20 = vadd.f32 %v4711_v13, %v3327_v16  ;;  %v5221_v13 = vpack.c.bf16 %v3407_v23, %v3391_v1  ;;  %v3361_v16 = vld [vmem:[%s6786_s19 + $0x48] sm:$0xff]  ;;  %v3434_v1 = vld [vmem:[%s6788_s21 + $0x80] sm:$0xff] }
0x1771   : > { %v5225_v27 = vpack.c.bf16 %v3377_v18, %v3361_v16  ;;  %v3435_v23 = vld [vmem:[%s6788_s21 + $0x88] sm:$0xff]  ;;  %v3437_v16 = vld [vmem:[%s6788_s21 + $0x98] sm:$0xff]  ;;  %v3468_v18 = vld [vmem:[%s6788_s21 + $0x190] sm:$0xff] }
0x1772   : > { %v6034_v21 = vadd.f32 %v3334_v20, %v5896_v41  ;;  %v5193_v41 = vpack.c.bf16 %v3369_v26, %v3353_v11  ;;  %v3363_v20 = vld [vmem:[%s6786_s19 + $0x58] sm:$0xff]  ;;  %v3360_v11 = vld [vmem:[%s6786_s19 + $0x40] sm:$0xff] }
0x1773   : > { %v3376_v26 = vld [vmem:[%s6786_s19 + $0xc0] sm:$0xff] }
0x1774   : > { %v3336_v22 = vmul.f32 %v6034_v21, %v6034_v21  ;;  %5194 = vmatprep.subr.bf16.mxu0 %v5193_v41  ;;  %v3348_v2 = vmul.f32 %v5893_v39, %v6034_v21  ;;  %v3406_v39 = vld [vmem:[%s6786_s19 + $0x1b0] sm:$0xff]  ;;  %v3379_v21 = vld [vmem:[%s6786_s19 + $0xd8] sm:$0xff]  ;;  %v5227_v36 = vpack.c.bf16 %v3376_v26, %v3360_v11 }
0x1775   : > { %5196 = vmatpush1.bf16.msra.mxu0 %v5195_v34  ;;  %v5233_v41 = vpack.c.bf16 %v3379_v21, %v3363_v20  ;;  %v3395_v34 = vld [vmem:[%s6786_s19 + $0x158] sm:$0xff] }
0x1776   : > { %v3337_v24 = vsel %vm808_vm1, %v3336_v22, 0.0  ;;  %5198 = vmatprep.subr.bf16.mxu0 %v5197_v42  ;;  %v5215_v22 = vpack.c.bf16 %v3404_v8, %v3388_v25  ;;  %v5237_v42 = vpack.c.bf16 %v3411_v35, %v3395_v34  ;;  %v3469_v21 = vld [vmem:[%s6788_s21 + $0x198] sm:$0xff]  ;;  %v5265_v34 = vpack.c.bf16 %v3439_v30, %v3438_v29  ;;  %v3471_v35 = vld [vmem:[%s6788_s21 + $0x1a8] sm:$0xff] }
0x1777   : > { %3338 = vadd.xlane.f32.xlu1 %v3337_v24  ;;  %v5223_v24 = vpack.c.bf16 %v3406_v39, %v3390_v15  ;;  %v3436_v39 = vld [vmem:[%s6788_s21 + $0x90] sm:$0xff]  ;;  %v5293_v11 = vpack.c.bf16 %v3469_v21, %v3468_v18  ;;  %v5297_v33 = vpack.c.bf16 %v3471_v35, %v3470_v32  ;;  %v3430_v18 = vld [vmem:[%s6788_s21 + $0x60] sm:$0xff]  ;;  %v3481_v30 = vld [vmem:[%s6788_s21 + $0x1f8] sm:$0xff] }
0x1778   : > { %v5261_v20 = vpack.c.bf16 %v3437_v16, %v3436_v39  ;;  %v3479_v16 = vld [vmem:[%s6788_s21 + $0x1e8] sm:$0xff]  ;;  %v3432_v32 = vld [vmem:[%s6788_s21 + $0x70] sm:$0xff] }
0x1779   : > { %5200 = vmatpush1.bf16.msra.mxu0 %v5199_v46  ;;  %v3367_v46 = vld [vmem:[%s6786_s19 + $0x78] sm:$0xff] }
0x177a   : > { %5210 = vmatprep.subr.bf16.mxu0 %v5209_v47  ;;  %v5249_v47 = vpack.c.bf16 %v3383_v3, %v3367_v46  ;;  %v5269_v46 = vpack.c.bf16 %v3441_v9, %v3440_v44  ;;  %v3473_v3 = vld [vmem:[%s6788_s21 + $0x1b8] sm:$0xff]  ;;  %v3531_v9 = vld [vmem:[%s6788_s21 + $0x388] sm:$0xff] }
0x1804   : > { %v3339_v37 = vpop.xlane.xlu1 %3338 }
0x1805   : > { %5444 = vrsqrt.f32 %v3339_v37  ;;  %vm3342_vm7 = vcmp.eq.f32.partialorder %v3339_v37, inf  ;;  %v3345_v55 = vand.u32 2147483648, %v3339_v37  ;;  %vm3344_vm8 = vcmp.eq.f32.partialorder %v3339_v37, 0.0 }
0x180f   : > { %v5445_v54 = vpop.eup %5444 }
0x1810   : > { %v3341_v19 = vmul.f32 %v5445_v54, %v3339_v37  ;;  %v3413_v54 = vld [vmem:[%s6786_s19 + $0x1e8] sm:$0xff] }
0x1812   : > { %v3343_v56 = vsel %vm3342_vm7, %v3339_v37, %v3341_v19  ;;  %v3397_v37 = vld [vmem:[%s6786_s19 + $0x168] sm:$0xff]  ;;  %v3399_v19 = vld [vmem:[%s6786_s19 + $0x178] sm:$0xff] }
0x1813   : > { %v3346_v57 = vsel %vm3344_vm8, %v3345_v55, %v3343_v56  ;;  %v3415_v55 = vld [vmem:[%s6786_s19 + $0x1f8] sm:$0xff]  ;;  %v5243_v56 = vpack.c.bf16 %v3380_v50, %v3364_v49  ;;  %v5301_v49 = vpack.c.bf16 %v3473_v3, %v3472_v45 }
0x1814   : > { %v3347_v58 = vmul.f32 0.17677669, %v3346_v57  ;;  %v5251_v57 = vpack.c.bf16 %v3382_v53, %v3366_v52  ;;  %v5253_v17 = vpack.c.bf16 %v3415_v55, %v3399_v19  ;;  %v3442_v53 = vld [vmem:[%s6788_s21 + $0xc0] sm:$0xff]  ;;  %v3475_v55 = vld [vmem:[%s6788_s21 + $0x1c8] sm:$0xff] }
0x1816   : > { %v3349_v59 = vadd.f32 1e-06, %v3347_v58  ;;  %v3396_v58 = vld [vmem:[%s6786_s19 + $0x160] sm:$0xff] }
0x1817   : > { %v5247_v63 = vpack.c.bf16 %v3412_v60, %v3396_v58  ;;  %v3459_v60 = vld [vmem:[%s6788_s21 + $0x148] sm:$0xff] }
0x1818   : > { %5446 = vrcp.f32 %v3349_v59  ;;  %v5245_v59 = vpack.c.bf16 %v3413_v54, %v3397_v37  ;;  %v3443_v37 = vld [vmem:[%s6788_s21 + $0xc8] sm:$0xff]  ;;  %v3474_v54 = vld [vmem:[%s6788_s21 + $0x1c0] sm:$0xff] }
0x1819   : > { %v5273_v19 = vpack.c.bf16 %v3443_v37, %v3442_v53  ;;  %v5305_v58 = vpack.c.bf16 %v3475_v55, %v3474_v54  ;;  %v3417_v37 = vld [vmem:[%s6787_s20 + $0x8] sm:$0xff] }
0x1822   : > { %v5447_v4 = vpop.eup %5446 }
0x1823   : > { %v6131_v10 = vmul.f32 %v5447_v4, %v3348_v2  ;;  %v5257_v2 = vpack.c.bf16 %v3435_v23, %v3434_v1  ;;  %v3467_v4 = vld [vmem:[%s6788_s21 + $0x188] sm:$0xff]  ;;  %v3477_v23 = vld [vmem:[%s6788_s21 + $0x1d8] sm:$0xff] }
0x1825   : > { %4712 = vmatmul.mubr.msk.f32.vlgmr.msra.gmra.mrb[30].mxu0 %vm808_vm1, %v6131_v10  ;;  %4713 = vmatmul.mubr.msk.f32.vlgmr.msra.gmra.mrb[32].mxu1 %vm808_vm1, %v6131_v10 }
0x1826   : > { %5212 = vmatpush1.bf16.msra.mxu0 %v5211_v5  ;;  %5220 = vmatpush1.bf16.msra.mxu1 %v5219_v7  ;;  %v3418_v5 = vld [vmem:[%s6788_s21] sm:$0xff]  ;;  %v3419_v7 = vld [vmem:[%s6788_s21 + $0x8] sm:$0xff] }
0x1827   : > { %5214 = vmatprep.subr.bf16.mxu0 %v5213_v12  ;;  %5222 = vmatprep.subr.bf16.mxu1 %v5221_v13  ;;  %v5259_v8 = vpack.c.bf16 %v3419_v7, %v3418_v5  ;;  %v3450_v12 = vld [vmem:[%s6788_s21 + $0x100] sm:$0xff]  ;;  %v3451_v13 = vld [vmem:[%s6788_s21 + $0x108] sm:$0xff]  ;;  %v3460_v7 = vld [vmem:[%s6788_s21 + $0x150] sm:$0xff] }
0x1828   : > { %3838 = vmatprep.mubr.f32.mxu0 %v5495_v6  ;;  %3909 = vmatprep.mubr.f32.mxu1 %v5495_v6  ;;  %v5291_v15 = vpack.c.bf16 %v3451_v13, %v3450_v12  ;;  %v3446_v12 = vld [vmem:[%s6788_s21 + $0xe0] sm:$0xff]  ;;  %v3447_v13 = vld [vmem:[%s6788_s21 + $0xe8] sm:$0xff] }
0x1829   : > { %v5281_v39 = vpack.c.bf16 %v3447_v13, %v3446_v12 }
0x182a   : > { %5216 = vmatpush1.bf16.msra.mxu0 %v5215_v22  ;;  %5224 = vmatpush1.bf16.msra.mxu1 %v5223_v24  ;;  %v3420_v22 = vld [vmem:[%s6788_s21 + $0x10] sm:$0xff]  ;;  %v3421_v24 = vld [vmem:[%s6788_s21 + $0x18] sm:$0xff] }
0x182b   : > { %5226 = vmatprep.subr.bf16.mxu0 %v5225_v27  ;;  %5234 = vmatprep.subr.bf16.mxu1 %v5233_v41  ;;  %v5263_v26 = vpack.c.bf16 %v3421_v24, %v3420_v22  ;;  %v3452_v27 = vld [vmem:[%s6788_s21 + $0x110] sm:$0xff]  ;;  %v3453_v41 = vld [vmem:[%s6788_s21 + $0x118] sm:$0xff]  ;;  %v3462_v24 = vld [vmem:[%s6788_s21 + $0x160] sm:$0xff] }
0x182c   : > { %v5295_v28 = vpack.c.bf16 %v3453_v41, %v3452_v27  ;;  %v3448_v27 = vld [vmem:[%s6788_s21 + $0xf0] sm:$0xff]  ;;  %v3449_v41 = vld [vmem:[%s6788_s21 + $0xf8] sm:$0xff] }
0x182d   : > { %4714 = vmatmul.mubr.msk.f32.vlgmr.msra.gmra.mrb[32].mxu0 %vm808_vm1, %v6131_v10  ;;  %4715 = vmatmul.mubr.msk.f32.vlgmr.msra.gmra.mrb[34].mxu1 %vm808_vm1, %v6131_v10  ;;  %v5285_v29 = vpack.c.bf16 %v3449_v41, %v3448_v27 }
0x182e   : > { %5228 = vmatpush1.bf16.msra.mxu0 %v5227_v36  ;;  %5236 = vmatpush1.bf16.msra.mxu1 %v5235_v38  ;;  %v3422_v36 = vld [vmem:[%s6788_s21 + $0x20] sm:$0xff]  ;;  %v3423_v38 = vld [vmem:[%s6788_s21 + $0x28] sm:$0xff] }
0x182f   : > { %5230 = vmatprep.subr.bf16.mxu0 %v5229_v31  ;;  %5238 = vmatprep.subr.bf16.mxu1 %v5237_v42  ;;  %v5267_v40 = vpack.c.bf16 %v3423_v38, %v3422_v36  ;;  %v3454_v31 = vld [vmem:[%s6788_s21 + $0x120] sm:$0xff]  ;;  %v3455_v42 = vld [vmem:[%s6788_s21 + $0x128] sm:$0xff]  ;;  %v3464_v38 = vld [vmem:[%s6788_s21 + $0x170] sm:$0xff] }
0x1830   : > { %3980 = vmatprep.mubr.f32.mxu0 %v5495_v6  ;;  %4051 = vmatprep.mubr.f32.mxu1 %v5495_v6  ;;  %v5299_v43 = vpack.c.bf16 %v3455_v42, %v3454_v31  ;;  %v3498_v31 = vld [vmem:[%s6788_s21 + $0x280] sm:$0xff]  ;;  %v3499_v42 = vld [vmem:[%s6788_s21 + $0x288] sm:$0xff] }
0x1831   : > { %v5321_v44 = vpack.c.bf16 %v3499_v42, %v3498_v31 }
0x1832   : > { %5232 = vmatpush1.bf16.msra.mxu0 %v5231_v14  ;;  %5240 = vmatpush1.bf16.msra.mxu1 %v5239_v48  ;;  %v3424_v14 = vld [vmem:[%s6788_s21 + $0x30] sm:$0xff]  ;;  %v3425_v48 = vld [vmem:[%s6788_s21 + $0x38] sm:$0xff] }
0x1833   : > { %5242 = vmatprep.subr.bf16.mxu0 %v5241_v51  ;;  %5250 = vmatprep.subr.bf16.mxu1 %v5249_v47  ;;  %v5271_v50 = vpack.c.bf16 %v3425_v48, %v3424_v14  ;;  %v3456_v51 = vld [vmem:[%s6788_s21 + $0x130] sm:$0xff]  ;;  %v3457_v47 = vld [vmem:[%s6788_s21 + $0x138] sm:$0xff] }
0x1834   : > { %v5303_v52 = vpack.c.bf16 %v3457_v47, %v3456_v51 }
0x1835   : > { %4716 = vmatmul.mubr.msk.f32.vlgmr.msra.gmra.mrb[34].mxu0 %vm808_vm1, %v6131_v10  ;;  %4717 = vmatmul.mubr.msk.f32.vlgmr.msra.gmra.mrb[36].mxu1 %vm808_vm1, %v6131_v10 }
0x1836   : > { %5244 = vmatpush1.bf16.msra.mxu0 %v5243_v56  ;;  %5252 = vmatpush1.bf16.msra.mxu1 %v5251_v57  ;;  %v3426_v56 = vld [vmem:[%s6788_s21 + $0x40] sm:$0xff]  ;;  %v3427_v57 = vld [vmem:[%s6788_s21 + $0x48] sm:$0xff] }
0x1837   : > { %5246 = vmatprep.subr.bf16.mxu0 %v5245_v59  ;;  %5254 = vmatprep.subr.bf16.mxu1 %v5253_v17  ;;  %v5275_v59 = vpack.c.bf16 %v3427_v57, %v3426_v56  ;;  %v3458_v17 = vld [vmem:[%s6788_s21 + $0x140] sm:$0xff] }
0x1838   : > { %4122 = vmatprep.mubr.f32.mxu0 %v5495_v6  ;;  %4193 = vmatprep.mubr.f32.mxu1 %v5495_v6  ;;  %v3466_v6 = vld [vmem:[%s6788_s21 + $0x180] sm:$0xff]  ;;  %v5307_v61 = vpack.c.bf16 %v3459_v60, %v3458_v17 }
0x1839   : > { %v5289_v25 = vpack.c.bf16 %v3467_v4, %v3466_v6  ;;  %v3428_v6 = vld [vmem:[%s6788_s21 + $0x50] sm:$0xff] }
0x183a   : > { %5248 = vmatpush1.bf16.msra.mxu0 %v5247_v63  ;;  %5256 = vmatpush1.bf16.msra.mxu1 %v5255_v0  ;;  %v3445_v63 = vld [vmem:[%s6788_s21 + $0xd8] sm:$0xff]  ;;  %v3476_v0 = vld [vmem:[%s6788_s21 + $0x1d0] sm:$0xff] }
0x183b   : > { %5258 = vmatprep.subr.bf16.mxu0 %v5257_v2  ;;  %5290 = vmatprep.subr.bf16.mxu1 %v5289_v25  ;;  %v5277_v1 = vpack.c.bf16 %v3445_v63, %v3444_v62  ;;  %v3429_v2 = vld [vmem:[%s6788_s21 + $0x58] sm:$0xff]  ;;  %v5309_v4 = vpack.c.bf16 %v3477_v23, %v3476_v0 }
0x183c   : > { %v5279_v5 = vpack.c.bf16 %v3429_v2, %v3428_v6  ;;  %v3461_v25 = vld [vmem:[%s6788_s21 + $0x158] sm:$0xff] }
0x183d   : > { %4718 = vmatmul.mubr.msk.f32.vlgmr.msra.gmra.mrb[36].mxu0 %vm808_vm1, %v6131_v10  ;;  %4719 = vmatmul.mubr.msk.f32.vlgmr.msra.gmra.mrb[38].mxu1 %vm808_vm1, %v6131_v10 }
0x183e   : > { %5260 = vmatpush3.bf16.msra.mxu0 %v5259_v8  ;;  %5292 = vmatpush3.bf16.msra.mxu1 %v5291_v15  ;;  %v5311_v8 = vpack.c.bf16 %v3461_v25, %v3460_v7  ;;  %v3478_v15 = vld [vmem:[%s6788_s21 + $0x1e0] sm:$0xff] }
0x183f   : > { %5262 = vmatprep.subr.bf16.mxu0 %v5261_v20  ;;  %5294 = vmatprep.subr.bf16.mxu1 %v5293_v11  ;;  %v3431_v20 = vld [vmem:[%s6788_s21 + $0x68] sm:$0xff]  ;;  %v5313_v21 = vpack.c.bf16 %v3479_v16, %v3478_v15 }
0x1840   : > { %v5283_v22 = vpack.c.bf16 %v3431_v20, %v3430_v18  ;;  %v3463_v11 = vld [vmem:[%s6788_s21 + $0x168] sm:$0xff] }
0x1842   : > { %5264 = vmatpush3.bf16.msra.mxu0 %v5263_v26  ;;  %5296 = vmatpush3.bf16.msra.mxu1 %v5295_v28  ;;  %v5315_v26 = vpack.c.bf16 %v3463_v11, %v3462_v24  ;;  %v3480_v28 = vld [vmem:[%s6788_s21 + $0x1f0] sm:$0xff] }
0x1843   : > { %5266 = vmatprep.subr.bf16.mxu0 %v5265_v34  ;;  %5298 = vmatprep.subr.bf16.mxu1 %v5297_v33  ;;  %v3433_v34 = vld [vmem:[%s6788_s21 + $0x78] sm:$0xff]  ;;  %v5317_v35 = vpack.c.bf16 %v3481_v30, %v3480_v28 }
0x1844   : > { %v5287_v36 = vpack.c.bf16 %v3433_v34, %v3432_v32  ;;  %v3465_v33 = vld [vmem:[%s6788_s21 + $0x178] sm:$0xff] }
0x1846   : > { %5268 = vmatpush3.bf16.msra.mxu0 %v5267_v40  ;;  %5300 = vmatpush3.bf16.msra.mxu1 %v5299_v43  ;;  %v5319_v40 = vpack.c.bf16 %v3465_v33, %v3464_v38  ;;  %v3530_v43 = vld [vmem:[%s6788_s21 + $0x380] sm:$0xff] }
0x1847   : > { %5270 = vmatprep.subr.bf16.mxu0 %v5269_v46  ;;  %5302 = vmatprep.subr.bf16.mxu1 %v5301_v49  ;;  %v5353_v45 = vpack.c.bf16 %v3531_v9, %v3530_v43  ;;  %v3549_v49 = vlaneseq  ;;  %v3416_v43 = vld [vmem:[%s6787_s20] sm:$0xff] }
0x184a   : > { %5272 = vmatpush3.bf16.msra.mxu0 %v5271_v50  ;;  %5304 = vmatpush3.bf16.msra.mxu1 %v5303_v52  ;;  %v6469_v50 = vshrl.u32 %v3549_v49, 7 }
0x184b   : > { %5274 = vmatprep.subr.bf16.mxu0 %v5273_v19  ;;  %5306 = vmatprep.subr.bf16.mxu1 %v5305_v58 }
0x184c   : > { %v3551_v54 = vsub.s32 0, %v6469_v50  ;;  %v3559_v19 = vsub.s32 2, %v6469_v50  ;;  %v3555_v55 = vsub.s32 1, %v6469_v50  ;;  %v3563_v56 = vsub.s32 3, %v6469_v50 }
0x184d   : > { %v3567_v2 = vsub.s32 4, %v6469_v50  ;;  %v3571_v25 = vsub.s32 5, %v6469_v50 }
0x184e   : > { %5276 = vmatpush3.bf16.msra.mxu0 %v5275_v59  ;;  %5308 = vmatpush3.bf16.msra.mxu1 %v5307_v61  ;;  %v3584_v57 = vrot.slane %v3417_v37, %v3551_v54  ;;  %v3592_v58 = vrot.slane %v3417_v37, %v3559_v19  ;;  %v3588_v59 = vrot.slane %v3417_v37, %v3555_v55 }
0x184f   : > { %5278 = vmatprep.subr.bf16.mxu0 %v5277_v1  ;;  %5310 = vmatprep.subr.bf16.mxu1 %v5309_v4  ;;  %v3596_v17 = vrot.slane %v3417_v37, %v3563_v56  ;;  %v3575_v4 = vsub.s32 6, %v6469_v50  ;;  %v3600_v15 = vrot.slane %v3417_v37, %v3567_v2  ;;  %v3604_v16 = vrot.slane %v3417_v37, %v3571_v25 }
0x1852   : > { %5280 = vmatpush3.bf16.msra.mxu0 %v5279_v5  ;;  %5312 = vmatpush3.bf16.msra.mxu1 %v5311_v8  ;;  %v3579_v8 = vsub.s32 7, %v6469_v50 }
0x1853   : > { %5282 = vmatprep.subr.bf16.mxu0 %v5281_v39  ;;  %5314 = vmatprep.subr.bf16.mxu1 %v5313_v21  ;;  %v3608_v39 = vrot.slane %v3417_v37, %v3575_v4 }
0x1854   : > { %v3612_v18 = vrot.slane %v3417_v37, %v3579_v8  ;;  %v3552_v37 = vrot.slane %v3416_v43, %v3551_v54 }
0x1856   : > { %5284 = vmatpush3.bf16.msra.mxu0 %v5283_v22  ;;  %5316 = vmatpush3.bf16.msra.mxu1 %v5315_v26 }
0x1857   : > { %5286 = vmatprep.subr.bf16.mxu0 %v5285_v29  ;;  %5318 = vmatprep.subr.bf16.mxu1 %v5317_v35 }
0x185a   : > { %5288 = vmatpush3.bf16.msra.mxu0 %v5287_v36  ;;  %5320 = vmatpush3.bf16.msra.mxu1 %v5319_v40 }
0x185b   : > { %5322 = vmatprep.subr.bf16.mxu0 %v5321_v44  ;;  %5354 = vmatprep.subr.bf16.mxu1 %v5353_v45 }
0x18f8   : > { %v6461_v46 = vpop.f32.mrb[30].mxu0  ;;  %v6463_v3 = vpop.f32.mrb[32].mxu1 }
0x18f9   : > { %v6465_v14 = vpop.f32.mrb[31].mxu0  ;;  %v6467_v48 = vpop.f32.mrb[33].mxu1  ;;  %v3699_v54 = vadd.f32 %v6461_v46, %v3552_v37  ;;  %v3514_v46 = vld [vmem:[%s6788_s21 + $0x300] sm:$0xff] }
0x1900   : > { %v6471_v51 = vpop.f32.mrb[32].mxu0  ;;  %v6473_v47 = vpop.f32.mrb[34].mxu1 }
0x1901   : > { %v6475_v52 = vpop.f32.mrb[33].mxu0  ;;  %v6477_v53 = vpop.f32.mrb[35].mxu1 }
0x1908   : > { %v3982_v60 = vpop.f32.mrb[34].mxu0  ;;  %v4053_v61 = vpop.f32.mrb[36].mxu1 }
0x1909   : > { %v6494_v62 = vadd.f32 %v3982_v60, %v3584_v57  ;;  %v6496_v63 = vadd.f32 %v4053_v61, %v3592_v58  ;;  %v3984_v0 = vpop.f32.mrb[35].mxu0  ;;  %v4055_v1 = vpop.f32.mrb[37].mxu1  ;;  %v3556_v60 = vrot.slane %v3416_v43, %v3555_v55  ;;  %v3482_v55 = vld [vmem:[%s6788_s21 + $0x200] sm:$0xff] }
0x190a   : > { %v6498_v23 = vadd.f32 %v3984_v0, %v3588_v59  ;;  %v6500_v6 = vadd.f32 %v4055_v1, %v3596_v17  ;;  %v3560_v59 = vrot.slane %v3416_v43, %v3559_v19  ;;  %v3564_v1 = vrot.slane %v3416_v43, %v3563_v56  ;;  %v3483_v56 = vld [vmem:[%s6788_s21 + $0x208] sm:$0xff] }
0x190b   : > { %v4720_v5 = vmul.f32 -1.442695, %v6494_v62  ;;  %v4722_v7 = vmul.f32 -1.442695, %v6496_v63 }
0x190c   : > { %v4721_v12 = vmul.f32 -1.442695, %v6498_v23  ;;  %v4723_v13 = vmul.f32 -1.442695, %v6500_v6  ;;  %v3770_v19 = vadd.f32 %v6463_v3, %v3560_v59  ;;  %v3486_v59 = vld [vmem:[%s6788_s21 + $0x220] sm:$0xff] }
0x190d   : > { %5448 = vpow2.f32 %v4720_v5 }
0x190e   : > { %5450 = vpow2.f32 %v4722_v7 }
0x190f   : > { %5452 = vpow2.f32 %v4721_v12 }
0x1910   : > { %5454 = vpow2.f32 %v4723_v13  ;;  %v4124_v20 = vpop.f32.mrb[36].mxu0  ;;  %v4195_v21 = vpop.f32.mrb[38].mxu1 }
0x1911   : > { %v6518_v22 = vadd.f32 %v4124_v20, %v3600_v15  ;;  %v6520_v24 = vadd.f32 %v4195_v21, %v3608_v39  ;;  %v4126_v11 = vpop.f32.mrb[37].mxu0  ;;  %v4197_v26 = vpop.f32.mrb[39].mxu1  ;;  %v3772_v20 = vadd.f32 %v6467_v48, %v3564_v1  ;;  %v3484_v48 = vld [vmem:[%s6788_s21 + $0x210] sm:$0xff] }
0x1912   : > { %v6522_v27 = vadd.f32 %v4126_v11, %v3604_v16  ;;  %v6524_v41 = vadd.f32 %v4197_v26, %v3612_v18  ;;  %v3500_v16 = vld [vmem:[%s6788_s21 + $0x290] sm:$0xff]  ;;  %v3501_v18 = vld [vmem:[%s6788_s21 + $0x298] sm:$0xff]  ;;  %v3568_v26 = vrot.slane %v3416_v43, %v3567_v2 }
0x1913   : > { %v4724_v28 = vmul.f32 -1.442695, %v6518_v22  ;;  %v4726_v29 = vmul.f32 -1.442695, %v6520_v24  ;;  %v3533_v11 = vld [vmem:[%s6788_s21 + $0x398] sm:$0xff]  ;;  %v3516_v2 = vld [vmem:[%s6788_s21 + $0x310] sm:$0xff] }
0x1914   : > { %v4725_v30 = vmul.f32 -1.442695, %v6522_v27  ;;  %v4727_v32 = vmul.f32 -1.442695, %v6524_v41  ;;  %v3504_v1 = vld [vmem:[%s6788_s21 + $0x2b0] sm:$0xff] }
0x1915   : > { %5456 = vpow2.f32 %v4724_v28 }
0x1916   : > { %5458 = vpow2.f32 %v4726_v29  ;;  %v5323_v29 = vpack.c.bf16 %v3483_v56, %v3482_v55 }
0x1917   : > { %v5449_v34 = vpop.eup %5448  ;;  %5460 = vpow2.f32 %v4725_v30  ;;  %v3576_v30 = vrot.slane %v3416_v43, %v3575_v4  ;;  %v3502_v4 = vld [vmem:[%s6788_s21 + $0x2a0] sm:$0xff] }
0x1918   : > { %v5451_v35 = vpop.eup %5450  ;;  %v4224_v36 = vadd.f32 1.0, %v5449_v34  ;;  %5462 = vpow2.f32 %v4727_v32 }
0x1919   : > { %v5453_v38 = vpop.eup %5452  ;;  %v4226_v33 = vadd.f32 1.0, %v5451_v35  ;;  %v5325_v35 = vpack.c.bf16 %v3501_v18, %v3500_v16  ;;  %v3538_v16 = vld [vmem:[%s6788_s21 + $0x3c0] sm:$0xff]  ;;  %v3539_v18 = vld [vmem:[%s6788_s21 + $0x3c8] sm:$0xff] }
0x191a   : > { %v5455_v40 = vpop.eup %5454  ;;  %5464 = vrcp.f32 %v4224_v36  ;;  %v4225_v31 = vadd.f32 1.0, %v5453_v38  ;;  %v3517_v36 = vld [vmem:[%s6788_s21 + $0x318] sm:$0xff]  ;;  %v3572_v38 = vrot.slane %v3416_v43, %v3571_v25  ;;  %v3534_v25 = vld [vmem:[%s6788_s21 + $0x3a0] sm:$0xff] }
0x191b   : > { %5466 = vrcp.f32 %v4226_v33  ;;  %v4227_v42 = vadd.f32 1.0, %v5455_v40  ;;  %v3503_v40 = vld [vmem:[%s6788_s21 + $0x2a8] sm:$0xff]  ;;  %v5359_v50 = vpack.c.bf16 %v3517_v36, %v3516_v2  ;;  %v3492_v36 = vld [vmem:[%s6788_s21 + $0x250] sm:$0xff] }
0x191c   : > { %5468 = vrcp.f32 %v4225_v31 }
0x191d   : > { %5470 = vrcp.f32 %v4227_v42  ;;  %v3580_v42 = vrot.slane %v3416_v43, %v3579_v8  ;;  %v3912_v43 = vadd.f32 %v6473_v47, %v3576_v30  ;;  %v3843_v47 = vadd.f32 %v6475_v52, %v3572_v38  ;;  %v3540_v30 = vld [vmem:[%s6788_s21 + $0x3d0] sm:$0xff]  ;;  %v3493_v38 = vld [vmem:[%s6788_s21 + $0x258] sm:$0xff] }
0x191f   : > { %v5457_v44 = vpop.eup %5456  ;;  %v3914_v52 = vadd.f32 %v6477_v53, %v3580_v42  ;;  %v3511_v42 = vld [vmem:[%s6788_s21 + $0x2e8] sm:$0xff] }
0x1920   : > { %v5459_v9 = vpop.eup %5458  ;;  %v4228_v45 = vadd.f32 1.0, %v5457_v44 }
0x1921   : > { %v5461_v49 = vpop.eup %5460  ;;  %v4230_v57 = vadd.f32 1.0, %v5459_v9  ;;  %v3535_v9 = vld [vmem:[%s6788_s21 + $0x3a8] sm:$0xff] }
0x1922   : > { %v5463_v58 = vpop.eup %5462  ;;  %5472 = vrcp.f32 %v4228_v45  ;;  %v4229_v17 = vadd.f32 1.0, %v5461_v49  ;;  %v3841_v49 = vadd.f32 %v6471_v51, %v3568_v26  ;;  %v3487_v51 = vld [vmem:[%s6788_s21 + $0x228] sm:$0xff]  ;;  %v3522_v26 = vld [vmem:[%s6788_s21 + $0x340] sm:$0xff] }
0x1923   : > { %5474 = vrcp.f32 %v4230_v57  ;;  %v4231_v61 = vadd.f32 1.0, %v5463_v58  ;;  %v5329_v58 = vpack.c.bf16 %v3503_v40, %v3502_v4  ;;  %v3525_v40 = vld [vmem:[%s6788_s21 + $0x358] sm:$0xff] }
0x1924   : > { %v5465_v0 = vpop.eup %5464  ;;  %5476 = vrcp.f32 %v4229_v17 }
0x1925   : > { %v5467_v5 = vpop.eup %5466  ;;  %v4248_v7 = vmul.f32 %v5465_v0, %v6494_v62  ;;  %5478 = vrcp.f32 %v4231_v61  ;;  %v3701_v62 = vadd.f32 %v6465_v14, %v3556_v60  ;;  %v5361_v61 = vpack.c.bf16 %v3535_v9, %v3534_v25  ;;  %v3519_v0 = vld [vmem:[%s6788_s21 + $0x328] sm:$0xff] }
0x1926   : > { %v5469_v12 = vpop.eup %5468  ;;  %v4250_v13 = vmul.f32 %v5467_v5, %v6496_v63  ;;  %v3515_v63 = vld [vmem:[%s6788_s21 + $0x308] sm:$0xff]  ;;  %v3505_v5 = vld [vmem:[%s6788_s21 + $0x2b8] sm:$0xff]  ;;  %v5343_v9 = vpack.c.bf16 %v3493_v38, %v3492_v36 }
0x1927   : > { %v5471_v15 = vpop.eup %5470  ;;  %v4256_v39 = vmul.f32 %v4248_v7, %v3699_v54  ;;  %v4249_v3 = vmul.f32 %v5469_v12, %v6498_v23  ;;  %v3532_v23 = vld [vmem:[%s6788_s21 + $0x390] sm:$0xff]  ;;  %v5355_v34 = vpack.c.bf16 %v3515_v63, %v3514_v46  ;;  %v3537_v12 = vld [vmem:[%s6788_s21 + $0x3b8] sm:$0xff]  ;;  %v5333_v53 = vpack.c.bf16 %v3505_v5, %v3504_v1  ;;  %v3507_v63 = vld [vmem:[%s6788_s21 + $0x2c8] sm:$0xff] }
0x1928   : > { %v4258_v21 = vmul.f32 %v4250_v13, %v3770_v19  ;;  %v4251_v14 = vmul.f32 %v5471_v15, %v6500_v6  ;;  %v3485_v6 = vld [vmem:[%s6788_s21 + $0x218] sm:$0xff]  ;;  %v5357_v33 = vpack.c.bf16 %v3533_v11, %v3532_v23  ;;  %v3536_v7 = vld [vmem:[%s6788_s21 + $0x3b0] sm:$0xff]  ;;  %v5331_v13 = vpack.c.bf16 %v3487_v51, %v3486_v59  ;;  %v3490_v23 = vld [vmem:[%s6788_s21 + $0x240] sm:$0xff] }
0x1929   : > { %v4257_v28 = vmul.f32 %v4249_v3, %v3701_v62  ;;  %v5327_v44 = vpack.c.bf16 %v3485_v6, %v3484_v48  ;;  %v3489_v46 = vld [vmem:[%s6788_s21 + $0x238] sm:$0xff]  ;;  %v3520_v15 = vld [vmem:[%s6788_s21 + $0x330] sm:$0xff]  ;;  %v5365_v62 = vpack.c.bf16 %v3537_v12, %v3536_v7  ;;  %v3506_v3 = vld [vmem:[%s6788_s21 + $0x2c0] sm:$0xff] }
0x192a   : > { %v4259_v32 = vmul.f32 %v4251_v14, %v3772_v20  ;;  %v5337_v14 = vpack.c.bf16 %v3507_v63, %v3506_v3  ;;  %v3491_v11 = vld [vmem:[%s6788_s21 + $0x248] sm:$0xff]  ;;  %v3508_v48 = vld [vmem:[%s6788_s21 + $0x2d0] sm:$0xff]  ;;  %v3509_v6 = vld [vmem:[%s6788_s21 + $0x2d8] sm:$0xff] }
0x192b   : > { %4334 = vmatprep.mubr.f32.mxu0 %v4257_v28  ;;  %v5369_v28 = vpack.c.bf16 %v3539_v18, %v3538_v16  ;;  %v5341_v2 = vpack.c.bf16 %v3509_v6, %v3508_v48  ;;  %v3543_v25 = vld [vmem:[%s6788_s21 + $0x3e8] sm:$0xff]  ;;  %v3513_v59 = vld [vmem:[%s6788_s21 + $0x2f8] sm:$0xff]  ;;  %v3544_v51 = vld [vmem:[%s6788_s21 + $0x3f0] sm:$0xff] }
0x192c   : > { %v5473_v31 = vpop.eup %5472  ;;  %4404 = vmatprep.mubr.f32.mxu1 %v4259_v32  ;;  %4335 = vmatmul.mubr.f32.vlgmr.msra.gmra.mrb[38].mxu0 %v4256_v39  ;;  %v3521_v39 = vld [vmem:[%s6788_s21 + $0x338] sm:$0xff]  ;;  %v3528_v5 = vld [vmem:[%s6788_s21 + $0x370] sm:$0xff] }
0x192d   : > { %v5475_v45 = vpop.eup %5474  ;;  %v4252_v37 = vmul.f32 %v5473_v31, %v6518_v22  ;;  %4405 = vmatmul.mubr.f32.vlgmr.msra.gmra.mrb[40].mxu1 %v4258_v21  ;;  %5324 = vmatpush3.bf16.msra.mxu0 %v5323_v29  ;;  %v3518_v22 = vld [vmem:[%s6788_s21 + $0x320] sm:$0xff]  ;;  %v5367_v21 = vpack.c.bf16 %v3521_v39, %v3520_v15  ;;  %v3523_v29 = vld [vmem:[%s6788_s21 + $0x348] sm:$0xff]  ;;  %v3541_v32 = vld [vmem:[%s6788_s21 + $0x3d8] sm:$0xff] }
0x192e   : > { %v5477_v8 = vpop.eup %5476  ;;  %v4254_v57 = vmul.f32 %v5475_v45, %v6520_v24  ;;  %5356 = vmatpush3.bf16.msra.mxu1 %v5355_v34  ;;  %5326 = vmatprep.subr.bf16.mxu0 %v5325_v35  ;;  %v5363_v56 = vpack.c.bf16 %v3519_v0, %v3518_v22  ;;  %v5339_v34 = vpack.c.bf16 %v3491_v11, %v3490_v23  ;;  %v3510_v31 = vld [vmem:[%s6788_s21 + $0x2e0] sm:$0xff]  ;;  %v3545_v22 = vld [vmem:[%s6788_s21 + $0x3f8] sm:$0xff] }
0x192f   : > { %v5479_v17 = vpop.eup %5478  ;;  %v6619_v60 = vmul.f32 %v4252_v37, %v3841_v49  ;;  %v4253_v24 = vmul.f32 %v5477_v8, %v6522_v27  ;;  %5358 = vmatprep.subr.bf16.mxu1 %v5357_v33  ;;  %v5371_v35 = vpack.c.bf16 %v3523_v29, %v3522_v26  ;;  %v3524_v33 = vld [vmem:[%s6788_s21 + $0x350] sm:$0xff]  ;;  %v5373_v4 = vpack.c.bf16 %v3541_v32, %v3540_v30  ;;  %v3494_v37 = vld [vmem:[%s6788_s21 + $0x260] sm:$0xff]  ;;  %v3497_v0 = vld [vmem:[%s6788_s21 + $0x278] sm:$0xff] }
0x1930   : > { %v6632_v54 = vmul.f32 %v4254_v57, %v3912_v43  ;;  %v4255_v27 = vmul.f32 %v5479_v17, %v6524_v41  ;;  %v3488_v41 = vld [vmem:[%s6788_s21 + $0x230] sm:$0xff]  ;;  %v5375_v45 = vpack.c.bf16 %v3525_v40, %v3524_v33  ;;  %v5345_v49 = vpack.c.bf16 %v3511_v42, %v3510_v31  ;;  %v3526_v8 = vld [vmem:[%s6788_s21 + $0x360] sm:$0xff]  ;;  %v3527_v57 = vld [vmem:[%s6788_s21 + $0x368] sm:$0xff] }
0x1931   : > { %5328 = vmatpush3.bf16.msra.mxu0 %v5327_v44  ;;  %v4261_v19 = vmul.f32 %v4253_v24, %v3843_v47  ;;  %v5335_v20 = vpack.c.bf16 %v3489_v46, %v3488_v41  ;;  %v3542_v44 = vld [vmem:[%s6788_s21 + $0x3e0] sm:$0xff]  ;;  %v5379_v47 = vpack.c.bf16 %v3527_v57, %v3526_v8  ;;  %v5381_v1 = vpack.c.bf16 %v3545_v22, %v3544_v51 }
0x1932   : > { %5360 = vmatpush3.bf16.msra.mxu1 %v5359_v50  ;;  %5330 = vmatprep.subr.bf16.mxu0 %v5329_v58  ;;  %v4263_v55 = vmul.f32 %v4255_v27, %v3914_v52  ;;  %v3495_v50 = vld [vmem:[%s6788_s21 + $0x268] sm:$0xff]  ;;  %v5377_v43 = vpack.c.bf16 %v3543_v25, %v3542_v44  ;;  %v3512_v58 = vld [vmem:[%s6788_s21 + $0x2f0] sm:$0xff]  ;;  %v3529_v52 = vld [vmem:[%s6788_s21 + $0x378] sm:$0xff] }
0x1933   : > { %4474 = vmatprep.mubr.f32.mxu0 %v4261_v19  ;;  %5362 = vmatprep.subr.bf16.mxu1 %v5361_v61  ;;  %v5347_v17 = vpack.c.bf16 %v3495_v50, %v3494_v37  ;;  %v5349_v24 = vpack.c.bf16 %v3513_v59, %v3512_v58  ;;  %v3496_v61 = vld [vmem:[%s6788_s21 + $0x270] sm:$0xff]  ;;  %v5383_v7 = vpack.c.bf16 %v3529_v52, %v3528_v5 }
0x1934   : > { %4544 = vmatprep.mubr.f32.mxu1 %v4263_v55  ;;  %v5351_v27 = vpack.c.bf16 %v3497_v0, %v3496_v61 }
0x1935   : > { %5332 = vmatpush3.bf16.msra.mxu0 %v5331_v13  ;;  %v4728_v13 = vld [vmem:[%s6789_s22] ss:$0 sm:$0xff] }
0x1936   : > { %5364 = vmatpush3.bf16.msra.mxu1 %v5363_v56  ;;  %5334 = vmatprep.subr.bf16.mxu0 %v5333_v53 }
0x1937   : > { %5366 = vmatprep.subr.bf16.mxu1 %v5365_v62 }
0x1939   : > { %5336 = vmatpush3.bf16.msra.mxu0 %v5335_v20 }
0x193a   : > { %5368 = vmatpush3.bf16.msra.mxu1 %v5367_v21  ;;  %5338 = vmatprep.subr.bf16.mxu0 %v5337_v14 }
0x193b   : > { %5370 = vmatprep.subr.bf16.mxu1 %v5369_v28 }
0x193d   : > { %5340 = vmatpush3.bf16.msra.mxu0 %v5339_v34 }
0x193e   : > { %5372 = vmatpush3.bf16.msra.mxu1 %v5371_v35  ;;  %5342 = vmatprep.subr.bf16.mxu0 %v5341_v2 }
0x193f   : > { %5374 = vmatprep.subr.bf16.mxu1 %v5373_v4 }
0x1941   : > { %5344 = vmatpush3.bf16.msra.mxu0 %v5343_v9 }
0x1942   : > { %5376 = vmatpush3.bf16.msra.mxu1 %v5375_v45  ;;  %5346 = vmatprep.subr.bf16.mxu0 %v5345_v49 }
0x1943   : > { %5378 = vmatprep.subr.bf16.mxu1 %v5377_v43 }
0x1945   : > { %5348 = vmatpush3.bf16.msra.mxu0 %v5347_v17 }
0x1946   : > { %5380 = vmatpush3.bf16.msra.mxu1 %v5379_v47  ;;  %5350 = vmatprep.subr.bf16.mxu0 %v5349_v24 }
0x1947   : > { %5382 = vmatprep.subr.bf16.mxu1 %v5381_v1 }
0x1949   : > { %5352 = vmatpush3.bf16.msra.mxu0 %v5351_v27 }
0x194a   : > { %5384 = vmatpush3.bf16.msra.mxu1 %v5383_v7 }
0x194c   : > { %4475 = vmatmul.mubr.f32.vlgmr.msra.gmra.mrb[40].mxu0 %v6619_v60 }
0x194d   : > { %4545 = vmatmul.mubr.f32.vlgmr.msra.gmra.mrb[42].mxu1 %v6632_v54 }
0x19ff   : > { %v4846_v12 = vpop.f32.mrb[38].mxu0 }
0x1a00   : > { %v4881_v19 = vpop.f32.mrb[40].mxu1  ;;  %v4847_v55 = vpop.f32.mrb[39].mxu0 }
0x1a01   : > { %v4848_v56 = vadd.f32 %v4847_v55, %v4846_v12  ;;  %v4882_v53 = vpop.f32.mrb[41].mxu1 }
0x1a02   : > { %v4883_v41 = vadd.f32 %v4882_v53, %v4881_v19 }
0x1a03   : > { %v4337_v46 = vadd.f32 %v4848_v56, %v4728_v13 }
0x1a05   : > { %v4407_v15 = vadd.f32 %v4883_v41, %v4337_v46 }
0x1a1f   : > { %v4916_v62 = vpop.f32.mrb[40].mxu0 }
0x1a20   : > { %v4951_v39 = vpop.f32.mrb[42].mxu1  ;;  %v4917_v3 = vpop.f32.mrb[41].mxu0 }
0x1a21   : > { %v4918_v63 = vadd.f32 %v4917_v3, %v4916_v62  ;;  %v4952_v16 = vpop.f32.mrb[43].mxu1 }
0x1a22   : > { %v4953_v60 = vadd.f32 %v4952_v16, %v4951_v39 }
0x1a23   : > { %v4477_v18 = vadd.f32 %v4918_v63, %v4407_v15 }
0x1a25   : > { %v4547_v54 = vadd.f32 %v4953_v60, %v4477_v18 }
0x1a27   : > { %v4550_v20 = vadd.f32 %v4547_v54, %v6131_v10  ;;  %v5484_v10 = vld [vmem:[%s6790_s23] ss:$0 sm:$0xff] }
0x1a29   : > { %v4551_v21 = vmul.f32 %v4550_v20, %v4550_v20  ;;  %v4563_v32 = vmul.f32 %v5484_v10, %v4550_v20 }
0x1a2b   : > { %v4552_v14 = vsel %vm808_vm1, %v4551_v21, 0.0 }
0x1a2c   : > { %4553 = vadd.xlane.f32.xlu1 %v4552_v14 }
0x1ab9   : > { %v4554_v23 = vpop.xlane.xlu1 %4553 }
0x1aba   : > { %5480 = vrsqrt.f32 %v4554_v23  ;;  %vm4557_vm9 = vcmp.eq.f32.partialorder %v4554_v23, inf  ;;  %v4560_v28 = vand.u32 2147483648, %v4554_v23  ;;  %vm4559_vm10 = vcmp.eq.f32.partialorder %v4554_v23, 0.0 }
0x1ac4   : > { %v5481_v11 = vpop.eup %5480 }
0x1ac5   : > { %v4556_v26 = vmul.f32 %v5481_v11, %v4554_v23 }
0x1ac7   : > { %v4558_v29 = vsel %vm4557_vm9, %v4554_v23, %v4556_v26 }
0x1ac8   : > { %v4561_v48 = vsel %vm4559_vm10, %v4560_v28, %v4558_v29 }
0x1ac9   : > { %v4562_v6 = vmul.f32 0.17677669, %v4561_v48 }
0x1acb   : > { %v4564_v30 = vadd.f32 1e-06, %v4562_v6 }
0x1acd   : > { %5482 = vrcp.f32 %v4564_v30 }
0x1ad7   : > { %v5483_v34 = vpop.eup %5482 }
0x1ad8   : > { %v4566_v35 = vmul.f32 %v5483_v34, %v4563_v32 }
0x1ada   : > { %4567 = vst.msk [vmem:[%s783_s0] sm:$0xff] %vm808_vm1, %v4566_v35 }
0x1adb PF: > { %s34_s5 = sadd.s32 1, %s5491_s5  }
0x1adc   : > { %p31_p4 = scmp.ge.s32.totalorder %s34_s5, 4  }
0x1ade   :  { %33 = sbr.rel (!%p31_p4) target bundleno = 10 (0xa), region = 155 }

// kernel: transformer_forward.5
= control target key start
LH: loop header
LB: loop body
LE: loop exit
PB: predicated region body
PF: predicated region fallthrough
CT: control target
= control target key end

     0   :  { %s3724_s29 = smov 0   ;;  %s4633_s0 = inlined_call_operand.vmem [shape: f32[2,8,32], index: 0, kind: input, shape index: {}]   ;;  %s4634_s1 = inlined_call_operand.vmem [shape: f32[2,8,8], index: 1, kind: input, shape index: {}]   ;;  %s4635_s2 = inlined_call_operand.vmem [shape: f32[8,32], index: 2, kind: input, shape index: {}]   ;;  %s4636_s3 = inlined_call_operand.vmem [shape: f32[8,32], index: 3, kind: input, shape index: {}]   ;;  %s4637_s4 = inlined_call_operand.vmem [shape: f32[32,32], index: 4, kind: input, shape index: {}]   ;;  %s4638_s5 = inlined_call_operand.vmem [shape: f32[32,96], index: 5, kind: input, shape index: {}]   ;;  %s4639_s6 = inlined_call_operand.vmem [shape: f32[1,96], index: 6, kind: input, shape index: {}]   ;;  %s4640_s7 = inlined_call_operand.vmem [shape: f32[32,32], index: 7, kind: input, shape index: {}]   ;;  %s4641_s8 = inlined_call_operand.vmem [shape: f32[1,32], index: 8, kind: input, shape index: {}]   ;;  %s4642_s9 = inlined_call_operand.vmem [shape: f32[32,2048], index: 9, kind: input, shape index: {}]   ;;  %s4643_s10 = inlined_call_operand.vmem [shape: f32[1,2048], index: 10, kind: input, shape index: {}]   ;;  %s4644_s11 = inlined_call_operand.vmem [shape: f32[1024,32], index: 11, kind: input, shape index: {}]   ;;  %s4645_s12 = inlined_call_operand.vmem [shape: f32[1,32], index: 12, kind: input, shape index: {}]   ;;  %s4646_s13 = inlined_call_operand.vmem [shape: f32[1,32], index: 13, kind: input, shape index: {}]   ;;  %s4647_s14 = inlined_call_operand.vmem [shape: f32[2,8,32], index: 14, kind: output, shape index: {}]  }
   0x1 LB: > { %s3015_s30 = sadd.s32 4294967295, %s3632_s29   ;;  %p3019_p0 = scmp.ge.s32.totalorder %s3632_s29, 1  ;;  %s3632_s29 = sphi %s3724_s29, %s24_s29  }
   0x2   : > { %p420_p1 = scmp.lt.s32.totalorder %s3632_s29, 3 }
   0x4   : > { %p421_p2 = pnand %p3019_p0, %p420_p1 }
   0x5   : > { %v489_v0 = vld [vmem:[%s4638_s5] sm:$0xff] (!%p421_p2)  ;;  %v490_v1 = vld [vmem:[%s4638_s5 + $0x8] sm:$0xff] (!%p421_p2)  ;;  %v491_v2 = vld [vmem:[%s4638_s5 + $0x10] sm:$0xff] (!%p421_p2)  ;;  %v3634_v3 = vmov (!%p421_p2), 0.0|0.0   ;;  %vm3635_vm0 = vmmov (!%p421_p2), 0   ;;  %v3636_v6 = vmov (!%p421_p2), 0.0  }
   0x6   : > { %424 = sbr.rel (%p421_p2) target bundleno = 3907 (0xf43), region = 76  ;;  %3336 = vmatprep.subr.bf16.mxu0 (!%p421_p2), %v3634_v3  ;;  %v3337_v4 = vpack.c.bf16 (!%p421_p2), %v490_v1, %v489_v0  ;;  %v492_v5 = vld [vmem:[%s4638_s5 + $0x18] sm:$0xff] (!%p421_p2)  ;;  %3251 = vmatprep.mubr.msk.f32.mxu0 (!%p421_p2), %vm3635_vm0, %v3636_v6  ;;  %p468_p3 = scmp.lt.s32.totalorder (!%p421_p2), %s3015_s30, 1  ;;  %v484_v7 = vld [vmem:[%s4637_s4] sm:$0xff] (!%p421_p2)  ;;  %v485_v8 = vld [vmem:[%s4637_s4 + $0x8] sm:$0xff] (!%p421_p2)  ;;  %vm500_vm1 = vcmask (!%p421_p2), 261120  }
   0x7   : > { %3342 = vmatprep.subr.bf16.mxu1 (!%p421_p2), %v3634_v3  ;;  %v3343_v9 = vpack.c.bf16 (!%p421_p2), %v485_v8, %v484_v7  ;;  %3262 = vmatprep.mubr.msk.f32.mxu1 (!%p421_p2), %vm3635_vm0, %v3636_v6  ;;  %v3340_v10 = vpack.c.bf16 (!%p421_p2), %v492_v5, %v491_v2  ;;  %v486_v12 = vld [vmem:[%s4637_s4 + $0x10] sm:$0xff] (!%p421_p2)  ;;  %v487_v13 = vld [vmem:[%s4637_s4 + $0x18] sm:$0xff] (!%p421_p2)  ;;  %v3023_v15 = vld [vmem:[%s4639_s6] ss:$0 sm:$0xff] (!%p421_p2)  ;;  %s3637_s22 = smov (!%p421_p2), 96   ;;  %s3638_s25 = smov (!%p421_p2), 32  }
   0x8   : > { %3338 = vmatpush3.bf16.msra.mxu0 (!%p421_p2), %v3337_v4  ;;  %v3346_v14 = vpack.c.bf16 (!%p421_p2), %v487_v13, %v486_v12  ;;  %v482_v19 = vld [vmem:[%s4635_s2] sm:$0xff] (!%p421_p2)  ;;  %s3639_s15 = smov (!%p421_p2), 88   ;;  %vm743_vm2 = vcmask (!%p421_p2), 64512   ;;  %s3641_s19 = smov (!%p421_p2), 64   ;;  %v575_v59 = vld [vmem:[%s4640_s7 + $0x8] sm:$0xff] (!%p421_p2) }
   0x9   : > { %3339 = vmatprep.subr.bf16.mxu0 (!%p421_p2), %v3634_v3  ;;  %3344 = vmatpush3.bf16.msra.mxu1 (!%p421_p2), %v3343_v9  ;;  %v483_v21 = vld [vmem:[%s4636_s3] sm:$0xff] (!%p421_p2)  ;;  %s3642_s20 = smov (!%p421_p2), 80   ;;  %s3643_s21 = smov (!%p421_p2), 112  }
   0xa   : > { %3345 = vmatprep.subr.bf16.mxu1 (!%p421_p2), %v3634_v3  ;;  %s3645_s28 = smov (!%p421_p2), 48  }
   0xc   : > { %3341 = vmatpush3.bf16.msra.mxu0 (!%p421_p2), %v3340_v10 }
   0xd   : > { %s4649_s30 = smov (!%p468_p3, %s3015_s30), 1  ;;  %3348 = vmatprep.subr.bf16.mxu0 %v3634_v3  ;;  %3347 = vmatpush3.bf16.msra.mxu1 %v3346_v14 }
   0xe   : > { %s3754_s27 = sshll.u32 %s4649_s30, 3  ;;  %3276 = vmatprep.subr.mxu1 %v3636_v6 }
   0xf   : > { %s471_s16 = scalar_lea.vmem %s4633_s0, %s3754_s27  ;;  %s475_s18 = scalar_lea.vmem %s4634_s1, %s3754_s27 }
  0x10   : > { %v3760_v11 = vld [vmem:[%s471_s16] sm:$0xff]  ;;  %s3640_s16 = smov 120  }
  0x11   : > { %3252 = vmatmul.mubr.msk.f32.vlgmr.msra.gmra.mrb[0].mxu0 %vm500_vm1, %v3760_v11  ;;  %v3817_v37 = vld [vmem:[%s475_s18] sm:$0xff]  ;;  %s3648_s18 = smov 40  }
  0x12   : > { %3350 = vmatpush3.bf16.msra.mxu0 %v3343_v9  ;;  %3273 = vmatprep.mubr.msk.f32.mxu0 %vm3635_vm0, %v3636_v6  ;;  %vm820_vm3 = vcmp.eq.f32.partialorder %v3817_v37, 0.0 }
  0x13   : > { %3351 = vmatprep.subr.bf16.mxu0 %v3634_v3  ;;  %v574_v3 = vld [vmem:[%s4640_s7] sm:$0xff] }
  0x16   : > { %3353 = vmatpush3.bf16.msra.mxu0 %v3346_v14 }
  0x17   : > { %3286 = vmatprep.subr.mxu0 %v3636_v6 }
  0xe4   : > { %v570_v16 = vpop.f32.mrb[0].mxu0 }
  0xe5   : > { %v3777_v17 = vadd.f32 %v3023_v15, %v570_v16  ;;  %v3253_v18 = vpop.f32.mrb[1].mxu0 }
  0xe7   : > { %660 = vrot.lane.b32.xlu0 %v3777_v17, %s3637_s22  ;;  %3263 = vmatmul.mubr.msk.f32.vlgmr.msra.gmra.mrb[0].mxu1 %vm500_vm1, %v3777_v17  ;;  %v579_v23 = vmul.f32 %v3777_v17, %v482_v19 }
  0xe8   : > { %3278 = vmatprep.mubr.msk.f32.mxu1 %vm3635_vm0, %v3636_v6 }
  0xeb   : > { %656 = vrot.lane.b32.xlu0 %v482_v19, %s3638_s25 }
 0x159   : > { %v661_v20 = vpop.permute.xlu0 %660 }
 0x15a   : > { %3274 = vmatmul.mubr.msk.f32.vlgmr.msra.gmra.mrb[2].mxu0 %vm500_vm1, %v661_v20 }
 0x15b   : > { %3288 = vmatprep.mubr.msk.f32.mxu0 %vm3635_vm0, %v3636_v6 }
 0x15d   : > { %v657_v30 = vpop.permute.xlu0 %656 }
 0x15e   : > { %v659_v31 = vmul.f32 %v657_v30, %v3777_v17 }
 0x1ba   : > { %v649_v22 = vpop.f32.mrb[0].mxu1 }
 0x1bb   : > { %v653_v24 = vmul.f32 %v649_v22, %v483_v21  ;;  %v3264_v25 = vpop.f32.mrb[1].mxu1 }
 0x1bd   : > { %v3794_v26 = vadd.f32 %v653_v24, %v579_v23 }
 0x22d   : > { %v730_v27 = vpop.f32.mrb[2].mxu0 }
 0x22e   : > { %v734_v28 = vmul.f32 %v730_v27, %v483_v21  ;;  %v3275_v29 = vpop.f32.mrb[3].mxu0 }
 0x230   : > { %736 = vrot.lane.b32.xlu1 %v734_v28, %s3638_s25 }
 0x2a2   : > { %v737_v32 = vpop.permute.xlu1 %736 }
 0x2a3   : > { %v3797_v33 = vadd.f32 %v737_v32, %v659_v31 }
 0x2a5   : > { %911 = vrot.lane.b32.xlu0 %v3797_v33, %s3639_s15  ;;  %741 = vrot.lane.b32.xlu1 %v3797_v33, %s3637_s22  ;;  %s3644_s22 = smov 56   ;;  %s3646_s15 = smov 104  }
 0x2a9   : > { %909 = vrot.lane.b32.xlu1 %v3794_v26, %s3640_s16  ;;  %s3647_s16 = smov 72  }
 0x317   : > { %v912_v34 = vpop.permute.xlu0 %911  ;;  %v742_v35 = vpop.permute.xlu1 %741 }
 0x318   : > { %3277 = vmatpush3.xpose.msk.msra.mxu1 %vm743_vm2, %v742_v35  ;;  %3287 = vmatpush3.xpose.msk.msra.mxu0 %vm743_vm2, %v912_v34 }
 0x319   : > { %3281 = vmatprep.subr.mxu1 %v3636_v6  ;;  %3296 = vmatprep.subr.mxu0 %v3636_v6 }
 0x31b   : > { %3279 = vmatmul.mubr.msk.f32.vlgmr.msra.gmra.mrb[2].mxu1 %vm743_vm2, %v3794_v26  ;;  %v910_v36 = vpop.permute.xlu1 %909 }
 0x31c   : > { %3289 = vmatmul.mubr.msk.f32.vlgmr.msra.gmra.mrb[4].mxu0 %vm743_vm2, %v910_v36  ;;  %3283 = vmatprep.mubr.msk.f32.mxu1 %vm3635_vm0, %v3636_v6 }
 0x31d   : > { %3298 = vmatprep.mubr.msk.f32.mxu0 %vm3635_vm0, %v3636_v6  ;;  %3297 = vmatpush3.msra.mxu0 %v575_v59 }
 0x31e   : > { %3306 = vmatprep.subr.mxu0 %v3636_v6 }
 0x3ee   : > { %v815_v38 = vpop.f32.mrb[2].mxu1 }
 0x3ef   : > { %v819_v39 = vmul.f32 0.35355338, %v815_v38  ;;  %v3280_v40 = vpop.f32.mrb[3].mxu1  ;;  %v983_v41 = vpop.f32.mrb[4].mxu0 }
 0x3f0   : > { %v987_v42 = vmul.f32 0.35355338, %v983_v41  ;;  %v3290_v43 = vpop.f32.mrb[5].mxu0 }
 0x3f1   : > { %v821_v44 = vsel %vm820_vm3, -1e+09, %v819_v39 }
 0x3f2   : > { %v822_v45 = vsel %vm743_vm2, %v821_v44, -inf  ;;  %v988_v46 = vsel %vm820_vm3, -1e+09, %v987_v42 }
 0x3f3   : > { %823 = vmax.xlane.f32.xlu0 %v822_v45  ;;  %v989_v47 = vsel %vm743_vm2, %v988_v46, -inf }
 0x3f4   : > { %990 = vmax.xlane.f32.xlu1 %v989_v47 }
 0x405   : > { %833 = vrot.lane.b32.xlu1 %v3777_v17, %s3641_s19 }
 0x409   : > { %1224 = vrot.lane.b32.xlu1 %v3797_v33, %s3642_s20 }
 0x40d   : > { %1222 = vrot.lane.b32.xlu1 %v3794_v26, %s3643_s21 }
 0x480   : > { %v824_v48 = vpop.xlane.xlu0 %823 }
 0x481   : > { %v825_v49 = vsub.f32 %v821_v44, %v824_v48  ;;  %v991_v50 = vpop.xlane.xlu1 %990  ;;  %v577_v48 = vld [vmem:[%s4640_s7 + $0x18] sm:$0xff] }
 0x482   : > { %v992_v51 = vsub.f32 %v988_v46, %v991_v50 }
 0x483   : > { %v826_v52 = vmul.f32 1.442695, %v825_v49 }
 0x484   : > { %v993_v53 = vmul.f32 1.442695, %v992_v51 }
 0x485   : > { %3569 = vpow2.f32 %v826_v52  ;;  %v834_v54 = vpop.permute.xlu1 %833 }
 0x486   : > { %3282 = vmatpush3.msra.mxu1 %v834_v54  ;;  %3571 = vpow2.f32 %v993_v53 }
 0x487   : > { %3291 = vmatprep.subr.mxu1 %v3636_v6 }
 0x489   : > { %v1225_v7 = vpop.permute.xlu1 %1224 }
 0x48d   : > { %v1223_v10 = vpop.permute.xlu1 %1222 }
 0x48f   : > { %v3570_v55 = vpop.eup %3569 }
 0x490   : > { %v828_v56 = vsel %vm743_vm2, %v3570_v55, 0.0  ;;  %v3572_v57 = vpop.eup %3571 }
 0x491   : > { %829 = vadd.xlane.f32.xlu0 %v828_v56  ;;  %v995_v58 = vsel %vm743_vm2, %v3572_v57, 0.0  ;;  %v3043_v56 = vld [vmem:[%s4641_s8] ss:$0 sm:$0xff] }
 0x495   : > { %996 = vadd.xlane.f32.xlu0 %v995_v58 }
 0x4ab   : > { %1000 = vrot.lane.b32.xlu0 %v3777_v17, %s3644_s22 }
 0x51e   : > { %v830_v60 = vpop.xlane.xlu0 %829 }
 0x51f   : > { %3573 = vrcp.f32 %v830_v60 }
 0x522   : > { %v997_v61 = vpop.xlane.xlu0 %996 }
 0x523   : > { %3575 = vrcp.f32 %v997_v61 }
 0x526   : > { %v1001_v0 = vpop.permute.xlu0 %1000 }
 0x529   : > { %v3574_v62 = vpop.eup %3573 }
 0x52a   : > { %v832_v63 = vmul.f32 %v3574_v62, %v3570_v55 }
 0x52c   : > { %3284 = vmatmul.mubr.msk.f32.vlgmr.msra.gmra.mrb[4].mxu1 %vm743_vm2, %v832_v63 }
 0x52d   : > { %v3576_v1 = vpop.eup %3575  ;;  %3292 = vmatpush3.msra.mxu1 %v1001_v0  ;;  %3293 = vmatprep.mubr.msk.f32.mxu1 %vm3635_vm0, %v3636_v6  ;;  %v1735_v0 = vld [vmem:[%s4642_s9 + $0x8] sm:$0xff] }
 0x52e   : > { %v999_v2 = vmul.f32 %v3576_v1, %v3572_v57  ;;  %3301 = vmatprep.subr.mxu1 %v3636_v6  ;;  %v1751_v1 = vld [vmem:[%s4642_s9 + $0x88] sm:$0xff] }
 0x530   : > { %3294 = vmatmul.mubr.msk.f32.vlgmr.msra.gmra.mrb[6].mxu1 %vm743_vm2, %v999_v2  ;;  %v1737_v2 = vld [vmem:[%s4642_s9 + $0x18] sm:$0xff] }
 0x531   : > { %3303 = vmatprep.mubr.msk.f32.mxu1 %vm3635_vm0, %v3636_v6  ;;  %3302 = vmatpush3.msra.mxu1 %v574_v3  ;;  %v1753_v3 = vld [vmem:[%s4642_s9 + $0x98] sm:$0xff] }
 0x532   : > { %3311 = vmatprep.subr.mxu1 %v3636_v6 }
 0x5ff   : > { %v905_v4 = vpop.f32.mrb[4].mxu1 }
 0x600   : > { %v3285_v5 = vpop.f32.mrb[5].mxu1  ;;  %3304 = vmatmul.mubr.msk.f32.vlgmr.msra.gmra.mrb[8].mxu1 %vm743_vm2, %v905_v4  ;;  %v1734_v4 = vld [vmem:[%s4642_s9] sm:$0xff] }
 0x601   : > { %3313 = vmatprep.mubr.msk.f32.mxu1 %vm3635_vm0, %v3636_v6  ;;  %v1750_v5 = vld [vmem:[%s4642_s9 + $0x80] sm:$0xff] }
 0x603   : > { %v1072_v8 = vpop.f32.mrb[6].mxu1 }
 0x604   : > { %v3295_v9 = vpop.f32.mrb[7].mxu1  ;;  %3299 = vmatmul.mubr.msk.f32.vlgmr.msra.gmra.mrb[6].mxu0 %vm743_vm2, %v1072_v8  ;;  %v3356_v8 = vpack.c.bf16 %v1750_v5, %v1734_v4  ;;  %v1744_v4 = vld [vmem:[%s4642_s9 + $0x50] sm:$0xff] }
 0x605   : > { %3307 = vmatpush3.xpose.msk.msra.mxu0 %vm743_vm2, %v1225_v7  ;;  %3308 = vmatprep.mubr.msk.f32.mxu0 %vm3635_vm0, %v3636_v6  ;;  %v3362_v7 = vpack.c.bf16 %v1753_v3, %v1737_v2  ;;  %v1736_v9 = vld [vmem:[%s4642_s9 + $0x10] sm:$0xff]  ;;  %v1758_v2 = vld [vmem:[%s4642_s9 + $0xc0] sm:$0xff] }
 0x606   : > { %3316 = vmatprep.subr.mxu0 %v3636_v6  ;;  %v1760_v5 = vld [vmem:[%s4642_s9 + $0xd0] sm:$0xff] }
 0x608   : > { %3309 = vmatmul.mubr.msk.f32.vlgmr.msra.gmra.mrb[8].mxu0 %vm743_vm2, %v1223_v10  ;;  %v1752_v10 = vld [vmem:[%s4642_s9 + $0x90] sm:$0xff] }
 0x609   : > { %3318 = vmatprep.mubr.msk.f32.mxu0 %vm3635_vm0, %v3636_v6 }
 0x6d3   : > { %v1218_v12 = vpop.f32.mrb[8].mxu1 }
 0x6d4   : > { %v3305_v13 = vpop.f32.mrb[9].mxu1 }
 0x6d5   : > { %v1767_v13 = vld [vmem:[%s4642_s9 + $0x108] sm:$0xff] }
 0x6d7   : > { %v1145_v14 = vpop.f32.mrb[6].mxu0 }
 0x6d8   : > { %v1219_v15 = vadd.f32 %v1218_v12, %v1145_v14  ;;  %v3300_v16 = vpop.f32.mrb[7].mxu0  ;;  %v3364_v12 = vpack.c.bf16 %v1752_v10, %v1736_v9  ;;  %v1783_v14 = vld [vmem:[%s4642_s9 + $0x188] sm:$0xff]  ;;  %v1777_v9 = vld [vmem:[%s4642_s9 + $0x158] sm:$0xff] }
 0x6d9   : > { %v3358_v16 = vpack.c.bf16 %v1783_v14, %v1767_v13  ;;  %v1793_v10 = vld [vmem:[%s4642_s9 + $0x1d8] sm:$0xff]  ;;  %v3396_v13 = vpack.c.bf16 %v1760_v5, %v1744_v4  ;;  %v1774_v14 = vld [vmem:[%s4642_s9 + $0x140] sm:$0xff] }
 0x6da   : > { %v1820_v5 = vld [vmem:[%s4644_s11 + $0xa0] sm:$0xff] }
 0x6db   : > { %v1296_v18 = vpop.f32.mrb[8].mxu0 }
 0x6dc   : > { %v1300_v19 = vmul.f32 0.35355338, %v1296_v18  ;;  %v3310_v20 = vpop.f32.mrb[9].mxu0  ;;  %v1785_v18 = vld [vmem:[%s4642_s9 + $0x198] sm:$0xff] }
 0x6dd   : > { %v1782_v20 = vld [vmem:[%s4642_s9 + $0x180] sm:$0xff] }
 0x6de   : > { %v1301_v21 = vsel %vm820_vm3, -1e+09, %v1300_v19  ;;  %v1766_v19 = vld [vmem:[%s4642_s9 + $0x100] sm:$0xff] }
 0x6df   : > { %v1302_v22 = vsel %vm743_vm2, %v1301_v21, -inf }
 0x6e0   : > { %1303 = vmax.xlane.f32.xlu0 %v1302_v22  ;;  %v3360_v22 = vpack.c.bf16 %v1782_v20, %v1766_v19  ;;  %v1776_v19 = vld [vmem:[%s4642_s9 + $0x150] sm:$0xff] }
 0x6e1   : > { %v1792_v20 = vld [vmem:[%s4642_s9 + $0x1d0] sm:$0xff] }
 0x6f6   : > { %1313 = vrot.lane.b32.xlu0 %v3777_v17, %s3645_s28  ;;  %s479_s28 = scalar_lea.vmem %s4647_s14, %s3754_s27 }
 0x6fa   : > { %1463 = vrot.lane.b32.xlu0 %v3794_v26, %s3646_s15 }
 0x76d   : > { %v1304_v23 = vpop.xlane.xlu0 %1303 }
 0x76e   : > { %v1305_v24 = vsub.f32 %v1301_v21, %v1304_v23  ;;  %v1768_v23 = vld [vmem:[%s4642_s9 + $0x110] sm:$0xff] }
 0x770   : > { %v1306_v25 = vmul.f32 1.442695, %v1305_v24  ;;  %v1784_v24 = vld [vmem:[%s4642_s9 + $0x190] sm:$0xff] }
 0x771   : > { %v1314_v27 = vpop.permute.xlu0 %1313 }
 0x772   : > { %3577 = vpow2.f32 %v1306_v25  ;;  %3312 = vmatpush3.msra.mxu1 %v1314_v27  ;;  %v3368_v25 = vpack.c.bf16 %v1784_v24, %v1768_v23  ;;  %v1739_v27 = vld [vmem:[%s4642_s9 + $0x28] sm:$0xff]  ;;  %v1749_v23 = vld [vmem:[%s4642_s9 + $0x78] sm:$0xff] }
 0x773   : > { %3321 = vmatprep.subr.mxu1 %v3636_v6  ;;  %v1765_v24 = vld [vmem:[%s4642_s9 + $0xf8] sm:$0xff] }
 0x775   : > { %v1464_v34 = vpop.permute.xlu0 %1463 }
 0x77c   : > { %v3578_v28 = vpop.eup %3577 }
 0x77d   : > { %v1308_v29 = vsel %vm743_vm2, %v3578_v28, 0.0 }
 0x77e   : > { %1309 = vadd.xlane.f32.xlu1 %v1308_v29  ;;  %v1741_v29 = vld [vmem:[%s4642_s9 + $0x38] sm:$0xff] }
 0x78f   : > { %1465 = vrot.lane.b32.xlu1 %v3797_v33, %s3647_s16  ;;  %v576_v33 = vld [vmem:[%s4640_s7 + $0x10] sm:$0xff] }
 0x790   : > { %3317 = vmatpush3.msra.mxu0 %v576_v33 }
 0x791   : > { %3326 = vmatprep.subr.mxu0 %v3636_v6 }
 0x80b   : > { %v1310_v30 = vpop.xlane.xlu1 %1309 }
 0x80c   : > { %3579 = vrcp.f32 %v1310_v30 }
 0x80f   : > { %v1466_v26 = vpop.permute.xlu1 %1465 }
 0x816   : > { %v3580_v31 = vpop.eup %3579 }
 0x817   : > { %v1312_v32 = vmul.f32 %v3580_v31, %v3578_v28  ;;  %v1755_v28 = vld [vmem:[%s4642_s9 + $0xa8] sm:$0xff]  ;;  %v1757_v31 = vld [vmem:[%s4642_s9 + $0xb8] sm:$0xff] }
 0x818   : > { %v3370_v30 = vpack.c.bf16 %v1755_v28, %v1739_v27  ;;  %v3400_v27 = vpack.c.bf16 %v1792_v20, %v1776_v19  ;;  %v1746_v28 = vld [vmem:[%s4642_s9 + $0x60] sm:$0xff]  ;;  %v1822_v20 = vld [vmem:[%s4644_s11 + $0xb0] sm:$0xff] }
 0x819   : > { %3314 = vmatmul.mubr.msk.f32.vlgmr.msra.gmra.mrb[10].mxu1 %vm743_vm2, %v1312_v32  ;;  %v3378_v32 = vpack.c.bf16 %v1757_v31, %v1741_v29  ;;  %v1762_v29 = vld [vmem:[%s4642_s9 + $0xe0] sm:$0xff]  ;;  %v3410_v31 = vpack.c.bf16 %v1765_v24, %v1749_v23  ;;  %v1855_v24 = vld [vmem:[%s4644_s11 + $0x1b8] sm:$0xff] }
 0x81a   : > { %3322 = vmatpush3.xpose.msk.msra.mxu1 %vm743_vm2, %v1466_v26  ;;  %3323 = vmatprep.mubr.msk.f32.mxu1 %vm3635_vm0, %v3636_v6 }
 0x81b   : > { %3331 = vmatprep.subr.mxu1 %v3636_v6 }
 0x81d   : > { %3324 = vmatmul.mubr.msk.f32.vlgmr.msra.gmra.mrb[12].mxu1 %vm743_vm2, %v1464_v34 }
 0x81e   : > { %3333 = vmatprep.mubr.msk.f32.mxu1 %vm3635_vm0, %v3636_v6  ;;  %3332 = vmatpush3.msra.mxu1 %v577_v48  ;;  %v1773_v48 = vld [vmem:[%s4642_s9 + $0x138] sm:$0xff] }
 0x81f   : > { %3363 = vmatprep.subr.bf16.mxu1 %v3362_v7  ;;  %v1775_v7 = vld [vmem:[%s4642_s9 + $0x148] sm:$0xff] }
 0x8ec   : > { %v1385_v35 = vpop.f32.mrb[10].mxu1 }
 0x8ed   : > { %v3315_v36 = vpop.f32.mrb[11].mxu1  ;;  %3319 = vmatmul.mubr.msk.f32.vlgmr.msra.gmra.mrb[10].mxu0 %vm743_vm2, %v1385_v35 }
 0x8ee   : > { %3328 = vmatprep.mubr.msk.f32.mxu0 %vm3635_vm0, %v3636_v6 }
 0x8f0   : > { %v1537_v38 = vpop.f32.mrb[12].mxu1 }
 0x8f1   : > { %v1541_v39 = vmul.f32 0.35355338, %v1537_v38  ;;  %v3325_v40 = vpop.f32.mrb[13].mxu1 }
 0x8f3   : > { %v1542_v41 = vsel %vm820_vm3, -1e+09, %v1541_v39 }
 0x8f4   : > { %v1543_v42 = vsel %vm743_vm2, %v1542_v41, -inf }
 0x8f5   : > { %1544 = vmax.xlane.f32.xlu1 %v1543_v42  ;;  %v1738_v42 = vld [vmem:[%s4642_s9 + $0x20] sm:$0xff] }
 0x982   : > { %v1545_v43 = vpop.xlane.xlu1 %1544 }
 0x983   : > { %v1546_v44 = vsub.f32 %v1542_v41, %v1545_v43  ;;  %v3044_v41 = vld [vmem:[%s4646_s13] ss:$0 sm:$0xff] }
 0x984   : > { %v1754_v43 = vld [vmem:[%s4642_s9 + $0xa0] sm:$0xff] }
 0x985   : > { %v1547_v45 = vmul.f32 1.442695, %v1546_v44  ;;  %v1740_v44 = vld [vmem:[%s4642_s9 + $0x30] sm:$0xff] }
 0x987   : > { %3581 = vpow2.f32 %v1547_v45  ;;  %v1756_v45 = vld [vmem:[%s4642_s9 + $0xb0] sm:$0xff] }
 0x991   : > { %v3582_v46 = vpop.eup %3581 }
 0x992   : > { %v1549_v47 = vsel %vm743_vm2, %v3582_v46, 0.0 }
 0x993   : > { %1550 = vadd.xlane.f32.xlu0 %v1549_v47  ;;  %v1787_v47 = vld [vmem:[%s4642_s9 + $0x1a8] sm:$0xff] }
 0x9a9   : > { %1554 = vrot.lane.b32.xlu0 %v3777_v17, %s3648_s18 }
 0x9c0   : > { %v1458_v37 = vpop.f32.mrb[10].mxu0 }
 0x9c1   : > { %v1462_v49 = vadd.f32 %v1458_v37, %v1219_v15  ;;  %v3320_v50 = vpop.f32.mrb[11].mxu0  ;;  %v1769_v15 = vld [vmem:[%s4642_s9 + $0x118] sm:$0xff] }
 0x9c2   : > { %v3366_v21 = vpack.c.bf16 %v1785_v18, %v1769_v15  ;;  %v1789_v37 = vld [vmem:[%s4642_s9 + $0x1b8] sm:$0xff]  ;;  %v1790_v15 = vld [vmem:[%s4642_s9 + $0x1c0] sm:$0xff]  ;;  %v3398_v18 = vpack.c.bf16 %v1793_v10, %v1777_v9  ;;  %v1853_v10 = vld [vmem:[%s4644_s11 + $0x1a8] sm:$0xff] }
 0xa20   : > { %v1551_v51 = vpop.xlane.xlu0 %1550 }
 0xa21   : > { %3583 = vrcp.f32 %v1551_v51  ;;  %v3372_v51 = vpack.c.bf16 %v1754_v43, %v1738_v42  ;;  %v1794_v43 = vld [vmem:[%s4642_s9 + $0x1e0] sm:$0xff] }
 0xa24   : > { %v1555_v52 = vpop.permute.xlu0 %1554 }
 0xa25   : > { %3327 = vmatpush3.msra.mxu0 %v1555_v52  ;;  %v3380_v52 = vpack.c.bf16 %v1756_v45, %v1740_v44  ;;  %v1780_v44 = vld [vmem:[%s4642_s9 + $0x170] sm:$0xff] }
 0xa26   : > { %v1796_v45 = vld [vmem:[%s4642_s9 + $0x1f0] sm:$0xff] }
 0xa2b   : > { %v3584_v53 = vpop.eup %3583 }
 0xa2c   : > { %v1553_v54 = vmul.f32 %v3584_v53, %v3582_v46  ;;  %v1771_v46 = vld [vmem:[%s4642_s9 + $0x128] sm:$0xff]  ;;  %v1770_v53 = vld [vmem:[%s4642_s9 + $0x120] sm:$0xff] }
 0xa2e   : > { %3329 = vmatmul.mubr.msk.f32.vlgmr.msra.gmra.mrb[12].mxu0 %vm743_vm2, %v1553_v54  ;;  %v1786_v54 = vld [vmem:[%s4642_s9 + $0x1a0] sm:$0xff] }
 0xa2f   : > { %2078 = vmatprep.mubr.f32.mxu0 %v3636_v6 }
 0xb01   : > { %v1626_v55 = vpop.f32.mrb[12].mxu0 }
 0xb02   : > { %v3330_v17 = vpop.f32.mrb[13].mxu0  ;;  %3334 = vmatmul.mubr.msk.f32.vlgmr.msra.gmra.mrb[14].mxu1 %vm743_vm2, %v1626_v55 }
 0xb03   : > { %2149 = vmatprep.mubr.f32.mxu1 %v3636_v6  ;;  %3365 = vmatpush1.bf16.msra.mxu1 %v3364_v12  ;;  %v3374_v17 = vpack.c.bf16 %v1787_v47, %v1771_v46  ;;  %v3416_v47 = vpack.c.bf16 %v1796_v45, %v1780_v44  ;;  %v1826_v45 = vld [vmem:[%s4644_s11 + $0xd0] sm:$0xff] }
 0xb04   : > { %3367 = vmatprep.subr.bf16.mxu1 %v3366_v21  ;;  %v1747_v21 = vld [vmem:[%s4642_s9 + $0x68] sm:$0xff] }
 0xb07   : > { %3369 = vmatpush1.bf16.msra.mxu1 %v3368_v25  ;;  %v3392_v25 = vpack.c.bf16 %v1790_v15, %v1774_v14 }
 0xb08   : > { %3379 = vmatprep.subr.bf16.mxu1 %v3378_v32  ;;  %v1748_v32 = vld [vmem:[%s4642_s9 + $0x70] sm:$0xff] }
 0xbd5   : > { %v1699_v57 = vpop.f32.mrb[14].mxu1 }
 0xbd6   : > { %v1703_v58 = vadd.f32 %v1699_v57, %v1462_v49  ;;  %v3335_v59 = vpop.f32.mrb[15].mxu1  ;;  %v1772_v57 = vld [vmem:[%s4642_s9 + $0x130] sm:$0xff] }
 0xbd7   : > { %v1743_v59 = vld [vmem:[%s4642_s9 + $0x48] sm:$0xff] }
 0xbd8   : > { %v1710_v60 = vadd.f32 %v3043_v56, %v1703_v58  ;;  %v3382_v56 = vpack.c.bf16 %v1789_v37, %v1773_v48  ;;  %v1788_v58 = vld [vmem:[%s4642_s9 + $0x1b0] sm:$0xff]  ;;  %v1816_v48 = vld [vmem:[%s4644_s11 + $0x80] sm:$0xff]  ;;  %v1817_v37 = vld [vmem:[%s4644_s11 + $0x88] sm:$0xff] }
 0xbda   : > { %v3898_v61 = vadd.f32 %v1710_v60, %v3760_v11  ;;  %v3354_v11 = vpack.c.bf16 %v1751_v1, %v1735_v0  ;;  %v1759_v60 = vld [vmem:[%s4642_s9 + $0xc8] sm:$0xff]  ;;  %v3384_v0 = vpack.c.bf16 %v1788_v58, %v1772_v57  ;;  %v1742_v1 = vld [vmem:[%s4642_s9 + $0x40] sm:$0xff]  ;;  %v1818_v58 = vld [vmem:[%s4644_s11 + $0x90] sm:$0xff] }
 0xbdb   : > { %v3388_v12 = vpack.c.bf16 %v1758_v2, %v1742_v1 }
 0xbdc   : > { %v1712_v62 = vmul.f32 %v3898_v61, %v3898_v61  ;;  %3355 = vmatprep.subr.bf16.mxu0 %v3354_v11  ;;  %v1730_v49 = vmul.f32 %v3044_v41, %v3898_v61  ;;  %v1745_v61 = vld [vmem:[%s4642_s9 + $0x58] sm:$0xff]  ;;  %v3386_v11 = vpack.c.bf16 %v1759_v60, %v1743_v59  ;;  %v1850_v60 = vld [vmem:[%s4644_s11 + $0x190] sm:$0xff] }
 0xbdd   : > { %3357 = vmatpush1.bf16.msra.mxu0 %v3356_v8  ;;  %v1791_v8 = vld [vmem:[%s4642_s9 + $0x1c8] sm:$0xff]  ;;  %v1819_v59 = vld [vmem:[%s4644_s11 + $0x98] sm:$0xff] }
 0xbde   : > { %v1713_v63 = vsel %vm500_vm1, %v1712_v62, 0.0  ;;  %3359 = vmatprep.subr.bf16.mxu0 %v3358_v16  ;;  %v1761_v62 = vld [vmem:[%s4642_s9 + $0xd8] sm:$0xff]  ;;  %v3390_v16 = vpack.c.bf16 %v1791_v8, %v1775_v7  ;;  %v1821_v7 = vld [vmem:[%s4644_s11 + $0xa8] sm:$0xff]  ;;  %v1852_v8 = vld [vmem:[%s4644_s11 + $0x1a0] sm:$0xff] }
 0xbdf   : > { %1714 = vadd.xlane.f32.xlu1 %v1713_v63  ;;  %v3376_v63 = vpack.c.bf16 %v1786_v54, %v1770_v53  ;;  %v3394_v3 = vpack.c.bf16 %v1761_v62, %v1745_v61  ;;  %v3422_v61 = vpack.c.bf16 %v1819_v59, %v1818_v58  ;;  %v1851_v62 = vld [vmem:[%s4644_s11 + $0x198] sm:$0xff]  ;;  %v3426_v9 = vpack.c.bf16 %v1821_v7, %v1820_v5  ;;  %v1861_v59 = vld [vmem:[%s4644_s11 + $0x1e8] sm:$0xff] }
 0xbe0   : > { %v3454_v1 = vpack.c.bf16 %v1851_v62, %v1850_v60  ;;  %v3458_v14 = vpack.c.bf16 %v1853_v10, %v1852_v8  ;;  %v1812_v60 = vld [vmem:[%s4644_s11 + $0x60] sm:$0xff]  ;;  %v1863_v7 = vld [vmem:[%s4644_s11 + $0x1f8] sm:$0xff]  ;;  %v1814_v8 = vld [vmem:[%s4644_s11 + $0x70] sm:$0xff] }
 0xbe1   : > { %3361 = vmatpush1.bf16.msra.mxu0 %v3360_v22  ;;  %v1763_v22 = vld [vmem:[%s4642_s9 + $0xe8] sm:$0xff] }
 0xbe2   : > { %3371 = vmatprep.subr.bf16.mxu0 %v3370_v30  ;;  %v3402_v30 = vpack.c.bf16 %v1763_v22, %v1747_v21  ;;  %v1823_v21 = vld [vmem:[%s4644_s11 + $0xb8] sm:$0xff]  ;;  %v1854_v22 = vld [vmem:[%s4644_s11 + $0x1b0] sm:$0xff] }
 0xbe3   : > { %v3430_v23 = vpack.c.bf16 %v1823_v21, %v1822_v20  ;;  %v1913_v21 = vld [vmem:[%s4644_s11 + $0x388] sm:$0xff] }
 0xc6c   : > { %v1715_v26 = vpop.xlane.xlu1 %1714 }
 0xc6d   : > { %3585 = vrsqrt.f32 %v1715_v26  ;;  %vm1718_vm4 = vcmp.eq.f32.partialorder %v1715_v26, inf  ;;  %v1721_v35 = vand.u32 2147483648, %v1715_v26  ;;  %vm1720_vm5 = vcmp.eq.f32.partialorder %v1715_v26, 0.0 }
 0xc77   : > { %v3586_v34 = vpop.eup %3585 }
 0xc78   : > { %v1717_v33 = vmul.f32 %v3586_v34, %v1715_v26  ;;  %v1779_v34 = vld [vmem:[%s4642_s9 + $0x168] sm:$0xff] }
 0xc7a   : > { %v1719_v36 = vsel %vm1718_vm4, %v1715_v26, %v1717_v33  ;;  %v1764_v26 = vld [vmem:[%s4642_s9 + $0xf0] sm:$0xff]  ;;  %v1795_v33 = vld [vmem:[%s4642_s9 + $0x1e8] sm:$0xff] }
 0xc7b   : > { %v1722_v38 = vsel %vm1720_vm5, %v1721_v35, %v1719_v36  ;;  %v1781_v35 = vld [vmem:[%s4642_s9 + $0x178] sm:$0xff]  ;;  %v3406_v41 = vpack.c.bf16 %v1795_v33, %v1779_v34  ;;  %v1825_v34 = vld [vmem:[%s4644_s11 + $0xc8] sm:$0xff]  ;;  %v1856_v33 = vld [vmem:[%s4644_s11 + $0x1c0] sm:$0xff] }
 0xc7c   : > { %v1723_v39 = vmul.f32 0.17677669, %v1722_v38  ;;  %v1797_v36 = vld [vmem:[%s4642_s9 + $0x1f8] sm:$0xff]  ;;  %v3404_v38 = vpack.c.bf16 %v1762_v29, %v1746_v28  ;;  %v3462_v28 = vpack.c.bf16 %v1855_v24, %v1854_v22 }
 0xc7d   : > { %v3414_v42 = vpack.c.bf16 %v1797_v36, %v1781_v35  ;;  %v1857_v36 = vld [vmem:[%s4644_s11 + $0x1c8] sm:$0xff] }
 0xc7e   : > { %v1731_v40 = vadd.f32 1e-06, %v1723_v39  ;;  %v3412_v39 = vpack.c.bf16 %v1764_v26, %v1748_v32  ;;  %v1824_v26 = vld [vmem:[%s4644_s11 + $0xc0] sm:$0xff] }
 0xc7f   : > { %v3434_v35 = vpack.c.bf16 %v1825_v34, %v1824_v26  ;;  %v1799_v34 = vld [vmem:[%s4643_s10 + $0x8] sm:$0xff] }
 0xc80   : > { %3587 = vrcp.f32 %v1731_v40  ;;  %v1778_v40 = vld [vmem:[%s4642_s9 + $0x160] sm:$0xff] }
 0xc81   : > { %v3408_v46 = vpack.c.bf16 %v1794_v43, %v1778_v40  ;;  %v3466_v40 = vpack.c.bf16 %v1857_v36, %v1856_v33  ;;  %v1841_v43 = vld [vmem:[%s4644_s11 + $0x148] sm:$0xff] }
 0xc8a   : > { %v3588_v50 = vpop.eup %3587 }
 0xc8b   : > { %v3997_v55 = vmul.f32 %v3588_v50, %v1730_v49  ;;  %v3418_v49 = vpack.c.bf16 %v1817_v37, %v1816_v48  ;;  %v1849_v50 = vld [vmem:[%s4644_s11 + $0x188] sm:$0xff]  ;;  %v1859_v37 = vld [vmem:[%s4644_s11 + $0x1d8] sm:$0xff] }
 0xc8d   : > { %3045 = vmatmul.mubr.msk.f32.vlgmr.msra.gmra.mrb[14].mxu0 %vm500_vm1, %v3997_v55  ;;  %3046 = vmatmul.mubr.msk.f32.vlgmr.msra.gmra.mrb[16].mxu1 %vm500_vm1, %v3997_v55 }
 0xc8e   : > { %3373 = vmatpush1.bf16.msra.mxu0 %v3372_v51  ;;  %3381 = vmatpush1.bf16.msra.mxu1 %v3380_v52  ;;  %v1800_v51 = vld [vmem:[%s4644_s11] sm:$0xff]  ;;  %v1801_v52 = vld [vmem:[%s4644_s11 + $0x8] sm:$0xff] }
 0xc8f   : > { %3375 = vmatprep.subr.bf16.mxu0 %v3374_v17  ;;  %3383 = vmatprep.subr.bf16.mxu1 %v3382_v56  ;;  %v3420_v54 = vpack.c.bf16 %v1801_v52, %v1800_v51  ;;  %v1832_v17 = vld [vmem:[%s4644_s11 + $0x100] sm:$0xff]  ;;  %v1833_v56 = vld [vmem:[%s4644_s11 + $0x108] sm:$0xff]  ;;  %v1842_v52 = vld [vmem:[%s4644_s11 + $0x150] sm:$0xff] }
 0xc90   : > { %2220 = vmatprep.mubr.f32.mxu0 %v3636_v6  ;;  %2291 = vmatprep.mubr.f32.mxu1 %v3636_v6  ;;  %v3452_v57 = vpack.c.bf16 %v1833_v56, %v1832_v17  ;;  %v1828_v17 = vld [vmem:[%s4644_s11 + $0xe0] sm:$0xff]  ;;  %v1829_v56 = vld [vmem:[%s4644_s11 + $0xe8] sm:$0xff] }
 0xc91   : > { %v3442_v58 = vpack.c.bf16 %v1829_v56, %v1828_v17 }
 0xc92   : > { %3377 = vmatpush1.bf16.msra.mxu0 %v3376_v63  ;;  %3385 = vmatpush1.bf16.msra.mxu1 %v3384_v0  ;;  %v1802_v63 = vld [vmem:[%s4644_s11 + $0x10] sm:$0xff]  ;;  %v1803_v0 = vld [vmem:[%s4644_s11 + $0x18] sm:$0xff] }
 0xc93   : > { %3387 = vmatprep.subr.bf16.mxu0 %v3386_v11  ;;  %3395 = vmatprep.subr.bf16.mxu1 %v3394_v3  ;;  %v3424_v2 = vpack.c.bf16 %v1803_v0, %v1802_v63  ;;  %v1834_v11 = vld [vmem:[%s4644_s11 + $0x110] sm:$0xff]  ;;  %v1835_v3 = vld [vmem:[%s4644_s11 + $0x118] sm:$0xff]  ;;  %v1844_v0 = vld [vmem:[%s4644_s11 + $0x160] sm:$0xff] }
 0xc94   : > { %v3456_v4 = vpack.c.bf16 %v1835_v3, %v1834_v11  ;;  %v1830_v11 = vld [vmem:[%s4644_s11 + $0xf0] sm:$0xff]  ;;  %v1831_v3 = vld [vmem:[%s4644_s11 + $0xf8] sm:$0xff] }
 0xc95   : > { %3047 = vmatmul.mubr.msk.f32.vlgmr.msra.gmra.mrb[16].mxu0 %vm500_vm1, %v3997_v55  ;;  %3048 = vmatmul.mubr.msk.f32.vlgmr.msra.gmra.mrb[18].mxu1 %vm500_vm1, %v3997_v55  ;;  %v3446_v5 = vpack.c.bf16 %v1831_v3, %v1830_v11 }
 0xc96   : > { %3389 = vmatpush1.bf16.msra.mxu0 %v3388_v12  ;;  %3397 = vmatpush1.bf16.msra.mxu1 %v3396_v13  ;;  %v1804_v12 = vld [vmem:[%s4644_s11 + $0x20] sm:$0xff]  ;;  %v1805_v13 = vld [vmem:[%s4644_s11 + $0x28] sm:$0xff] }
 0xc97   : > { %3391 = vmatprep.subr.bf16.mxu0 %v3390_v16  ;;  %3399 = vmatprep.subr.bf16.mxu1 %v3398_v18  ;;  %v3428_v15 = vpack.c.bf16 %v1805_v13, %v1804_v12  ;;  %v1836_v16 = vld [vmem:[%s4644_s11 + $0x120] sm:$0xff]  ;;  %v1837_v18 = vld [vmem:[%s4644_s11 + $0x128] sm:$0xff]  ;;  %v1846_v13 = vld [vmem:[%s4644_s11 + $0x170] sm:$0xff] }
 0xc98   : > { %2362 = vmatprep.mubr.f32.mxu0 %v3636_v6  ;;  %2433 = vmatprep.mubr.f32.mxu1 %v3636_v6  ;;  %v3460_v19 = vpack.c.bf16 %v1837_v18, %v1836_v16  ;;  %v1880_v16 = vld [vmem:[%s4644_s11 + $0x280] sm:$0xff]  ;;  %v1881_v18 = vld [vmem:[%s4644_s11 + $0x288] sm:$0xff] }
 0xc99   : > { %v3482_v20 = vpack.c.bf16 %v1881_v18, %v1880_v16 }
 0xc9a   : > { %3393 = vmatpush1.bf16.msra.mxu0 %v3392_v25  ;;  %3401 = vmatpush1.bf16.msra.mxu1 %v3400_v27  ;;  %v1806_v25 = vld [vmem:[%s4644_s11 + $0x30] sm:$0xff]  ;;  %v1807_v27 = vld [vmem:[%s4644_s11 + $0x38] sm:$0xff] }
 0xc9b   : > { %3403 = vmatprep.subr.bf16.mxu0 %v3402_v30  ;;  %3411 = vmatprep.subr.bf16.mxu1 %v3410_v31  ;;  %v3432_v29 = vpack.c.bf16 %v1807_v27, %v1806_v25  ;;  %v1838_v30 = vld [vmem:[%s4644_s11 + $0x130] sm:$0xff]  ;;  %v1839_v31 = vld [vmem:[%s4644_s11 + $0x138] sm:$0xff] }
 0xc9c   : > { %v3464_v32 = vpack.c.bf16 %v1839_v31, %v1838_v30 }
 0xc9d   : > { %3049 = vmatmul.mubr.msk.f32.vlgmr.msra.gmra.mrb[18].mxu0 %vm500_vm1, %v3997_v55  ;;  %3050 = vmatmul.mubr.msk.f32.vlgmr.msra.gmra.mrb[20].mxu1 %vm500_vm1, %v3997_v55 }
 0xc9e   : > { %3405 = vmatpush1.bf16.msra.mxu0 %v3404_v38  ;;  %3413 = vmatpush1.bf16.msra.mxu1 %v3412_v39  ;;  %v1808_v38 = vld [vmem:[%s4644_s11 + $0x40] sm:$0xff]  ;;  %v1809_v39 = vld [vmem:[%s4644_s11 + $0x48] sm:$0xff] }
 0xc9f   : > { %3407 = vmatprep.subr.bf16.mxu0 %v3406_v41  ;;  %3415 = vmatprep.subr.bf16.mxu1 %v3414_v42  ;;  %v3436_v41 = vpack.c.bf16 %v1809_v39, %v1808_v38  ;;  %v1840_v42 = vld [vmem:[%s4644_s11 + $0x140] sm:$0xff] }
 0xca0   : > { %2504 = vmatprep.mubr.f32.mxu0 %v3636_v6  ;;  %2575 = vmatprep.mubr.f32.mxu1 %v3636_v6  ;;  %v1848_v6 = vld [vmem:[%s4644_s11 + $0x180] sm:$0xff]  ;;  %v3468_v44 = vpack.c.bf16 %v1841_v43, %v1840_v42 }
 0xca1   : > { %v3450_v53 = vpack.c.bf16 %v1849_v50, %v1848_v6  ;;  %v1810_v6 = vld [vmem:[%s4644_s11 + $0x50] sm:$0xff] }
 0xca2   : > { %3409 = vmatpush1.bf16.msra.mxu0 %v3408_v46  ;;  %3417 = vmatpush1.bf16.msra.mxu1 %v3416_v47  ;;  %v1827_v46 = vld [vmem:[%s4644_s11 + $0xd8] sm:$0xff]  ;;  %v1858_v47 = vld [vmem:[%s4644_s11 + $0x1d0] sm:$0xff] }
 0xca3   : > { %3419 = vmatprep.subr.bf16.mxu0 %v3418_v49  ;;  %3451 = vmatprep.subr.bf16.mxu1 %v3450_v53  ;;  %v3438_v48 = vpack.c.bf16 %v1827_v46, %v1826_v45  ;;  %v1811_v49 = vld [vmem:[%s4644_s11 + $0x58] sm:$0xff]  ;;  %v3470_v50 = vpack.c.bf16 %v1859_v37, %v1858_v47 }
 0xca4   : > { %v3440_v51 = vpack.c.bf16 %v1811_v49, %v1810_v6  ;;  %v1843_v53 = vld [vmem:[%s4644_s11 + $0x158] sm:$0xff] }
 0xca5   : > { %3051 = vmatmul.mubr.msk.f32.vlgmr.msra.gmra.mrb[20].mxu0 %vm500_vm1, %v3997_v55  ;;  %3052 = vmatmul.mubr.msk.f32.vlgmr.msra.gmra.mrb[22].mxu1 %vm500_vm1, %v3997_v55 }
 0xca6   : > { %3421 = vmatpush3.bf16.msra.mxu0 %v3420_v54  ;;  %3453 = vmatpush3.bf16.msra.mxu1 %v3452_v57  ;;  %v3472_v54 = vpack.c.bf16 %v1843_v53, %v1842_v52  ;;  %v1860_v57 = vld [vmem:[%s4644_s11 + $0x1e0] sm:$0xff] }
 0xca7   : > { %3423 = vmatprep.subr.bf16.mxu0 %v3422_v61  ;;  %3455 = vmatprep.subr.bf16.mxu1 %v3454_v1  ;;  %v1813_v61 = vld [vmem:[%s4644_s11 + $0x68] sm:$0xff]  ;;  %v3474_v62 = vpack.c.bf16 %v1861_v59, %v1860_v57 }
 0xca8   : > { %v3444_v63 = vpack.c.bf16 %v1813_v61, %v1812_v60  ;;  %v1845_v1 = vld [vmem:[%s4644_s11 + $0x168] sm:$0xff] }
 0xcaa   : > { %3425 = vmatpush3.bf16.msra.mxu0 %v3424_v2  ;;  %3457 = vmatpush3.bf16.msra.mxu1 %v3456_v4  ;;  %v3476_v2 = vpack.c.bf16 %v1845_v1, %v1844_v0  ;;  %v1862_v4 = vld [vmem:[%s4644_s11 + $0x1f0] sm:$0xff] }
 0xcab   : > { %3427 = vmatprep.subr.bf16.mxu0 %v3426_v9  ;;  %3459 = vmatprep.subr.bf16.mxu1 %v3458_v14  ;;  %v1815_v9 = vld [vmem:[%s4644_s11 + $0x78] sm:$0xff]  ;;  %v3478_v10 = vpack.c.bf16 %v1863_v7, %v1862_v4 }
 0xcac   : > { %v3448_v12 = vpack.c.bf16 %v1815_v9, %v1814_v8  ;;  %v1847_v14 = vld [vmem:[%s4644_s11 + $0x178] sm:$0xff] }
 0xcae   : > { %3429 = vmatpush3.bf16.msra.mxu0 %v3428_v15  ;;  %3461 = vmatpush3.bf16.msra.mxu1 %v3460_v19  ;;  %v3480_v15 = vpack.c.bf16 %v1847_v14, %v1846_v13  ;;  %v1912_v19 = vld [vmem:[%s4644_s11 + $0x380] sm:$0xff] }
 0xcaf   : > { %3431 = vmatprep.subr.bf16.mxu0 %v3430_v23  ;;  %3463 = vmatprep.subr.bf16.mxu1 %v3462_v28  ;;  %v3514_v22 = vpack.c.bf16 %v1913_v21, %v1912_v19  ;;  %v1931_v28 = vlaneseq  ;;  %v1798_v19 = vld [vmem:[%s4643_s10] sm:$0xff] }
 0xcb2   : > { %3433 = vmatpush3.bf16.msra.mxu0 %v3432_v29  ;;  %3465 = vmatpush3.bf16.msra.mxu1 %v3464_v32  ;;  %v4335_v29 = vshrl.u32 %v1931_v28, 7 }
 0xcb3   : > { %3435 = vmatprep.subr.bf16.mxu0 %v3434_v35  ;;  %3467 = vmatprep.subr.bf16.mxu1 %v3466_v40 }
 0xcb4   : > { %v1933_v33 = vsub.s32 0, %v4335_v29  ;;  %v1941_v35 = vsub.s32 2, %v4335_v29  ;;  %v1937_v36 = vsub.s32 1, %v4335_v29  ;;  %v1945_v38 = vsub.s32 3, %v4335_v29 }
 0xcb5   : > { %v1949_v49 = vsub.s32 4, %v4335_v29  ;;  %v1953_v53 = vsub.s32 5, %v4335_v29 }
 0xcb6   : > { %3437 = vmatpush3.bf16.msra.mxu0 %v3436_v41  ;;  %3469 = vmatpush3.bf16.msra.mxu1 %v3468_v44  ;;  %v1966_v39 = vrot.slane %v1799_v34, %v1933_v33  ;;  %v1974_v40 = vrot.slane %v1799_v34, %v1941_v35  ;;  %v1970_v41 = vrot.slane %v1799_v34, %v1937_v36 }
 0xcb7   : > { %3439 = vmatprep.subr.bf16.mxu0 %v3438_v48  ;;  %3471 = vmatprep.subr.bf16.mxu1 %v3470_v50  ;;  %v1978_v42 = vrot.slane %v1799_v34, %v1945_v38  ;;  %v1957_v50 = vsub.s32 6, %v4335_v29  ;;  %v1982_v57 = vrot.slane %v1799_v34, %v1949_v49  ;;  %v1986_v59 = vrot.slane %v1799_v34, %v1953_v53 }
 0xcba   : > { %3441 = vmatpush3.bf16.msra.mxu0 %v3440_v51  ;;  %3473 = vmatpush3.bf16.msra.mxu1 %v3472_v54  ;;  %v1961_v54 = vsub.s32 7, %v4335_v29 }
 0xcbb   : > { %3443 = vmatprep.subr.bf16.mxu0 %v3442_v58  ;;  %3475 = vmatprep.subr.bf16.mxu1 %v3474_v62  ;;  %v1990_v58 = vrot.slane %v1799_v34, %v1957_v50 }
 0xcbc   : > { %v1994_v60 = vrot.slane %v1799_v34, %v1961_v54  ;;  %v1934_v34 = vrot.slane %v1798_v19, %v1933_v33 }
 0xcbe   : > { %3445 = vmatpush3.bf16.msra.mxu0 %v3444_v63  ;;  %3477 = vmatpush3.bf16.msra.mxu1 %v3476_v2 }
 0xcbf   : > { %3447 = vmatprep.subr.bf16.mxu0 %v3446_v5  ;;  %3479 = vmatprep.subr.bf16.mxu1 %v3478_v10 }
 0xcc2   : > { %3449 = vmatpush3.bf16.msra.mxu0 %v3448_v12  ;;  %3481 = vmatpush3.bf16.msra.mxu1 %v3480_v15 }
 0xcc3   : > { %3483 = vmatprep.subr.bf16.mxu0 %v3482_v20  ;;  %3515 = vmatprep.subr.bf16.mxu1 %v3514_v22 }
 0xd60   : > { %v4327_v23 = vpop.f32.mrb[14].mxu0  ;;  %v4329_v24 = vpop.f32.mrb[16].mxu1 }
 0xd61   : > { %v4331_v25 = vpop.f32.mrb[15].mxu0  ;;  %v4333_v27 = vpop.f32.mrb[17].mxu1  ;;  %v2081_v33 = vadd.f32 %v4327_v23, %v1934_v34  ;;  %v1896_v23 = vld [vmem:[%s4644_s11 + $0x300] sm:$0xff] }
 0xd68   : > { %v4337_v30 = vpop.f32.mrb[16].mxu0  ;;  %v4339_v31 = vpop.f32.mrb[18].mxu1 }
 0xd69   : > { %v4341_v32 = vpop.f32.mrb[17].mxu0  ;;  %v4343_v26 = vpop.f32.mrb[19].mxu1 }
 0xd70   : > { %v2364_v43 = vpop.f32.mrb[18].mxu0  ;;  %v2435_v44 = vpop.f32.mrb[20].mxu1 }
 0xd71   : > { %v4360_v45 = vadd.f32 %v2364_v43, %v1966_v39  ;;  %v4362_v46 = vadd.f32 %v2435_v44, %v1974_v40  ;;  %v2366_v47 = vpop.f32.mrb[19].mxu0  ;;  %v2437_v48 = vpop.f32.mrb[21].mxu1  ;;  %v1938_v43 = vrot.slane %v1798_v19, %v1937_v36  ;;  %v1864_v36 = vld [vmem:[%s4644_s11 + $0x200] sm:$0xff] }
 0xd72   : > { %v4364_v37 = vadd.f32 %v2366_v47, %v1970_v41  ;;  %v4366_v6 = vadd.f32 %v2437_v48, %v1978_v42  ;;  %v1942_v41 = vrot.slane %v1798_v19, %v1941_v35  ;;  %v1946_v48 = vrot.slane %v1798_v19, %v1945_v38  ;;  %v1865_v38 = vld [vmem:[%s4644_s11 + $0x208] sm:$0xff] }
 0xd73   : > { %v3053_v51 = vmul.f32 -1.442695, %v4360_v45  ;;  %v3055_v52 = vmul.f32 -1.442695, %v4362_v46 }
 0xd74   : > { %v3054_v17 = vmul.f32 -1.442695, %v4364_v37  ;;  %v3056_v56 = vmul.f32 -1.442695, %v4366_v6  ;;  %v2152_v35 = vadd.f32 %v4329_v24, %v1942_v41  ;;  %v1868_v41 = vld [vmem:[%s4644_s11 + $0x220] sm:$0xff] }
 0xd75   : > { %3589 = vpow2.f32 %v3053_v51 }
 0xd76   : > { %3591 = vpow2.f32 %v3055_v52 }
 0xd77   : > { %3593 = vpow2.f32 %v3054_v17 }
 0xd78   : > { %3595 = vpow2.f32 %v3056_v56  ;;  %v2506_v61 = vpop.f32.mrb[20].mxu0  ;;  %v2577_v62 = vpop.f32.mrb[22].mxu1 }
 0xd79   : > { %v4384_v63 = vadd.f32 %v2506_v61, %v1982_v57  ;;  %v4386_v0 = vadd.f32 %v2577_v62, %v1990_v58  ;;  %v2508_v1 = vpop.f32.mrb[21].mxu0  ;;  %v2579_v2 = vpop.f32.mrb[23].mxu1  ;;  %v2154_v61 = vadd.f32 %v4333_v27, %v1946_v48  ;;  %v1866_v27 = vld [vmem:[%s4644_s11 + $0x210] sm:$0xff] }
 0xd7a   : > { %v4388_v11 = vadd.f32 %v2508_v1, %v1986_v59  ;;  %v4390_v3 = vadd.f32 %v2579_v2, %v1994_v60  ;;  %v1882_v59 = vld [vmem:[%s4644_s11 + $0x290] sm:$0xff]  ;;  %v1883_v60 = vld [vmem:[%s4644_s11 + $0x298] sm:$0xff]  ;;  %v1950_v2 = vrot.slane %v1798_v19, %v1949_v49 }
 0xd7b   : > { %v3057_v4 = vmul.f32 -1.442695, %v4384_v63  ;;  %v3059_v5 = vmul.f32 -1.442695, %v4386_v0  ;;  %v1915_v1 = vld [vmem:[%s4644_s11 + $0x398] sm:$0xff]  ;;  %v1898_v49 = vld [vmem:[%s4644_s11 + $0x310] sm:$0xff] }
 0xd7c   : > { %v3058_v7 = vmul.f32 -1.442695, %v4388_v11  ;;  %v3060_v8 = vmul.f32 -1.442695, %v4390_v3  ;;  %v1886_v48 = vld [vmem:[%s4644_s11 + $0x2b0] sm:$0xff] }
 0xd7d   : > { %3597 = vpow2.f32 %v3057_v4 }
 0xd7e   : > { %3599 = vpow2.f32 %v3059_v5  ;;  %v3484_v5 = vpack.c.bf16 %v1865_v38, %v1864_v36 }
 0xd7f   : > { %v3590_v9 = vpop.eup %3589  ;;  %3601 = vpow2.f32 %v3058_v7  ;;  %v1958_v7 = vrot.slane %v1798_v19, %v1957_v50  ;;  %v1884_v50 = vld [vmem:[%s4644_s11 + $0x2a0] sm:$0xff] }
 0xd80   : > { %v3592_v10 = vpop.eup %3591  ;;  %v2606_v12 = vadd.f32 1.0, %v3590_v9  ;;  %3603 = vpow2.f32 %v3060_v8 }
 0xd81   : > { %v3594_v13 = vpop.eup %3593  ;;  %v2608_v14 = vadd.f32 1.0, %v3592_v10  ;;  %v3486_v10 = vpack.c.bf16 %v1883_v60, %v1882_v59  ;;  %v1920_v59 = vld [vmem:[%s4644_s11 + $0x3c0] sm:$0xff]  ;;  %v1921_v60 = vld [vmem:[%s4644_s11 + $0x3c8] sm:$0xff] }
 0xd82   : > { %v3596_v15 = vpop.eup %3595  ;;  %3605 = vrcp.f32 %v2606_v12  ;;  %v2607_v16 = vadd.f32 1.0, %v3594_v13  ;;  %v1899_v12 = vld [vmem:[%s4644_s11 + $0x318] sm:$0xff]  ;;  %v1954_v13 = vrot.slane %v1798_v19, %v1953_v53  ;;  %v1916_v53 = vld [vmem:[%s4644_s11 + $0x3a0] sm:$0xff] }
 0xd83   : > { %3607 = vrcp.f32 %v2608_v14  ;;  %v2609_v18 = vadd.f32 1.0, %v3596_v15  ;;  %v1885_v15 = vld [vmem:[%s4644_s11 + $0x2a8] sm:$0xff]  ;;  %v3520_v29 = vpack.c.bf16 %v1899_v12, %v1898_v49  ;;  %v1874_v12 = vld [vmem:[%s4644_s11 + $0x250] sm:$0xff] }
 0xd84   : > { %3609 = vrcp.f32 %v2607_v16 }
 0xd85   : > { %3611 = vrcp.f32 %v2609_v18  ;;  %v1962_v18 = vrot.slane %v1798_v19, %v1961_v54  ;;  %v2294_v19 = vadd.f32 %v4339_v31, %v1958_v7  ;;  %v2225_v31 = vadd.f32 %v4341_v32, %v1954_v13  ;;  %v1922_v7 = vld [vmem:[%s4644_s11 + $0x3d0] sm:$0xff]  ;;  %v1875_v13 = vld [vmem:[%s4644_s11 + $0x258] sm:$0xff] }
 0xd87   : > { %v3598_v20 = vpop.eup %3597  ;;  %v2296_v32 = vadd.f32 %v4343_v26, %v1962_v18  ;;  %v1893_v18 = vld [vmem:[%s4644_s11 + $0x2e8] sm:$0xff] }
 0xd88   : > { %v3600_v21 = vpop.eup %3599  ;;  %v2610_v22 = vadd.f32 1.0, %v3598_v20 }
 0xd89   : > { %v3602_v28 = vpop.eup %3601  ;;  %v2612_v39 = vadd.f32 1.0, %v3600_v21  ;;  %v1917_v21 = vld [vmem:[%s4644_s11 + $0x3a8] sm:$0xff] }
 0xd8a   : > { %v3604_v40 = vpop.eup %3603  ;;  %3613 = vrcp.f32 %v2610_v22  ;;  %v2611_v42 = vadd.f32 1.0, %v3602_v28  ;;  %v2223_v28 = vadd.f32 %v4337_v30, %v1950_v2  ;;  %v1869_v30 = vld [vmem:[%s4644_s11 + $0x228] sm:$0xff]  ;;  %v1904_v2 = vld [vmem:[%s4644_s11 + $0x340] sm:$0xff] }
 0xd8b   : > { %3615 = vrcp.f32 %v2612_v39  ;;  %v2613_v44 = vadd.f32 1.0, %v3604_v40  ;;  %v3490_v40 = vpack.c.bf16 %v1885_v15, %v1884_v50  ;;  %v1907_v15 = vld [vmem:[%s4644_s11 + $0x358] sm:$0xff] }
 0xd8c   : > { %v3606_v47 = vpop.eup %3605  ;;  %3617 = vrcp.f32 %v2611_v42 }
 0xd8d   : > { %v3608_v51 = vpop.eup %3607  ;;  %v2630_v52 = vmul.f32 %v3606_v47, %v4360_v45  ;;  %3619 = vrcp.f32 %v2613_v44  ;;  %v2083_v45 = vadd.f32 %v4331_v25, %v1938_v43  ;;  %v3522_v44 = vpack.c.bf16 %v1917_v21, %v1916_v53  ;;  %v1901_v47 = vld [vmem:[%s4644_s11 + $0x328] sm:$0xff] }
 0xd8e   : > { %v3610_v17 = vpop.eup %3609  ;;  %v2632_v56 = vmul.f32 %v3608_v51, %v4362_v46  ;;  %v1897_v46 = vld [vmem:[%s4644_s11 + $0x308] sm:$0xff]  ;;  %v1887_v51 = vld [vmem:[%s4644_s11 + $0x2b8] sm:$0xff]  ;;  %v3504_v21 = vpack.c.bf16 %v1875_v13, %v1874_v12 }
 0xd8f   : > { %v3612_v57 = vpop.eup %3611  ;;  %v2638_v58 = vmul.f32 %v2630_v52, %v2081_v33  ;;  %v2631_v24 = vmul.f32 %v3610_v17, %v4364_v37  ;;  %v1914_v37 = vld [vmem:[%s4644_s11 + $0x390] sm:$0xff]  ;;  %v3516_v9 = vpack.c.bf16 %v1897_v46, %v1896_v23  ;;  %v1919_v17 = vld [vmem:[%s4644_s11 + $0x3b8] sm:$0xff]  ;;  %v3494_v26 = vpack.c.bf16 %v1887_v51, %v1886_v48  ;;  %v1889_v46 = vld [vmem:[%s4644_s11 + $0x2c8] sm:$0xff] }
 0xd90   : > { %v2640_v62 = vmul.f32 %v2632_v56, %v2152_v35  ;;  %v2633_v25 = vmul.f32 %v3612_v57, %v4366_v6  ;;  %v1867_v6 = vld [vmem:[%s4644_s11 + $0x218] sm:$0xff]  ;;  %v3518_v14 = vpack.c.bf16 %v1915_v1, %v1914_v37  ;;  %v1918_v52 = vld [vmem:[%s4644_s11 + $0x3b0] sm:$0xff]  ;;  %v3492_v56 = vpack.c.bf16 %v1869_v30, %v1868_v41  ;;  %v1872_v37 = vld [vmem:[%s4644_s11 + $0x240] sm:$0xff] }
 0xd91   : > { %v2639_v4 = vmul.f32 %v2631_v24, %v2083_v45  ;;  %v3488_v20 = vpack.c.bf16 %v1867_v6, %v1866_v27  ;;  %v1871_v23 = vld [vmem:[%s4644_s11 + $0x238] sm:$0xff]  ;;  %v1902_v57 = vld [vmem:[%s4644_s11 + $0x330] sm:$0xff]  ;;  %v3526_v45 = vpack.c.bf16 %v1919_v17, %v1918_v52  ;;  %v1888_v24 = vld [vmem:[%s4644_s11 + $0x2c0] sm:$0xff] }
 0xd92   : > { %v2641_v8 = vmul.f32 %v2633_v25, %v2154_v61  ;;  %v3498_v25 = vpack.c.bf16 %v1889_v46, %v1888_v24  ;;  %v1873_v1 = vld [vmem:[%s4644_s11 + $0x248] sm:$0xff]  ;;  %v1890_v27 = vld [vmem:[%s4644_s11 + $0x2d0] sm:$0xff]  ;;  %v1891_v6 = vld [vmem:[%s4644_s11 + $0x2d8] sm:$0xff] }
 0xd93   : > { %2716 = vmatprep.mubr.f32.mxu0 %v2639_v4  ;;  %v3530_v4 = vpack.c.bf16 %v1921_v60, %v1920_v59  ;;  %v3502_v49 = vpack.c.bf16 %v1891_v6, %v1890_v27  ;;  %v1925_v53 = vld [vmem:[%s4644_s11 + $0x3e8] sm:$0xff]  ;;  %v1895_v41 = vld [vmem:[%s4644_s11 + $0x2f8] sm:$0xff]  ;;  %v1926_v30 = vld [vmem:[%s4644_s11 + $0x3f0] sm:$0xff] }
 0xd94   : > { %v3614_v16 = vpop.eup %3613  ;;  %2786 = vmatprep.mubr.f32.mxu1 %v2641_v8  ;;  %2717 = vmatmul.mubr.f32.vlgmr.msra.gmra.mrb[22].mxu0 %v2638_v58  ;;  %v1903_v58 = vld [vmem:[%s4644_s11 + $0x338] sm:$0xff]  ;;  %v1910_v51 = vld [vmem:[%s4644_s11 + $0x370] sm:$0xff] }
 0xd95   : > { %v3616_v22 = vpop.eup %3615  ;;  %v2634_v34 = vmul.f32 %v3614_v16, %v4384_v63  ;;  %2787 = vmatmul.mubr.f32.vlgmr.msra.gmra.mrb[24].mxu1 %v2640_v62  ;;  %3485 = vmatpush3.bf16.msra.mxu0 %v3484_v5  ;;  %v1900_v63 = vld [vmem:[%s4644_s11 + $0x320] sm:$0xff]  ;;  %v3528_v62 = vpack.c.bf16 %v1903_v58, %v1902_v57  ;;  %v1905_v5 = vld [vmem:[%s4644_s11 + $0x348] sm:$0xff]  ;;  %v1923_v8 = vld [vmem:[%s4644_s11 + $0x3d8] sm:$0xff] }
 0xd96   : > { %v3618_v54 = vpop.eup %3617  ;;  %v2636_v39 = vmul.f32 %v3616_v22, %v4386_v0  ;;  %3517 = vmatpush3.bf16.msra.mxu1 %v3516_v9  ;;  %3487 = vmatprep.subr.bf16.mxu0 %v3486_v10  ;;  %v3524_v38 = vpack.c.bf16 %v1901_v47, %v1900_v63  ;;  %v3500_v9 = vpack.c.bf16 %v1873_v1, %v1872_v37  ;;  %v1892_v16 = vld [vmem:[%s4644_s11 + $0x2e0] sm:$0xff]  ;;  %v1927_v63 = vld [vmem:[%s4644_s11 + $0x3f8] sm:$0xff] }
 0xd97   : > { %v3620_v42 = vpop.eup %3619  ;;  %v4485_v43 = vmul.f32 %v2634_v34, %v2223_v28  ;;  %v2635_v0 = vmul.f32 %v3618_v54, %v4388_v11  ;;  %3519 = vmatprep.subr.bf16.mxu1 %v3518_v14  ;;  %v3532_v10 = vpack.c.bf16 %v1905_v5, %v1904_v2  ;;  %v1906_v14 = vld [vmem:[%s4644_s11 + $0x350] sm:$0xff]  ;;  %v3534_v50 = vpack.c.bf16 %v1923_v8, %v1922_v7  ;;  %v1876_v34 = vld [vmem:[%s4644_s11 + $0x260] sm:$0xff]  ;;  %v1879_v47 = vld [vmem:[%s4644_s11 + $0x278] sm:$0xff] }
 0xd98   : > { %v4498_v33 = vmul.f32 %v2636_v39, %v2294_v19  ;;  %v2637_v11 = vmul.f32 %v3620_v42, %v4390_v3  ;;  %v1870_v3 = vld [vmem:[%s4644_s11 + $0x230] sm:$0xff]  ;;  %v3536_v22 = vpack.c.bf16 %v1907_v15, %v1906_v14  ;;  %v3506_v28 = vpack.c.bf16 %v1893_v18, %v1892_v16  ;;  %v1908_v54 = vld [vmem:[%s4644_s11 + $0x360] sm:$0xff]  ;;  %v1909_v39 = vld [vmem:[%s4644_s11 + $0x368] sm:$0xff] }
 0xd99   : > { %3489 = vmatpush3.bf16.msra.mxu0 %v3488_v20  ;;  %v2643_v35 = vmul.f32 %v2635_v0, %v2225_v31  ;;  %v3496_v61 = vpack.c.bf16 %v1871_v23, %v1870_v3  ;;  %v1924_v20 = vld [vmem:[%s4644_s11 + $0x3e0] sm:$0xff]  ;;  %v3540_v31 = vpack.c.bf16 %v1909_v39, %v1908_v54  ;;  %v3542_v48 = vpack.c.bf16 %v1927_v63, %v1926_v30 }
 0xd9a   : > { %3521 = vmatpush3.bf16.msra.mxu1 %v3520_v29  ;;  %3491 = vmatprep.subr.bf16.mxu0 %v3490_v40  ;;  %v2645_v36 = vmul.f32 %v2637_v11, %v2296_v32  ;;  %v1877_v29 = vld [vmem:[%s4644_s11 + $0x268] sm:$0xff]  ;;  %v3538_v19 = vpack.c.bf16 %v1925_v53, %v1924_v20  ;;  %v1894_v40 = vld [vmem:[%s4644_s11 + $0x2f0] sm:$0xff]  ;;  %v1911_v32 = vld [vmem:[%s4644_s11 + $0x378] sm:$0xff] }
 0xd9b   : > { %2856 = vmatprep.mubr.f32.mxu0 %v2643_v35  ;;  %3523 = vmatprep.subr.bf16.mxu1 %v3522_v44  ;;  %v3508_v42 = vpack.c.bf16 %v1877_v29, %v1876_v34  ;;  %v3510_v0 = vpack.c.bf16 %v1895_v41, %v1894_v40  ;;  %v1878_v44 = vld [vmem:[%s4644_s11 + $0x270] sm:$0xff]  ;;  %v3544_v52 = vpack.c.bf16 %v1911_v32, %v1910_v51 }
 0xd9c   : > { %2926 = vmatprep.mubr.f32.mxu1 %v2645_v36  ;;  %v3512_v11 = vpack.c.bf16 %v1879_v47, %v1878_v44 }
 0xd9d   : > { %3493 = vmatpush3.bf16.msra.mxu0 %v3492_v56  ;;  %v3061_v56 = vld [vmem:[%s4645_s12] ss:$0 sm:$0xff] }
 0xd9e   : > { %3525 = vmatpush3.bf16.msra.mxu1 %v3524_v38  ;;  %3495 = vmatprep.subr.bf16.mxu0 %v3494_v26 }
 0xd9f   : > { %3527 = vmatprep.subr.bf16.mxu1 %v3526_v45 }
 0xda1   : > { %3497 = vmatpush3.bf16.msra.mxu0 %v3496_v61 }
 0xda2   : > { %3529 = vmatpush3.bf16.msra.mxu1 %v3528_v62  ;;  %3499 = vmatprep.subr.bf16.mxu0 %v3498_v25 }
 0xda3   : > { %3531 = vmatprep.subr.bf16.mxu1 %v3530_v4 }
 0xda5   : > { %3501 = vmatpush3.bf16.msra.mxu0 %v3500_v9 }
 0xda6   : > { %3533 = vmatpush3.bf16.msra.mxu1 %v3532_v10  ;;  %3503 = vmatprep.subr.bf16.mxu0 %v3502_v49 }
 0xda7   : > { %3535 = vmatprep.subr.bf16.mxu1 %v3534_v50 }
 0xda9   : > { %3505 = vmatpush3.bf16.msra.mxu0 %v3504_v21 }
 0xdaa   : > { %3537 = vmatpush3.bf16.msra.mxu1 %v3536_v22  ;;  %3507 = vmatprep.subr.bf16.mxu0 %v3506_v28 }
 0xdab   : > { %3539 = vmatprep.subr.bf16.mxu1 %v3538_v19 }
 0xdad   : > { %3509 = vmatpush3.bf16.msra.mxu0 %v3508_v42 }
 0xdae   : > { %3541 = vmatpush3.bf16.msra.mxu1 %v3540_v31  ;;  %3511 = vmatprep.subr.bf16.mxu0 %v3510_v0 }
 0xdaf   : > { %3543 = vmatprep.subr.bf16.mxu1 %v3542_v48 }
 0xdb1   : > { %3513 = vmatpush3.bf16.msra.mxu0 %v3512_v11 }
 0xdb2   : > { %3545 = vmatpush3.bf16.msra.mxu1 %v3544_v52 }
 0xdb4   : > { %2857 = vmatmul.mubr.f32.vlgmr.msra.gmra.mrb[24].mxu0 %v4485_v43 }
 0xdb5   : > { %2927 = vmatmul.mubr.f32.vlgmr.msra.gmra.mrb[26].mxu1 %v4498_v33 }
 0xe67   : > { %v3135_v17 = vpop.f32.mrb[22].mxu0 }
 0xe68   : > { %v3170_v35 = vpop.f32.mrb[24].mxu1  ;;  %v3136_v36 = vpop.f32.mrb[23].mxu0 }
 0xe69   : > { %v3137_v38 = vadd.f32 %v3136_v36, %v3135_v17  ;;  %v3171_v26 = vpop.f32.mrb[25].mxu1 }
 0xe6a   : > { %v3172_v3 = vadd.f32 %v3171_v26, %v3170_v35 }
 0xe6b   : > { %v2719_v23 = vadd.f32 %v3137_v38, %v3061_v56 }
 0xe6d   : > { %v2789_v57 = vadd.f32 %v3172_v3, %v2719_v23 }
 0xe87   : > { %v3205_v45 = vpop.f32.mrb[24].mxu0 }
 0xe88   : > { %v3240_v58 = vpop.f32.mrb[26].mxu1  ;;  %v3206_v24 = vpop.f32.mrb[25].mxu0 }
 0xe89   : > { %v3207_v46 = vadd.f32 %v3206_v24, %v3205_v45  ;;  %v3241_v59 = vpop.f32.mrb[27].mxu1 }
 0xe8a   : > { %v3242_v43 = vadd.f32 %v3241_v59, %v3240_v58 }
 0xe8b   : > { %v2859_v60 = vadd.f32 %v3207_v46, %v2789_v57 }
 0xe8d   : > { %v2929_v33 = vadd.f32 %v3242_v43, %v2859_v60 }
 0xe8f   : > { %v2932_v61 = vadd.f32 %v2929_v33, %v3997_v55  ;;  %v3625_v55 = vld [vmem:[%s4646_s13] ss:$0 sm:$0xff] }
 0xe91   : > { %v2933_v62 = vmul.f32 %v2932_v61, %v2932_v61  ;;  %v2945_v8 = vmul.f32 %v3625_v55, %v2932_v61 }
 0xe93   : > { %v2934_v25 = vsel %vm500_vm1, %v2933_v62, 0.0 }
 0xe94   : > { %2935 = vadd.xlane.f32.xlu1 %v2934_v25 }
 0xf21   : > { %v2936_v37 = vpop.xlane.xlu1 %2935 }
 0xf22   : > { %3621 = vrsqrt.f32 %v2936_v37  ;;  %vm2939_vm6 = vcmp.eq.f32.partialorder %v2936_v37, inf  ;;  %v2942_v4 = vand.u32 2147483648, %v2936_v37  ;;  %vm2941_vm7 = vcmp.eq.f32.partialorder %v2936_v37, 0.0 }
 0xf2c   : > { %v3622_v1 = vpop.eup %3621 }
 0xf2d   : > { %v2938_v2 = vmul.f32 %v3622_v1, %v2936_v37 }
 0xf2f   : > { %v2940_v5 = vsel %vm2939_vm6, %v2936_v37, %v2938_v2 }
 0xf30   : > { %v2943_v27 = vsel %vm2941_vm7, %v2942_v4, %v2940_v5 }
 0xf31   : > { %v2944_v6 = vmul.f32 0.17677669, %v2943_v27 }
 0xf33   : > { %v2946_v7 = vadd.f32 1e-06, %v2944_v6 }
 0xf35   : > { %3623 = vrcp.f32 %v2946_v7 }
 0xf3f   : > { %v3624_v9 = vpop.eup %3623 }
 0xf40   : > { %v2948_v10 = vmul.f32 %v3624_v9, %v2945_v8 }
 0xf42   : > { %2949 = vst.msk [vmem:[%s479_s28] sm:$0xff] %vm500_vm1, %v2948_v10 }
 0xf43 PF: > { %s24_s29 = sadd.s32 1, %s3632_s29  }
 0xf44   : > { %p21_p4 = scmp.ge.s32.totalorder %s24_s29, 4  }
 0xf46   :  { %23 = sbr.rel (!%p21_p4) target bundleno = 1 (0x1), region = 109 }

</bundles_post_ra>
